<compile_context>
chip_gen: v5e
topology: v5e:2x2
jax: 0.10.0
libtpu: 0.0.40
codegen_flags: <defaults>
</compile_context>

<pallas_src>
import numpy as np
import jax
import jax.numpy as jnp
from jax import lax
from jax.experimental import pallas as pl
from jax.experimental.pallas import tpu as pltpu


# ----------------------------- static dims ---------------------------------
KH = KW = 5
C_IN, C_OUT = 3, 18
H_IN = W_IN = 32
H_CONV = W_CONV = H_IN - KH + 1          # 28
H_POOL = W_POOL = H_CONV // 2            # 14
FC_IN = C_OUT * H_POOL * W_POOL          # 3528
FC_OUT = 10
FC_PAD = 128                             # lane-dense padded output width

LANES_IN = W_IN * C_IN                   # 96  : one input row, (w, c) on lanes
POOL_LANES = W_POOL * C_OUT              # 252 : pooled row, (pw, co) on lanes
HALF = 256                               # lane-aligned pad of one w-parity half
ROWS_PER_PLANE = H_IN // 2               # 16 rows per row-parity plane


# ----------------------------- fused kernel --------------------------------
def _net4_fused_kernel(x_ref, tc_ref, cb_ref, fw_ref, fb_ref, o_ref):
    """conv(3->18,5x5) + ReLU + maxpool(2x2) + fc(3528->10), fully fused.

    x_ref : (2, 16*TB, 96) bf16  row-parity planes; plane row index = r*TB + s
    tc_ref: (5, 96, 512)   bf16  Toeplitz conv slabs; even output cols in
                                 lanes [0,256), odd output cols in [256,512)
    cb_ref: (1, 256)       f32   conv bias broadcast over pooled-w lanes
    fw_ref: (14, 256, 128) f32/bf16  fc weights, one slab per pooled row
    fb_ref: (1, 128)       f32   fc bias (lanes 10..127 zero)
    o_ref : (TB, 128)      f32   logits (lanes 10..127 zero)
    """
    tb = o_ref.shape[0]
    m = H_POOL * tb                       # 14*TB conv/pool rows per parity

    # ---- conv: 10 big matmuls (M = 14*TB), accumulate in f32 ---------------
    acc = [jnp.zeros((m, 2 * HALF), jnp.float32) for _ in range(2)]
    for kh in range(KH):
        t_kh = tc_ref[kh]                                       # (96, 512)
        for p in range(2):                                      # out-row parity
            sp = (p + kh) % 2                                   # source plane
            off = ((p + kh) // 2) * tb                          # 8-aligned
            lhs = x_ref[sp, off:off + m, :]                     # (14*TB, 96)
            acc[p] = acc[p] + jnp.dot(lhs, t_kh,
                                      preferred_element_type=jnp.float32)

    # ---- 2x2 max-pool: over h (row parity) then w (lane halves) ------------
    pre = jnp.maximum(acc[0], acc[1])                           # (14*TB, 512)
    pooled = jnp.maximum(pre[:, :HALF], pre[:, HALF:])          # (14*TB, 256)
    act = jnp.maximum(pooled + cb_ref[...], 0.0)                # bias + ReLU
    act = act.astype(jnp.bfloat16)

    # ---- fc: 14 accumulating (TB,256)x(256,128) matmuls ---------------------
    out = fb_ref[...]                                           # (1, 128) f32
    for ph in range(H_POOL):
        out = out + jnp.dot(act[ph * tb:(ph + 1) * tb, :], fw_ref[ph],
                            preferred_element_type=jnp.float32)
    o_ref[...] = out


# ------------------------ one-time weight repacking -------------------------
def preprocess_params(params):
    """Repack PyTorch-layout weights into the kernel layout (host, once)."""
    wc = np.asarray(params["conv_w"], np.float32)     # (18, 3, 5, 5)
    bc = np.asarray(params["conv_b"], np.float32)     # (18,)
    wfc = np.asarray(params["fc_w"], np.float32)      # (10, 3528)
    bfc = np.asarray(params["fc_b"], np.float32)      # (10,)

    # tc[kh, w'*3 + c, half*256 + pw*18 + co] = wc[co, c, kh, w' - (2*pw+half)]
    tc = np.zeros((KH, LANES_IN, 2 * HALF), np.float32)
    for kh in range(KH):
        for half in range(2):                          # output-w parity
            base = half * HALF
            for pw in range(W_POOL):
                w_out = 2 * pw + half
                for kw in range(KW):
                    wp = w_out + kw                    # input column w'
                    tc[kh, wp * C_IN:(wp + 1) * C_IN,
                       base + pw * C_OUT: base + (pw + 1) * C_OUT] = \
                        wc[:, :, kh, kw].T             # (c, co)

    cb = np.zeros((1, HALF), np.float32)
    cb[0, :POOL_LANES] = np.tile(bc, W_POOL)           # lane pw*18+co -> bc[co]

    # fw[ph, pw*18+co, o] = wfc[o, co*196 + ph*14 + pw]  (torch flatten order)
    fw = np.zeros((H_POOL, HALF, FC_PAD), np.float32)
    fw[:, :POOL_LANES, :FC_OUT] = (wfc.reshape(FC_OUT, C_OUT, H_POOL, W_POOL)
                                   .transpose(2, 3, 1, 0)
                                   .reshape(H_POOL, POOL_LANES, FC_OUT))
    fb = np.zeros((1, FC_PAD), np.float32)
    fb[0, :FC_OUT] = bfc

    return {"tc": jnp.asarray(tc, jnp.bfloat16),
            "cb": jnp.asarray(cb, jnp.float32),
            "fw": jnp.asarray(fw, jnp.bfloat16),
            "fb": jnp.asarray(fb, jnp.float32)}


# ------------------------------- forward ------------------------------------
def _pick_tb(n):
    """Largest batch tile (multiple of 8, <=32) that still gives grid >= 2."""
    for tb in (32, 16, 8):
        if n >= 2 * tb:
            return tb
    return 8


def net4_forward(x, prepared):
    """x: (N, 3, 32, 32) float32 NCHW.  Returns (N, 10) logits (float32)."""
    N = x.shape[0]
    TB = _pick_tb(N)
    n_pad = (-N) % TB
    n_padded = N + n_pad
    n_tiles = n_padded // TB

    # Cheap layout glue on the raw 12 KB/sample input (no im2col expansion):
    # NCHW -> NHWC -> merge (w, c) onto lanes -> split rows by parity ->
    # interleave samples under each row so plane row index = r*TB + s.
    x_rm = jnp.transpose(x, (0, 2, 3, 1)).reshape(N, H_IN, LANES_IN)
    if n_pad:
        x_rm = jnp.pad(x_rm, ((0, n_pad), (0, 0), (0, 0)))
    x_par = jnp.stack([x_rm[:, 0::2, :], x_rm[:, 1::2, :]], axis=0)
    x_prep = (x_par.reshape(2, n_tiles, TB, ROWS_PER_PLANE, LANES_IN)
                    .transpose(0, 1, 3, 2, 4)
                    .reshape(2, n_tiles * ROWS_PER_PLANE * TB, LANES_IN)
                    .astype(jnp.bfloat16))

    out = pl.pallas_call(
        _net4_fused_kernel,
        out_shape=jax.ShapeDtypeStruct((n_padded, FC_PAD), jnp.float32),
        grid=(n_tiles,),
        in_specs=[
            pl.BlockSpec((2, ROWS_PER_PLANE * TB, LANES_IN),
                         lambda i: (0, i, 0)),
            pl.BlockSpec((KH, LANES_IN, 2 * HALF), lambda i: (0, 0, 0)),
            pl.BlockSpec((1, HALF), lambda i: (0, 0)),
            pl.BlockSpec((H_POOL, HALF, FC_PAD), lambda i: (0, 0, 0)),
            pl.BlockSpec((1, FC_PAD), lambda i: (0, 0)),
        ],
        out_specs=pl.BlockSpec((TB, FC_PAD), lambda i: (i, 0)),
        compiler_params=pltpu.CompilerParams(
            dimension_semantics=("parallel",),
            vmem_limit_bytes=32 * 1024 * 1024),
    )(x_prep, prepared["tc"], prepared["cb"], prepared["fw"], prepared["fb"])
    return out[:N, :FC_OUT]


# ----------------------------- reference (JAX) ------------------------------
def net4_reference(x, params):
    wc, bc, wfc, bfc = (params["conv_w"], params["conv_b"],
                        params["fc_w"], params["fc_b"])
    conv = lax.conv_general_dilated(
        x, wc, window_strides=(1, 1), padding="VALID",
        dimension_numbers=("NCHW", "OIHW", "NCHW"))
    conv = jnp.maximum(conv + bc[None, :, None, None], 0.0)   # (N, 18, 28, 28)
    N = x.shape[0]
    pooled = conv.reshape(N, C_OUT, H_POOL, 2, W_POOL, 2).max(axis=(3, 5))
    return pooled.reshape(N, FC_IN) @ wfc.T + bfc


# ---------------------------------- main ------------------------------------
def init_params(key):
    k1, k2, k3, k4 = jax.random.split(key, 4)
    fan_conv = C_IN * KH * KW
    bnd_c = 1.0 / jnp.sqrt(fan_conv)
    bnd_f = 1.0 / jnp.sqrt(FC_IN)
    return {
        "conv_w": jax.random.uniform(k1, (C_OUT, C_IN, KH, KW),
                                     jnp.float32, -bnd_c, bnd_c),
        "conv_b": jax.random.uniform(k2, (C_OUT,), jnp.float32, -bnd_c, bnd_c),
        "fc_w": jax.random.uniform(k3, (FC_OUT, FC_IN),
                                   jnp.float32, -bnd_f, bnd_f),
        "fc_b": jax.random.uniform(k4, (FC_OUT,), jnp.float32, -bnd_f, bnd_f),
    }


if __name__ == "__main__":
    key = jax.random.PRNGKey(0)
    kp, kx1, kx2 = jax.random.split(key, 3)
    params = init_params(kp)
    prepared = preprocess_params(params)          # hoisted: done once, on host

    fwd = jax.jit(net4_forward)

    # Small deterministic batch (spec-sized input: CIFAR-like 3x32x32).
    x_small = jax.random.normal(kx1, (2, C_IN, H_IN, W_IN), jnp.float32)
    out_small = jax.block_until_ready(fwd(x_small, prepared))
    assert out_small.shape == (2, FC_OUT), out_small.shape
    ref_small = net4_reference(x_small, params)
    assert jnp.allclose(out_small, ref_small, rtol=2e-2, atol=2e-2), \
        "mismatch vs reference (small batch)"

    # Larger, non-multiple batch: exercises TB>8, batch padding and grid > 1.
    x_big = jax.random.normal(kx2, (40, C_IN, H_IN, W_IN), jnp.float32)
    out_big = jax.block_until_ready(fwd(x_big, prepared))
    assert out_big.shape == (40, FC_OUT), out_big.shape
    ref_big = net4_reference(x_big, params)
    assert jnp.allclose(out_big, ref_big, rtol=2e-2, atol=2e-2), \
        "mismatch vs reference (large batch)"

    print("KERNEL_OK")
</pallas_src>

<mosaic_0001>
module attributes {stable_mosaic.version = 11 : i64} {
  func.func @_net4_fused_kernel(%arg0: i32, %arg1: memref<2x128x96xbf16, #tpu.memory_space<vmem>>, %arg2: memref<5x96x512xbf16, #tpu.memory_space<vmem>>, %arg3: memref<1x256xf32, #tpu.memory_space<vmem>>, %arg4: memref<14x256x128xbf16, #tpu.memory_space<vmem>>, %arg5: memref<1x128xf32, #tpu.memory_space<vmem>>, %arg6: memref<8x128xf32, #tpu.memory_space<vmem>>) attributes {dimension_semantics = [#tpu.dimension_semantics<parallel>], iteration_bounds = array<i64: 1>, scalar_prefetch = 0 : i64, scratch_operands = 0 : i64, tpu.core_type = #tpu.core_type<tc>, window_params = [{transform_indices = @transform_0, window_bounds = array<i64: 2, 128, 96>}, {pipeline_mode = #tpu.pipeline_mode<synchronous>, transform_indices = @transform_1, window_bounds = array<i64: 5, 96, 512>}, {pipeline_mode = #tpu.pipeline_mode<synchronous>, transform_indices = @transform_2, window_bounds = array<i64: 1, 256>}, {pipeline_mode = #tpu.pipeline_mode<synchronous>, transform_indices = @transform_3, window_bounds = array<i64: 14, 256, 128>}, {pipeline_mode = #tpu.pipeline_mode<synchronous>, transform_indices = @transform_4, window_bounds = array<i64: 1, 128>}, {transform_indices = @transform_5, window_bounds = array<i64: 8, 128>}]} {
    %cst = arith.constant 0.000000e+00 : f32
    %0 = vector.broadcast %cst : f32 to vector<112x512xf32>
    %cst_0 = arith.constant 0.000000e+00 : f32
    %1 = vector.broadcast %cst_0 : f32 to vector<112x512xf32>
    %c0 = arith.constant 0 : index
    %c0_1 = arith.constant 0 : index
    %c0_2 = arith.constant 0 : index
    %2 = vector.load %arg2[%c0, %c0_1, %c0_2] : memref<5x96x512xbf16, #tpu.memory_space<vmem>>, vector<1x96x512xbf16>
    %3 = vector.shape_cast %2 : vector<1x96x512xbf16> to vector<96x512xbf16>
    %c0_3 = arith.constant 0 : index
    %c0_4 = arith.constant 0 : index
    %c0_5 = arith.constant 0 : index
    %4 = vector.load %arg1[%c0_3, %c0_4, %c0_5] : memref<2x128x96xbf16, #tpu.memory_space<vmem>>, vector<1x112x96xbf16>
    %5 = vector.shape_cast %4 : vector<1x112x96xbf16> to vector<112x96xbf16>
    %cst_6 = arith.constant dense<0.000000e+00> : vector<112x512xf32>
    %6 = tpu.matmul %5, %3, %cst_6 {dimension_numbers = #tpu.dot_dimension_numbers<[1], [0], [0], [1], [0, 0, 1, 1], [], []>} : vector<112x96xbf16>, vector<96x512xbf16>, vector<112x512xf32> -> vector<112x512xf32>
    %7 = arith.addf %0, %6 : vector<112x512xf32>
    %c1 = arith.constant 1 : index
    %c0_7 = arith.constant 0 : index
    %c0_8 = arith.constant 0 : index
    %8 = vector.load %arg1[%c1, %c0_7, %c0_8] : memref<2x128x96xbf16, #tpu.memory_space<vmem>>, vector<1x112x96xbf16>
    %9 = vector.shape_cast %8 : vector<1x112x96xbf16> to vector<112x96xbf16>
    %cst_9 = arith.constant dense<0.000000e+00> : vector<112x512xf32>
    %10 = tpu.matmul %9, %3, %cst_9 {dimension_numbers = #tpu.dot_dimension_numbers<[1], [0], [0], [1], [0, 0, 1, 1], [], []>} : vector<112x96xbf16>, vector<96x512xbf16>, vector<112x512xf32> -> vector<112x512xf32>
    %11 = arith.addf %1, %10 : vector<112x512xf32>
    %c1_10 = arith.constant 1 : index
    %c0_11 = arith.constant 0 : index
    %c0_12 = arith.constant 0 : index
    %12 = vector.load %arg2[%c1_10, %c0_11, %c0_12] : memref<5x96x512xbf16, #tpu.memory_space<vmem>>, vector<1x96x512xbf16>
    %13 = vector.shape_cast %12 : vector<1x96x512xbf16> to vector<96x512xbf16>
    %c1_13 = arith.constant 1 : index
    %c0_14 = arith.constant 0 : index
    %c0_15 = arith.constant 0 : index
    %14 = vector.load %arg1[%c1_13, %c0_14, %c0_15] : memref<2x128x96xbf16, #tpu.memory_space<vmem>>, vector<1x112x96xbf16>
    %15 = vector.shape_cast %14 : vector<1x112x96xbf16> to vector<112x96xbf16>
    %cst_16 = arith.constant dense<0.000000e+00> : vector<112x512xf32>
    %16 = tpu.matmul %15, %13, %cst_16 {dimension_numbers = #tpu.dot_dimension_numbers<[1], [0], [0], [1], [0, 0, 1, 1], [], []>} : vector<112x96xbf16>, vector<96x512xbf16>, vector<112x512xf32> -> vector<112x512xf32>
    %17 = arith.addf %7, %16 : vector<112x512xf32>
    %c0_17 = arith.constant 0 : index
    %c8 = arith.constant 8 : index
    %c0_18 = arith.constant 0 : index
    %18 = vector.load %arg1[%c0_17, %c8, %c0_18] : memref<2x128x96xbf16, #tpu.memory_space<vmem>>, vector<1x112x96xbf16>
    %19 = vector.shape_cast %18 : vector<1x112x96xbf16> to vector<112x96xbf16>
    %cst_19 = arith.constant dense<0.000000e+00> : vector<112x512xf32>
    %20 = tpu.matmul %19, %13, %cst_19 {dimension_numbers = #tpu.dot_dimension_numbers<[1], [0], [0], [1], [0, 0, 1, 1], [], []>} : vector<112x96xbf16>, vector<96x512xbf16>, vector<112x512xf32> -> vector<112x512xf32>
    %21 = arith.addf %11, %20 : vector<112x512xf32>
    %c2 = arith.constant 2 : index
    %c0_20 = arith.constant 0 : index
    %c0_21 = arith.constant 0 : index
    %22 = vector.load %arg2[%c2, %c0_20, %c0_21] : memref<5x96x512xbf16, #tpu.memory_space<vmem>>, vector<1x96x512xbf16>
    %23 = vector.shape_cast %22 : vector<1x96x512xbf16> to vector<96x512xbf16>
    %c0_22 = arith.constant 0 : index
    %c8_23 = arith.constant 8 : index
    %c0_24 = arith.constant 0 : index
    %24 = vector.load %arg1[%c0_22, %c8_23, %c0_24] : memref<2x128x96xbf16, #tpu.memory_space<vmem>>, vector<1x112x96xbf16>
    %25 = vector.shape_cast %24 : vector<1x112x96xbf16> to vector<112x96xbf16>
    %cst_25 = arith.constant dense<0.000000e+00> : vector<112x512xf32>
    %26 = tpu.matmul %25, %23, %cst_25 {dimension_numbers = #tpu.dot_dimension_numbers<[1], [0], [0], [1], [0, 0, 1, 1], [], []>} : vector<112x96xbf16>, vector<96x512xbf16>, vector<112x512xf32> -> vector<112x512xf32>
    %27 = arith.addf %17, %26 : vector<112x512xf32>
    %c1_26 = arith.constant 1 : index
    %c8_27 = arith.constant 8 : index
    %c0_28 = arith.constant 0 : index
    %28 = vector.load %arg1[%c1_26, %c8_27, %c0_28] : memref<2x128x96xbf16, #tpu.memory_space<vmem>>, vector<1x112x96xbf16>
    %29 = vector.shape_cast %28 : vector<1x112x96xbf16> to vector<112x96xbf16>
    %cst_29 = arith.constant dense<0.000000e+00> : vector<112x512xf32>
    %30 = tpu.matmul %29, %23, %cst_29 {dimension_numbers = #tpu.dot_dimension_numbers<[1], [0], [0], [1], [0, 0, 1, 1], [], []>} : vector<112x96xbf16>, vector<96x512xbf16>, vector<112x512xf32> -> vector<112x512xf32>
    %31 = arith.addf %21, %30 : vector<112x512xf32>
    %c3 = arith.constant 3 : index
    %c0_30 = arith.constant 0 : index
    %c0_31 = arith.constant 0 : index
    %32 = vector.load %arg2[%c3, %c0_30, %c0_31] : memref<5x96x512xbf16, #tpu.memory_space<vmem>>, vector<1x96x512xbf16>
    %33 = vector.shape_cast %32 : vector<1x96x512xbf16> to vector<96x512xbf16>
    %c1_32 = arith.constant 1 : index
    %c8_33 = arith.constant 8 : index
    %c0_34 = arith.constant 0 : index
    %34 = vector.load %arg1[%c1_32, %c8_33, %c0_34] : memref<2x128x96xbf16, #tpu.memory_space<vmem>>, vector<1x112x96xbf16>
    %35 = vector.shape_cast %34 : vector<1x112x96xbf16> to vector<112x96xbf16>
    %cst_35 = arith.constant dense<0.000000e+00> : vector<112x512xf32>
    %36 = tpu.matmul %35, %33, %cst_35 {dimension_numbers = #tpu.dot_dimension_numbers<[1], [0], [0], [1], [0, 0, 1, 1], [], []>} : vector<112x96xbf16>, vector<96x512xbf16>, vector<112x512xf32> -> vector<112x512xf32>
    %37 = arith.addf %27, %36 : vector<112x512xf32>
    %c0_36 = arith.constant 0 : index
    %c16 = arith.constant 16 : index
    %c0_37 = arith.constant 0 : index
    %38 = vector.load %arg1[%c0_36, %c16, %c0_37] : memref<2x128x96xbf16, #tpu.memory_space<vmem>>, vector<1x112x96xbf16>
    %39 = vector.shape_cast %38 : vector<1x112x96xbf16> to vector<112x96xbf16>
    %cst_38 = arith.constant dense<0.000000e+00> : vector<112x512xf32>
    %40 = tpu.matmul %39, %33, %cst_38 {dimension_numbers = #tpu.dot_dimension_numbers<[1], [0], [0], [1], [0, 0, 1, 1], [], []>} : vector<112x96xbf16>, vector<96x512xbf16>, vector<112x512xf32> -> vector<112x512xf32>
    %41 = arith.addf %31, %40 : vector<112x512xf32>
    %c4 = arith.constant 4 : index
    %c0_39 = arith.constant 0 : index
    %c0_40 = arith.constant 0 : index
    %42 = vector.load %arg2[%c4, %c0_39, %c0_40] : memref<5x96x512xbf16, #tpu.memory_space<vmem>>, vector<1x96x512xbf16>
    %43 = vector.shape_cast %42 : vector<1x96x512xbf16> to vector<96x512xbf16>
    %c0_41 = arith.constant 0 : index
    %c16_42 = arith.constant 16 : index
    %c0_43 = arith.constant 0 : index
    %44 = vector.load %arg1[%c0_41, %c16_42, %c0_43] : memref<2x128x96xbf16, #tpu.memory_space<vmem>>, vector<1x112x96xbf16>
    %45 = vector.shape_cast %44 : vector<1x112x96xbf16> to vector<112x96xbf16>
    %cst_44 = arith.constant dense<0.000000e+00> : vector<112x512xf32>
    %46 = tpu.matmul %45, %43, %cst_44 {dimension_numbers = #tpu.dot_dimension_numbers<[1], [0], [0], [1], [0, 0, 1, 1], [], []>} : vector<112x96xbf16>, vector<96x512xbf16>, vector<112x512xf32> -> vector<112x512xf32>
    %47 = arith.addf %37, %46 : vector<112x512xf32>
    %c1_45 = arith.constant 1 : index
    %c16_46 = arith.constant 16 : index
    %c0_47 = arith.constant 0 : index
    %48 = vector.load %arg1[%c1_45, %c16_46, %c0_47] : memref<2x128x96xbf16, #tpu.memory_space<vmem>>, vector<1x112x96xbf16>
    %49 = vector.shape_cast %48 : vector<1x112x96xbf16> to vector<112x96xbf16>
    %cst_48 = arith.constant dense<0.000000e+00> : vector<112x512xf32>
    %50 = tpu.matmul %49, %43, %cst_48 {dimension_numbers = #tpu.dot_dimension_numbers<[1], [0], [0], [1], [0, 0, 1, 1], [], []>} : vector<112x96xbf16>, vector<96x512xbf16>, vector<112x512xf32> -> vector<112x512xf32>
    %51 = arith.addf %41, %50 : vector<112x512xf32>
    %52 = arith.maximumf %47, %51 : vector<112x512xf32>
    %53 = vector.extract_strided_slice %52 {offsets = [0, 0], sizes = [112, 256], strides = [1, 1]} : vector<112x512xf32> to vector<112x256xf32>
    %54 = vector.extract_strided_slice %52 {offsets = [0, 256], sizes = [112, 256], strides = [1, 1]} : vector<112x512xf32> to vector<112x256xf32>
    %55 = arith.maximumf %53, %54 : vector<112x256xf32>
    %c0_49 = arith.constant 0 : index
    %c0_50 = arith.constant 0 : index
    %56 = vector.load %arg3[%c0_49, %c0_50] : memref<1x256xf32, #tpu.memory_space<vmem>>, vector<1x256xf32>
    %57 = vector.broadcast %56 : vector<1x256xf32> to vector<112x256xf32>
    %58 = arith.addf %55, %57 : vector<112x256xf32>
    %cst_51 = arith.constant 0.000000e+00 : f32
    %59 = vector.broadcast %cst_51 : f32 to vector<112x256xf32>
    %60 = arith.maximumf %58, %59 : vector<112x256xf32>
    %61 = arith.truncf %60 : vector<112x256xf32> to vector<112x256xbf16>
    %c0_52 = arith.constant 0 : index
    %c0_53 = arith.constant 0 : index
    %62 = vector.load %arg5[%c0_52, %c0_53] : memref<1x128xf32, #tpu.memory_space<vmem>>, vector<1x128xf32>
    %63 = vector.extract_strided_slice %61 {offsets = [0, 0], sizes = [8, 256], strides = [1, 1]} : vector<112x256xbf16> to vector<8x256xbf16>
    %c0_54 = arith.constant 0 : index
    %c0_55 = arith.constant 0 : index
    %c0_56 = arith.constant 0 : index
    %64 = vector.load %arg4[%c0_54, %c0_55, %c0_56] : memref<14x256x128xbf16, #tpu.memory_space<vmem>>, vector<1x256x128xbf16>
    %65 = vector.shape_cast %64 : vector<1x256x128xbf16> to vector<256x128xbf16>
    %cst_57 = arith.constant dense<0.000000e+00> : vector<8x128xf32>
    %66 = tpu.matmul %63, %65, %cst_57 {dimension_numbers = #tpu.dot_dimension_numbers<[1], [0], [0], [1], [0, 0, 1, 1], [], []>} : vector<8x256xbf16>, vector<256x128xbf16>, vector<8x128xf32> -> vector<8x128xf32>
    %67 = vector.broadcast %62 : vector<1x128xf32> to vector<8x128xf32>
    %68 = arith.addf %67, %66 : vector<8x128xf32>
    %69 = vector.extract_strided_slice %61 {offsets = [8, 0], sizes = [8, 256], strides = [1, 1]} : vector<112x256xbf16> to vector<8x256xbf16>
    %c1_58 = arith.constant 1 : index
    %c0_59 = arith.constant 0 : index
    %c0_60 = arith.constant 0 : index
    %70 = vector.load %arg4[%c1_58, %c0_59, %c0_60] : memref<14x256x128xbf16, #tpu.memory_space<vmem>>, vector<1x256x128xbf16>
    %71 = vector.shape_cast %70 : vector<1x256x128xbf16> to vector<256x128xbf16>
    %cst_61 = arith.constant dense<0.000000e+00> : vector<8x128xf32>
    %72 = tpu.matmul %69, %71, %cst_61 {dimension_numbers = #tpu.dot_dimension_numbers<[1], [0], [0], [1], [0, 0, 1, 1], [], []>} : vector<8x256xbf16>, vector<256x128xbf16>, vector<8x128xf32> -> vector<8x128xf32>
    %73 = arith.addf %68, %72 : vector<8x128xf32>
    %74 = vector.extract_strided_slice %61 {offsets = [16, 0], sizes = [8, 256], strides = [1, 1]} : vector<112x256xbf16> to vector<8x256xbf16>
    %c2_62 = arith.constant 2 : index
    %c0_63 = arith.constant 0 : index
    %c0_64 = arith.constant 0 : index
    %75 = vector.load %arg4[%c2_62, %c0_63, %c0_64] : memref<14x256x128xbf16, #tpu.memory_space<vmem>>, vector<1x256x128xbf16>
    %76 = vector.shape_cast %75 : vector<1x256x128xbf16> to vector<256x128xbf16>
    %cst_65 = arith.constant dense<0.000000e+00> : vector<8x128xf32>
    %77 = tpu.matmul %74, %76, %cst_65 {dimension_numbers = #tpu.dot_dimension_numbers<[1], [0], [0], [1], [0, 0, 1, 1], [], []>} : vector<8x256xbf16>, vector<256x128xbf16>, vector<8x128xf32> -> vector<8x128xf32>
    %78 = arith.addf %73, %77 : vector<8x128xf32>
    %79 = vector.extract_strided_slice %61 {offsets = [24, 0], sizes = [8, 256], strides = [1, 1]} : vector<112x256xbf16> to vector<8x256xbf16>
    %c3_66 = arith.constant 3 : index
    %c0_67 = arith.constant 0 : index
    %c0_68 = arith.constant 0 : index
    %80 = vector.load %arg4[%c3_66, %c0_67, %c0_68] : memref<14x256x128xbf16, #tpu.memory_space<vmem>>, vector<1x256x128xbf16>
    %81 = vector.shape_cast %80 : vector<1x256x128xbf16> to vector<256x128xbf16>
    %cst_69 = arith.constant dense<0.000000e+00> : vector<8x128xf32>
    %82 = tpu.matmul %79, %81, %cst_69 {dimension_numbers = #tpu.dot_dimension_numbers<[1], [0], [0], [1], [0, 0, 1, 1], [], []>} : vector<8x256xbf16>, vector<256x128xbf16>, vector<8x128xf32> -> vector<8x128xf32>
    %83 = arith.addf %78, %82 : vector<8x128xf32>
    %84 = vector.extract_strided_slice %61 {offsets = [32, 0], sizes = [8, 256], strides = [1, 1]} : vector<112x256xbf16> to vector<8x256xbf16>
    %c4_70 = arith.constant 4 : index
    %c0_71 = arith.constant 0 : index
    %c0_72 = arith.constant 0 : index
    %85 = vector.load %arg4[%c4_70, %c0_71, %c0_72] : memref<14x256x128xbf16, #tpu.memory_space<vmem>>, vector<1x256x128xbf16>
    %86 = vector.shape_cast %85 : vector<1x256x128xbf16> to vector<256x128xbf16>
    %cst_73 = arith.constant dense<0.000000e+00> : vector<8x128xf32>
    %87 = tpu.matmul %84, %86, %cst_73 {dimension_numbers = #tpu.dot_dimension_numbers<[1], [0], [0], [1], [0, 0, 1, 1], [], []>} : vector<8x256xbf16>, vector<256x128xbf16>, vector<8x128xf32> -> vector<8x128xf32>
    %88 = arith.addf %83, %87 : vector<8x128xf32>
    %89 = vector.extract_strided_slice %61 {offsets = [40, 0], sizes = [8, 256], strides = [1, 1]} : vector<112x256xbf16> to vector<8x256xbf16>
    %c5 = arith.constant 5 : index
    %c0_74 = arith.constant 0 : index
    %c0_75 = arith.constant 0 : index
    %90 = vector.load %arg4[%c5, %c0_74, %c0_75] : memref<14x256x128xbf16, #tpu.memory_space<vmem>>, vector<1x256x128xbf16>
    %91 = vector.shape_cast %90 : vector<1x256x128xbf16> to vector<256x128xbf16>
    %cst_76 = arith.constant dense<0.000000e+00> : vector<8x128xf32>
    %92 = tpu.matmul %89, %91, %cst_76 {dimension_numbers = #tpu.dot_dimension_numbers<[1], [0], [0], [1], [0, 0, 1, 1], [], []>} : vector<8x256xbf16>, vector<256x128xbf16>, vector<8x128xf32> -> vector<8x128xf32>
    %93 = arith.addf %88, %92 : vector<8x128xf32>
    %94 = vector.extract_strided_slice %61 {offsets = [48, 0], sizes = [8, 256], strides = [1, 1]} : vector<112x256xbf16> to vector<8x256xbf16>
    %c6 = arith.constant 6 : index
    %c0_77 = arith.constant 0 : index
    %c0_78 = arith.constant 0 : index
    %95 = vector.load %arg4[%c6, %c0_77, %c0_78] : memref<14x256x128xbf16, #tpu.memory_space<vmem>>, vector<1x256x128xbf16>
    %96 = vector.shape_cast %95 : vector<1x256x128xbf16> to vector<256x128xbf16>
    %cst_79 = arith.constant dense<0.000000e+00> : vector<8x128xf32>
    %97 = tpu.matmul %94, %96, %cst_79 {dimension_numbers = #tpu.dot_dimension_numbers<[1], [0], [0], [1], [0, 0, 1, 1], [], []>} : vector<8x256xbf16>, vector<256x128xbf16>, vector<8x128xf32> -> vector<8x128xf32>
    %98 = arith.addf %93, %97 : vector<8x128xf32>
    %99 = vector.extract_strided_slice %61 {offsets = [56, 0], sizes = [8, 256], strides = [1, 1]} : vector<112x256xbf16> to vector<8x256xbf16>
    %c7 = arith.constant 7 : index
    %c0_80 = arith.constant 0 : index
    %c0_81 = arith.constant 0 : index
    %100 = vector.load %arg4[%c7, %c0_80, %c0_81] : memref<14x256x128xbf16, #tpu.memory_space<vmem>>, vector<1x256x128xbf16>
    %101 = vector.shape_cast %100 : vector<1x256x128xbf16> to vector<256x128xbf16>
    %cst_82 = arith.constant dense<0.000000e+00> : vector<8x128xf32>
    %102 = tpu.matmul %99, %101, %cst_82 {dimension_numbers = #tpu.dot_dimension_numbers<[1], [0], [0], [1], [0, 0, 1, 1], [], []>} : vector<8x256xbf16>, vector<256x128xbf16>, vector<8x128xf32> -> vector<8x128xf32>
    %103 = arith.addf %98, %102 : vector<8x128xf32>
    %104 = vector.extract_strided_slice %61 {offsets = [64, 0], sizes = [8, 256], strides = [1, 1]} : vector<112x256xbf16> to vector<8x256xbf16>
    %c8_83 = arith.constant 8 : index
    %c0_84 = arith.constant 0 : index
    %c0_85 = arith.constant 0 : index
    %105 = vector.load %arg4[%c8_83, %c0_84, %c0_85] : memref<14x256x128xbf16, #tpu.memory_space<vmem>>, vector<1x256x128xbf16>
    %106 = vector.shape_cast %105 : vector<1x256x128xbf16> to vector<256x128xbf16>
    %cst_86 = arith.constant dense<0.000000e+00> : vector<8x128xf32>
    %107 = tpu.matmul %104, %106, %cst_86 {dimension_numbers = #tpu.dot_dimension_numbers<[1], [0], [0], [1], [0, 0, 1, 1], [], []>} : vector<8x256xbf16>, vector<256x128xbf16>, vector<8x128xf32> -> vector<8x128xf32>
    %108 = arith.addf %103, %107 : vector<8x128xf32>
    %109 = vector.extract_strided_slice %61 {offsets = [72, 0], sizes = [8, 256], strides = [1, 1]} : vector<112x256xbf16> to vector<8x256xbf16>
    %c9 = arith.constant 9 : index
    %c0_87 = arith.constant 0 : index
    %c0_88 = arith.constant 0 : index
    %110 = vector.load %arg4[%c9, %c0_87, %c0_88] : memref<14x256x128xbf16, #tpu.memory_space<vmem>>, vector<1x256x128xbf16>
    %111 = vector.shape_cast %110 : vector<1x256x128xbf16> to vector<256x128xbf16>
    %cst_89 = arith.constant dense<0.000000e+00> : vector<8x128xf32>
    %112 = tpu.matmul %109, %111, %cst_89 {dimension_numbers = #tpu.dot_dimension_numbers<[1], [0], [0], [1], [0, 0, 1, 1], [], []>} : vector<8x256xbf16>, vector<256x128xbf16>, vector<8x128xf32> -> vector<8x128xf32>
    %113 = arith.addf %108, %112 : vector<8x128xf32>
    %114 = vector.extract_strided_slice %61 {offsets = [80, 0], sizes = [8, 256], strides = [1, 1]} : vector<112x256xbf16> to vector<8x256xbf16>
    %c10 = arith.constant 10 : index
    %c0_90 = arith.constant 0 : index
    %c0_91 = arith.constant 0 : index
    %115 = vector.load %arg4[%c10, %c0_90, %c0_91] : memref<14x256x128xbf16, #tpu.memory_space<vmem>>, vector<1x256x128xbf16>
    %116 = vector.shape_cast %115 : vector<1x256x128xbf16> to vector<256x128xbf16>
    %cst_92 = arith.constant dense<0.000000e+00> : vector<8x128xf32>
    %117 = tpu.matmul %114, %116, %cst_92 {dimension_numbers = #tpu.dot_dimension_numbers<[1], [0], [0], [1], [0, 0, 1, 1], [], []>} : vector<8x256xbf16>, vector<256x128xbf16>, vector<8x128xf32> -> vector<8x128xf32>
    %118 = arith.addf %113, %117 : vector<8x128xf32>
    %119 = vector.extract_strided_slice %61 {offsets = [88, 0], sizes = [8, 256], strides = [1, 1]} : vector<112x256xbf16> to vector<8x256xbf16>
    %c11 = arith.constant 11 : index
    %c0_93 = arith.constant 0 : index
    %c0_94 = arith.constant 0 : index
    %120 = vector.load %arg4[%c11, %c0_93, %c0_94] : memref<14x256x128xbf16, #tpu.memory_space<vmem>>, vector<1x256x128xbf16>
    %121 = vector.shape_cast %120 : vector<1x256x128xbf16> to vector<256x128xbf16>
    %cst_95 = arith.constant dense<0.000000e+00> : vector<8x128xf32>
    %122 = tpu.matmul %119, %121, %cst_95 {dimension_numbers = #tpu.dot_dimension_numbers<[1], [0], [0], [1], [0, 0, 1, 1], [], []>} : vector<8x256xbf16>, vector<256x128xbf16>, vector<8x128xf32> -> vector<8x128xf32>
    %123 = arith.addf %118, %122 : vector<8x128xf32>
    %124 = vector.extract_strided_slice %61 {offsets = [96, 0], sizes = [8, 256], strides = [1, 1]} : vector<112x256xbf16> to vector<8x256xbf16>
    %c12 = arith.constant 12 : index
    %c0_96 = arith.constant 0 : index
    %c0_97 = arith.constant 0 : index
    %125 = vector.load %arg4[%c12, %c0_96, %c0_97] : memref<14x256x128xbf16, #tpu.memory_space<vmem>>, vector<1x256x128xbf16>
    %126 = vector.shape_cast %125 : vector<1x256x128xbf16> to vector<256x128xbf16>
    %cst_98 = arith.constant dense<0.000000e+00> : vector<8x128xf32>
    %127 = tpu.matmul %124, %126, %cst_98 {dimension_numbers = #tpu.dot_dimension_numbers<[1], [0], [0], [1], [0, 0, 1, 1], [], []>} : vector<8x256xbf16>, vector<256x128xbf16>, vector<8x128xf32> -> vector<8x128xf32>
    %128 = arith.addf %123, %127 : vector<8x128xf32>
    %129 = vector.extract_strided_slice %61 {offsets = [104, 0], sizes = [8, 256], strides = [1, 1]} : vector<112x256xbf16> to vector<8x256xbf16>
    %c13 = arith.constant 13 : index
    %c0_99 = arith.constant 0 : index
    %c0_100 = arith.constant 0 : index
    %130 = vector.load %arg4[%c13, %c0_99, %c0_100] : memref<14x256x128xbf16, #tpu.memory_space<vmem>>, vector<1x256x128xbf16>
    %131 = vector.shape_cast %130 : vector<1x256x128xbf16> to vector<256x128xbf16>
    %cst_101 = arith.constant dense<0.000000e+00> : vector<8x128xf32>
    %132 = tpu.matmul %129, %131, %cst_101 {dimension_numbers = #tpu.dot_dimension_numbers<[1], [0], [0], [1], [0, 0, 1, 1], [], []>} : vector<8x256xbf16>, vector<256x128xbf16>, vector<8x128xf32> -> vector<8x128xf32>
    %133 = arith.addf %128, %132 : vector<8x128xf32>
    %c0_102 = arith.constant 0 : index
    %c0_103 = arith.constant 0 : index
    %134 = vector.load %arg6[%c0_102, %c0_103] : memref<8x128xf32, #tpu.memory_space<vmem>>, vector<8x128xf32>
    tpu.vector_store %arg6[%c0_102, %c0_103], %133 {strides = array<i32>} : memref<8x128xf32, #tpu.memory_space<vmem>>, vector<8x128xf32>,
    return
  }
  func.func @transform_0(%arg0: i32) -> (i32, i32, i32) {
    %c0_i32 = arith.constant 0 : i32
    %c0_i32_0 = arith.constant 0 : i32
    %c0_i32_1 = arith.constant 0 : i32
    return %c0_i32, %arg0, %c0_i32_0 : i32, i32, i32
  }
  func.func @transform_1(%arg0: i32) -> (i32, i32, i32) {
    %c0_i32 = arith.constant 0 : i32
    %c0_i32_0 = arith.constant 0 : i32
    %c0_i32_1 = arith.constant 0 : i32
    %c0_i32_2 = arith.constant 0 : i32
    return %c0_i32, %c0_i32_0, %c0_i32_1 : i32, i32, i32
  }
  func.func @transform_2(%arg0: i32) -> (i32, i32) {
    %c0_i32 = arith.constant 0 : i32
    %c0_i32_0 = arith.constant 0 : i32
    %c0_i32_1 = arith.constant 0 : i32
    return %c0_i32, %c0_i32_0 : i32, i32
  }
  func.func @transform_3(%arg0: i32) -> (i32, i32, i32) {
    %c0_i32 = arith.constant 0 : i32
    %c0_i32_0 = arith.constant 0 : i32
    %c0_i32_1 = arith.constant 0 : i32
    %c0_i32_2 = arith.constant 0 : i32
    return %c0_i32, %c0_i32_0, %c0_i32_1 : i32, i32, i32
  }
  func.func @transform_4(%arg0: i32) -> (i32, i32) {
    %c0_i32 = arith.constant 0 : i32
    %c0_i32_0 = arith.constant 0 : i32
    %c0_i32_1 = arith.constant 0 : i32
    return %c0_i32, %c0_i32_0 : i32, i32
  }
  func.func @transform_5(%arg0: i32) -> (i32, i32) {
    %c0_i32 = arith.constant 0 : i32
    %c0_i32_0 = arith.constant 0 : i32
    return %arg0, %c0_i32 : i32, i32
  }
}

</mosaic_0001>

<bundles_post_ra>
// kernel: net4_forward.1
= control target key start
LH: loop header
LB: loop body
LE: loop exit
PB: predicated region body
PF: predicated region fallthrough
CT: control target
= control target key end

     0   :  { %vm254_vm0 = vcmask 785408   ;;  %s12631_s1 = inlined_call_operand.vmem [shape: bf16[5,96,512], index: 1, kind: input, shape index: {}]   ;;  %s12632_s0 = inlined_call_operand.vmem [shape: bf16[2,128,96], index: 0, kind: input, shape index: {}]   ;;  %s12633_s3 = inlined_call_operand.vmem [shape: bf16[14,256,128], index: 3, kind: input, shape index: {}]   ;;  %s12634_s2 = inlined_call_operand.vmem [shape: f32[1,256], index: 2, kind: input, shape index: {}]   ;;  %s12635_s4 = inlined_call_operand.vmem [shape: f32[1,128], index: 4, kind: input, shape index: {}]   ;;  %s12636_s5 = inlined_call_operand.vmem [shape: f32[8,128], index: 5, kind: output, shape index: {}]  }
   0x1   :  { %v5861_v0 = vld [vmem:[%s12631_s1 + $0x160] sm:$0xf]  ;;  %v8151_v1 = vld [vmem:[%s12631_s1 + $0x16c] sm:$0xf0]  ;;  %v8149_v2 = vld [vmem:[%s12631_s1 + $0x164] sm:$0xf] }
   0x2   :  { %v8517_v3 = vor.u32 %v8151_v1, %v5861_v0  ;;  %v5863_v4 = vld [vmem:[%s12631_s1 + $0x170] sm:$0xf0]  ;;  %v5869_v5 = vld [vmem:[%s12631_s1 + $0x168] sm:$0xf]  ;;  %v8152_v6 = vld [vmem:[%s12631_s1 + $0x174] sm:$0xf0] }
   0x3   :  { %v8528_v7 = vor.u32 %v8149_v2, %v5863_v4  ;;  %v8530_v8 = vor.u32 %v8152_v6, %v5869_v5  ;;  %v8150_v9 = vld [vmem:[%s12631_s1 + $0x16c] sm:$0xf]  ;;  %v5871_v10 = vld [vmem:[%s12631_s1 + $0x178] sm:$0xf0]  ;;  %v5845_v11 = vld [vmem:[%s12631_s1 + $0x140] sm:$0xf] }
   0x4   :  { %278 = vmatpush.bf16.msra.mxu0 %v8517_v3  ;;  %v8542_v12 = vor.u32 %v8150_v9, %v5871_v10  ;;  %v8147_v13 = vld [vmem:[%s12631_s1 + $0x14c] sm:$0xf0]  ;;  %v8145_v14 = vld [vmem:[%s12631_s1 + $0x144] sm:$0xf]  ;;  %v5847_v15 = vld [vmem:[%s12631_s1 + $0x150] sm:$0xf0] }
   0x5   :  { %322 = vmatpush.bf16.msra.mxu1 %v8528_v7  ;;  %366 = vmatpush.bf16.msra.mxu2 %v8530_v8  ;;  %v8555_v16 = vor.u32 %v8147_v13, %v5845_v11  ;;  %v8557_v17 = vor.u32 %v8145_v14, %v5847_v15  ;;  %v5853_v18 = vld [vmem:[%s12631_s1 + $0x148] sm:$0xf]  ;;  %v8148_v19 = vld [vmem:[%s12631_s1 + $0x154] sm:$0xf0]  ;;  %v8146_v20 = vld [vmem:[%s12631_s1 + $0x14c] sm:$0xf] }
   0x6   :  { %410 = vmatpush.bf16.msra.mxu3 %v8542_v12  ;;  %v8569_v21 = vor.u32 %v8148_v19, %v5853_v18  ;;  %v5855_v22 = vld [vmem:[%s12631_s1 + $0x158] sm:$0xf0]  ;;  %v5829_v23 = vld [vmem:[%s12631_s1 + $0x120] sm:$0xf]  ;;  %v8143_v24 = vld [vmem:[%s12631_s1 + $0x12c] sm:$0xf0] }
   0x7   :  { %v8580_v25 = vor.u32 %v8146_v20, %v5855_v22  ;;  %v8141_v26 = vld [vmem:[%s12631_s1 + $0x124] sm:$0xf]  ;;  %v5831_v27 = vld [vmem:[%s12631_s1 + $0x130] sm:$0xf0]  ;;  %v5837_v28 = vld [vmem:[%s12631_s1 + $0x128] sm:$0xf]  ;;  %v8592_v29 = vor.u32 %v8143_v24, %v5829_v23 }
   0x8   :  { %279 = vmatpush.bf16.msra.mxu0 %v8555_v16  ;;  %v8144_v30 = vld [vmem:[%s12631_s1 + $0x134] sm:$0xf0]  ;;  %v8142_v31 = vld [vmem:[%s12631_s1 + $0x12c] sm:$0xf]  ;;  %v5839_v32 = vld [vmem:[%s12631_s1 + $0x138] sm:$0xf0]  ;;  %v8605_v33 = vor.u32 %v8141_v26, %v5831_v27 }
   0x9   :  { %323 = vmatpush.bf16.msra.mxu1 %v8557_v17  ;;  %367 = vmatpush.bf16.msra.mxu2 %v8569_v21  ;;  %v8607_v34 = vor.u32 %v8144_v30, %v5837_v28  ;;  %v5813_v35 = vld [vmem:[%s12631_s1 + $0x100] sm:$0xf]  ;;  %v8139_v36 = vld [vmem:[%s12631_s1 + $0x10c] sm:$0xf0]  ;;  %v8137_v37 = vld [vmem:[%s12631_s1 + $0x104] sm:$0xf]  ;;  %v8619_v38 = vor.u32 %v8142_v31, %v5839_v32 }
   0xa   :  { %411 = vmatpush.bf16.msra.mxu3 %v8580_v25  ;;  %v5815_v39 = vld [vmem:[%s12631_s1 + $0x110] sm:$0xf0]  ;;  %v5821_v40 = vld [vmem:[%s12631_s1 + $0x108] sm:$0xf]  ;;  %v8140_v41 = vld [vmem:[%s12631_s1 + $0x114] sm:$0xf0]  ;;  %v8637_v44 = vor.u32 %v8139_v36, %v5813_v35 }
   0xb   :  { %v8138_v42 = vld [vmem:[%s12631_s1 + $0x10c] sm:$0xf]  ;;  %v5823_v43 = vld [vmem:[%s12631_s1 + $0x118] sm:$0xf0]  ;;  %v8641_v45 = vor.u32 %v8137_v37, %v5815_v39  ;;  %v8643_v46 = vor.u32 %v8140_v41, %v5821_v40  ;;  %v5797_v47 = vld [vmem:[%s12631_s1 + $0xe0] sm:$0xf] }
   0xc   :  { %280 = vmatpush.bf16.msra.mxu0 %v8592_v29  ;;  %v8135_v48 = vld [vmem:[%s12631_s1 + $0xec] sm:$0xf0]  ;;  %v8133_v49 = vld [vmem:[%s12631_s1 + $0xe4] sm:$0xf]  ;;  %v8655_v50 = vor.u32 %v8138_v42, %v5823_v43  ;;  %v5799_v51 = vld [vmem:[%s12631_s1 + $0xf0] sm:$0xf0] }
   0xd   :  { %324 = vmatpush.bf16.msra.mxu1 %v8605_v33  ;;  %368 = vmatpush.bf16.msra.mxu2 %v8607_v34  ;;  %v5805_v52 = vld [vmem:[%s12631_s1 + $0xe8] sm:$0xf]  ;;  %v8136_v53 = vld [vmem:[%s12631_s1 + $0xf4] sm:$0xf0]  ;;  %v8134_v54 = vld [vmem:[%s12631_s1 + $0xec] sm:$0xf]  ;;  %v8673_v56 = vor.u32 %v8135_v48, %v5797_v47  ;;  %v8677_v57 = vor.u32 %v8133_v49, %v5799_v51 }
   0xe   :  { %412 = vmatpush.bf16.msra.mxu3 %v8619_v38  ;;  %v5807_v55 = vld [vmem:[%s12631_s1 + $0xf8] sm:$0xf0]  ;;  %v8679_v58 = vor.u32 %v8136_v53, %v5805_v52  ;;  %v5781_v59 = vld [vmem:[%s12631_s1 + $0xc0] sm:$0xf]  ;;  %v8131_v60 = vld [vmem:[%s12631_s1 + $0xcc] sm:$0xf0] }
   0xf   :  { %v8129_v61 = vld [vmem:[%s12631_s1 + $0xc4] sm:$0xf]  ;;  %v8691_v62 = vor.u32 %v8134_v54, %v5807_v55  ;;  %v5783_v63 = vld [vmem:[%s12631_s1 + $0xd0] sm:$0xf0]  ;;  %v5789_v0 = vld [vmem:[%s12631_s1 + $0xc8] sm:$0xf]  ;;  %v8709_v5 = vor.u32 %v8131_v60, %v5781_v59 }
  0x10   :  { %281 = vmatpush.bf16.msra.mxu0 %v8637_v44  ;;  %v8132_v1 = vld [vmem:[%s12631_s1 + $0xd4] sm:$0xf0]  ;;  %v8130_v2 = vld [vmem:[%s12631_s1 + $0xcc] sm:$0xf]  ;;  %v5791_v4 = vld [vmem:[%s12631_s1 + $0xd8] sm:$0xf0]  ;;  %v8713_v6 = vor.u32 %v8129_v61, %v5783_v63 }
  0x11   :  { %325 = vmatpush.bf16.msra.mxu1 %v8641_v45  ;;  %369 = vmatpush.bf16.msra.mxu2 %v8643_v46  ;;  %v8715_v9 = vor.u32 %v8132_v1, %v5789_v0  ;;  %v8718_v10 = vor.u32 %v8130_v2, %v5791_v4  ;;  %v8723_v11 = vld [vmem:[%s12632_s0 + $0x40] sm:$0xff]  ;;  %v8740_v13 = vld [vmem:[%s12632_s0 + $0x48] sm:$0xff]  ;;  %v8114_v15 = vld [vmem:[%s12631_s1 + $0xb4] sm:$0xf0] }
  0x12   :  { %413 = vmatpush.bf16.msra.mxu3 %v8655_v50  ;;  %v6021_v14 = vld [vmem:[%s12631_s1 + $0xa8] sm:$0xf]  ;;  %v8112_v18 = vld [vmem:[%s12631_s1 + $0xac] sm:$0xf]  ;;  %v6023_v20 = vld [vmem:[%s12631_s1 + $0xb8] sm:$0xf0] }
  0x13   :  { %v8759_v19 = vor.u32 %v8114_v15, %v6021_v14  ;;  %v6013_v22 = vld [vmem:[%s12631_s1 + $0xa0] sm:$0xf]  ;;  %v8113_v23 = vld [vmem:[%s12631_s1 + $0xac] sm:$0xf0]  ;;  %v8770_v24 = vor.u32 %v8112_v18, %v6023_v20  ;;  %v8111_v27 = vld [vmem:[%s12631_s1 + $0xa4] sm:$0xf] }
  0x14   :  { %282 = vmatpush.bf16.msra.mxu0 %v8673_v56  ;;  %v8772_v26 = vor.u32 %v8113_v23, %v6013_v22  ;;  %v6015_v28 = vld [vmem:[%s12631_s1 + $0xb0] sm:$0xf0]  ;;  %v6005_v32 = vld [vmem:[%s12631_s1 + $0x88] sm:$0xf]  ;;  %v8110_v35 = vld [vmem:[%s12631_s1 + $0x94] sm:$0xf0] }
  0x15   :  { %326 = vmatpush.bf16.msra.mxu1 %v8677_v57  ;;  %370 = vmatpush.bf16.msra.mxu2 %v8679_v58  ;;  %v8781_v30 = vor.u32 %v8111_v27, %v6015_v28  ;;  %v8789_v31 = vld [vmem:[%s12632_s0 + $0x50] sm:$0xff]  ;;  %v8108_v36 = vld [vmem:[%s12631_s1 + $0x8c] sm:$0xf]  ;;  %v8808_v37 = vor.u32 %v8110_v35, %v6005_v32  ;;  %v6007_v39 = vld [vmem:[%s12631_s1 + $0x98] sm:$0xf0] }
  0x16   :  { %414 = vmatpush.bf16.msra.mxu3 %v8691_v62  ;;  %v5997_v40 = vld [vmem:[%s12631_s1 + $0x80] sm:$0xf]  ;;  %v8109_v41 = vld [vmem:[%s12631_s1 + $0x8c] sm:$0xf0]  ;;  %v8819_v42 = vor.u32 %v8108_v36, %v6007_v39  ;;  %v8107_v47 = vld [vmem:[%s12631_s1 + $0x84] sm:$0xf] }
  0x17   :  { %v8821_v43 = vor.u32 %v8109_v41, %v5997_v40  ;;  %v5999_v48 = vld [vmem:[%s12631_s1 + $0x90] sm:$0xf0]  ;;  %v8838_v51 = vld [vmem:[%s12632_s0 + $0x58] sm:$0xff]  ;;  %v5989_v52 = vld [vmem:[%s12631_s1 + $0x68] sm:$0xf] }
  0x18   :  { %283 = vmatpush.bf16.msra.mxu0 %v8709_v5  ;;  %v8830_v49 = vor.u32 %v8107_v47, %v5999_v48  ;;  %v8106_v53 = vld [vmem:[%s12631_s1 + $0x74] sm:$0xf0]  ;;  %v8104_v54 = vld [vmem:[%s12631_s1 + $0x6c] sm:$0xf]  ;;  %v5991_v59 = vld [vmem:[%s12631_s1 + $0x78] sm:$0xf0] }
  0x19   :  { %327 = vmatpush.bf16.msra.mxu1 %v8713_v6  ;;  %371 = vmatpush.bf16.msra.mxu2 %v8715_v9  ;;  %v8857_v55 = vor.u32 %v8106_v53, %v5989_v52  ;;  %v5981_v60 = vld [vmem:[%s12631_s1 + $0x60] sm:$0xf]  ;;  %v8105_v61 = vld [vmem:[%s12631_s1 + $0x6c] sm:$0xf0]  ;;  %v8868_v63 = vor.u32 %v8104_v54, %v5991_v59  ;;  %v8103_v1 = vld [vmem:[%s12631_s1 + $0x64] sm:$0xf] }
  0x1a   :  { %415 = vmatpush.bf16.msra.mxu3 %v8718_v10  ;;  %v8870_v0 = vor.u32 %v8105_v61, %v5981_v60  ;;  %v5983_v2 = vld [vmem:[%s12631_s1 + $0x70] sm:$0xf0]  ;;  %v8887_v14 = vld [vmem:[%s12632_s0 + $0x60] sm:$0xff]  ;;  %v8101_v18 = vld [vmem:[%s12631_s1 + $0x4c] sm:$0xf0] }
  0x1b   :  { %5875 = vmatmul.msk.bf16.vlgmr.msra.gmra.mxu0 %vm254_vm0, %v8723_v11  ;;  %v8879_v4 = vor.u32 %v8103_v1, %v5983_v2  ;;  %v5965_v15 = vld [vmem:[%s12631_s1 + $0x40] sm:$0xf]  ;;  %v8099_v20 = vld [vmem:[%s12631_s1 + $0x44] sm:$0xf]  ;;  %v5967_v23 = vld [vmem:[%s12631_s1 + $0x50] sm:$0xf0] }
  0x1c   :  { %5882 = vmatmul.msk.bf16.vlgmr.msra.gmra.mxu1 %vm254_vm0, %v8723_v11  ;;  %5889 = vmatmul.msk.bf16.vlgmr.msra.gmra.mxu2 %vm254_vm0, %v8723_v11  ;;  %v8906_v22 = vor.u32 %v8101_v18, %v5965_v15  ;;  %v5973_v27 = vld [vmem:[%s12631_s1 + $0x48] sm:$0xf]  ;;  %v8102_v28 = vld [vmem:[%s12631_s1 + $0x54] sm:$0xf0]  ;;  %v8917_v32 = vor.u32 %v8099_v20, %v5967_v23  ;;  %v8100_v36 = vld [vmem:[%s12631_s1 + $0x4c] sm:$0xf] }
  0x1d   :  { %5896 = vmatmul.msk.bf16.vlgmr.msra.gmra.mxu3 %vm254_vm0, %v8723_v11  ;;  %718 = vmatpush.bf16.msrb.mxu2 %v8759_v19  ;;  %v8919_v35 = vor.u32 %v8102_v28, %v5973_v27  ;;  %v5975_v39 = vld [vmem:[%s12631_s1 + $0x58] sm:$0xf0]  ;;  %v5949_v40 = vld [vmem:[%s12631_s1 + $0x20] sm:$0xf]  ;;  %v8097_v47 = vld [vmem:[%s12631_s1 + $0x2c] sm:$0xf0] }
  0x1e   :  { %762 = vmatpush.bf16.msrb.mxu3 %v8770_v24  ;;  %630 = vmatpush.bf16.msrb.mxu0 %v8772_v26  ;;  %v8931_v41 = vor.u32 %v8100_v36, %v5975_v39  ;;  %v8095_v48 = vld [vmem:[%s12631_s1 + $0x24] sm:$0xf]  ;;  %v5951_v52 = vld [vmem:[%s12631_s1 + $0x30] sm:$0xf0]  ;;  %v8944_v53 = vor.u32 %v8097_v47, %v5949_v40  ;;  %v5957_v59 = vld [vmem:[%s12631_s1 + $0x28] sm:$0xf] }
  0x1f   :  { %674 = vmatpush.bf16.msrb.mxu1 %v8781_v30  ;;  %v8946_v54 = vor.u32 %v8095_v48, %v5951_v52  ;;  %v8098_v60 = vld [vmem:[%s12631_s1 + $0x34] sm:$0xf0]  ;;  %v8096_v61 = vld [vmem:[%s12631_s1 + $0x2c] sm:$0xf]  ;;  %v5959_v2 = vld [vmem:[%s12631_s1 + $0x38] sm:$0xf0] }
  0x20   :  { %v8958_v1 = vor.u32 %v8098_v60, %v5957_v59  ;;  %v5933_v15 = vld [vmem:[%s12631_s1] sm:$0xf]  ;;  %v8093_v18 = vld [vmem:[%s12631_s1 + $0xc] sm:$0xf0]  ;;  %v8969_v20 = vor.u32 %v8096_v61, %v5959_v2  ;;  %v8091_v23 = vld [vmem:[%s12631_s1 + $0x4] sm:$0xf] }
  0x21   :  { %719 = vmatpush.bf16.msrb.mxu2 %v8808_v37  ;;  %v5935_v27 = vld [vmem:[%s12631_s1 + $0x10] sm:$0xf0]  ;;  %v5941_v28 = vld [vmem:[%s12631_s1 + $0x8] sm:$0xf]  ;;  %v8981_v36 = vor.u32 %v8093_v18, %v5933_v15  ;;  %v8094_v39 = vld [vmem:[%s12631_s1 + $0x14] sm:$0xf0] }
  0x22   :  { %763 = vmatpush.bf16.msrb.mxu3 %v8819_v42  ;;  %631 = vmatpush.bf16.msrb.mxu0 %v8821_v43  ;;  %v8092_v40 = vld [vmem:[%s12631_s1 + $0xc] sm:$0xf]  ;;  %v5943_v47 = vld [vmem:[%s12631_s1 + $0x18] sm:$0xf0]  ;;  %v8994_v48 = vor.u32 %v8091_v23, %v5935_v27  ;;  %v8996_v52 = vor.u32 %v8094_v39, %v5941_v28  ;;  %v8121_v18 = vld [vmem:[%s12632_s0 + $0x30] sm:$0xff] }
  0x23   :  { %675 = vmatpush.bf16.msrb.mxu1 %v8830_v49  ;;  %v8999_v59 = vor.u32 %v8092_v40, %v5943_v47  ;;  %v9004_v60 = vld [vmem:[%s12632_s0 + $0x68] sm:$0xff] }
  0x25   :  { %720 = vmatpush.bf16.msrb.mxu2 %v8857_v55 }
  0x26   :  { %764 = vmatpush.bf16.msrb.mxu3 %v8868_v63  ;;  %632 = vmatpush.bf16.msrb.mxu0 %v8870_v0 }
  0x27   :  { %676 = vmatpush.bf16.msrb.mxu1 %v8879_v4 }
  0x29   :  { %721 = vmatpush.bf16.msrb.mxu2 %v8919_v35 }
  0x2a   :  { %633 = vmatpush.bf16.msrb.mxu0 %v8906_v22  ;;  %765 = vmatpush.bf16.msrb.mxu3 %v8931_v41 }
  0x2b   :  { %5876 = vmatmul.msk.bf16.gmra.mxu0 %vm254_vm0, %v8740_v13  ;;  %677 = vmatpush.bf16.msrb.mxu1 %v8917_v32 }
  0x2c   :  { %5883 = vmatmul.msk.bf16.gmra.mxu1 %vm254_vm0, %v8740_v13  ;;  %5890 = vmatmul.msk.bf16.gmra.mxu2 %vm254_vm0, %v8740_v13 }
  0x2d   :  { %5897 = vmatmul.msk.bf16.gmra.mxu3 %vm254_vm0, %v8740_v13  ;;  %722 = vmatpush.bf16.msrb.mxu2 %v8958_v1 }
  0x2e   :  { %634 = vmatpush.bf16.msrb.mxu0 %v8944_v53  ;;  %766 = vmatpush.bf16.msrb.mxu3 %v8969_v20 }
  0x2f   :  { %678 = vmatpush.bf16.msrb.mxu1 %v8946_v54 }
  0x31   :  { %723 = vmatpush.bf16.msrb.mxu2 %v8996_v52 }
  0x32   :  { %635 = vmatpush.bf16.msrb.mxu0 %v8981_v36  ;;  %767 = vmatpush.bf16.msrb.mxu3 %v8999_v59 }
  0x33   :  { %679 = vmatpush.bf16.msrb.mxu1 %v8994_v48 }
  0x35   :  { %964 = vmatpush.bf16.msra.mxu2 %v8530_v8  ;;  %v8116_v8 = vld [vmem:[%s12632_s0 + $0x8] sm:$0xff] }
  0x36   :  { %1008 = vmatpush.bf16.msra.mxu3 %v8542_v12  ;;  %876 = vmatpush.bf16.msra.mxu0 %v8517_v3  ;;  %v9034_v3 = vld [vmem:[%s12632_s0 + $0x70] sm:$0xff] }
  0x37   :  { %920 = vmatpush.bf16.msra.mxu1 %v8528_v7  ;;  %v8115_v7 = vld [vmem:[%s12632_s0] sm:$0xff] }
  0x39   :  { %965 = vmatpush.bf16.msra.mxu2 %v8569_v21 }
  0x3a   :  { %1009 = vmatpush.bf16.msra.mxu3 %v8580_v25  ;;  %877 = vmatpush.bf16.msra.mxu0 %v8555_v16 }
  0x3b   :  { %5877 = vmatmul.msk.bf16.gmra.mxu0 %vm254_vm0, %v8789_v31  ;;  %921 = vmatpush.bf16.msra.mxu1 %v8557_v17 }
  0x3c   :  { %5884 = vmatmul.msk.bf16.gmra.mxu1 %vm254_vm0, %v8789_v31  ;;  %5891 = vmatmul.msk.bf16.gmra.mxu2 %vm254_vm0, %v8789_v31 }
  0x3d   :  { %5898 = vmatmul.msk.bf16.gmra.mxu3 %vm254_vm0, %v8789_v31  ;;  %966 = vmatpush.bf16.msra.mxu2 %v8607_v34  ;;  %v8117_v34 = vld [vmem:[%s12632_s0 + $0x10] sm:$0xff] }
  0x3e   :  { %1010 = vmatpush.bf16.msra.mxu3 %v8619_v38  ;;  %878 = vmatpush.bf16.msra.mxu0 %v8592_v29 }
  0x3f   :  { %922 = vmatpush.bf16.msra.mxu1 %v8605_v33 }
  0x41   :  { %967 = vmatpush.bf16.msra.mxu2 %v8643_v46 }
  0x42   :  { %1011 = vmatpush.bf16.msra.mxu3 %v8655_v50  ;;  %879 = vmatpush.bf16.msra.mxu0 %v8637_v44 }
  0x43   :  { %923 = vmatpush.bf16.msra.mxu1 %v8641_v45 }
  0x45   :  { %968 = vmatpush.bf16.msra.mxu2 %v8679_v58 }
  0x46   :  { %1012 = vmatpush.bf16.msra.mxu3 %v8691_v62  ;;  %880 = vmatpush.bf16.msra.mxu0 %v8673_v56  ;;  %v8118_v62 = vld [vmem:[%s12632_s0 + $0x18] sm:$0xff] }
  0x47   :  { %924 = vmatpush.bf16.msra.mxu1 %v8677_v57 }
  0x49   :  { %969 = vmatpush.bf16.msra.mxu2 %v8715_v9 }
  0x4a   :  { %1013 = vmatpush.bf16.msra.mxu3 %v8718_v10  ;;  %881 = vmatpush.bf16.msra.mxu0 %v8709_v5 }
  0x4b   :  { %5878 = vmatmul.msk.bf16.gmra.mxu0 %vm254_vm0, %v8838_v51  ;;  %925 = vmatpush.bf16.msra.mxu1 %v8713_v6 }
  0x4c   :  { %5885 = vmatmul.msk.bf16.gmra.mxu1 %vm254_vm0, %v8838_v51  ;;  %5892 = vmatmul.msk.bf16.gmra.mxu2 %vm254_vm0, %v8838_v51 }
  0x4d   :  { %5899 = vmatmul.msk.bf16.gmra.mxu3 %vm254_vm0, %v8838_v51 }
  0x5b   :  { %5879 = vmatmul.msk.bf16.gmra.mxu0 %vm254_vm0, %v8887_v14 }
  0x5c   :  { %5886 = vmatmul.msk.bf16.gmra.mxu1 %vm254_vm0, %v8887_v14  ;;  %5893 = vmatmul.msk.bf16.gmra.mxu2 %vm254_vm0, %v8887_v14 }
  0x5d   :  { %5900 = vmatmul.msk.bf16.gmra.mxu3 %vm254_vm0, %v8887_v14 }
  0x6b   :  { %5880 = vmatmul.msk.bf16.gmra.mxu0 %vm254_vm0, %v9004_v60 }
  0x6c   :  { %5887 = vmatmul.msk.bf16.gmra.mxu1 %vm254_vm0, %v9004_v60  ;;  %5894 = vmatmul.msk.bf16.gmra.mxu2 %vm254_vm0, %v9004_v60 }
  0x6d   :  { %5901 = vmatmul.msk.bf16.gmra.mxu3 %vm254_vm0, %v9004_v60 }
  0x7b   :  { %5881 = vmatmul.msk.bf16.gmra.mxu0 %vm254_vm0, %v9034_v3 }
  0x7c   :  { %5888 = vmatmul.msk.bf16.gmra.mxu1 %vm254_vm0, %v9034_v3  ;;  %5895 = vmatmul.msk.bf16.gmra.mxu2 %vm254_vm0, %v9034_v3 }
  0x7d   :  { %5902 = vmatmul.msk.bf16.gmra.mxu3 %vm254_vm0, %v9034_v3 }
  0x8b   :  { %6027 = vmatmul.msk.bf16.vlgmr.msrb.gmra.mxu0 %vm254_vm0, %v8115_v7 }
  0x8c   :  { %6034 = vmatmul.msk.bf16.vlgmr.msrb.gmra.mxu1 %vm254_vm0, %v8115_v7  ;;  %6041 = vmatmul.msk.bf16.vlgmr.msrb.gmra.mxu2 %vm254_vm0, %v8115_v7 }
  0x8d   :  { %6048 = vmatmul.msk.bf16.vlgmr.msrb.gmra.mxu3 %vm254_vm0, %v8115_v7  ;;  %1140 = vmatpush.bf16.msrb.mxu2 %v8759_v19 }
  0x8e   :  { %1184 = vmatpush.bf16.msrb.mxu3 %v8770_v24  ;;  %1052 = vmatpush.bf16.msrb.mxu0 %v8772_v26 }
  0x8f   :  { %1096 = vmatpush.bf16.msrb.mxu1 %v8781_v30 }
  0x91   :  { %1141 = vmatpush.bf16.msrb.mxu2 %v8808_v37  ;;  %v8119_v37 = vld [vmem:[%s12632_s0 + $0x20] sm:$0xff] }
  0x92   :  { %1185 = vmatpush.bf16.msrb.mxu3 %v8819_v42  ;;  %1053 = vmatpush.bf16.msrb.mxu0 %v8821_v43 }
  0x93   :  { %1097 = vmatpush.bf16.msrb.mxu1 %v8830_v49 }
  0x95   :  { %1142 = vmatpush.bf16.msrb.mxu2 %v8857_v55 }
  0x96   :  { %1186 = vmatpush.bf16.msrb.mxu3 %v8868_v63  ;;  %1054 = vmatpush.bf16.msrb.mxu0 %v8870_v0 }
  0x97   :  { %1098 = vmatpush.bf16.msrb.mxu1 %v8879_v4 }
  0x98   :  { %v9077_v12 = vpop.f32.mrf.mxu0 }
  0x99   :  { %v9079_v16 = vpop.f32.mrf.mxu1  ;;  %1143 = vmatpush.bf16.msrb.mxu2 %v8919_v35 }
  0x9a   :  { %1055 = vmatpush.bf16.msrb.mxu0 %v8906_v22  ;;  %1187 = vmatpush.bf16.msrb.mxu3 %v8931_v41 }
  0x9b   :  { %6028 = vmatmul.msk.bf16.gmra.mxu0 %vm254_vm0, %v8116_v8  ;;  %1099 = vmatpush.bf16.msrb.mxu1 %v8917_v32  ;;  %v8120_v32 = vld [vmem:[%s12632_s0 + $0x28] sm:$0xff] }
  0x9c   :  { %6035 = vmatmul.msk.bf16.gmra.mxu1 %vm254_vm0, %v8116_v8  ;;  %6042 = vmatmul.msk.bf16.gmra.mxu2 %vm254_vm0, %v8116_v8 }
  0x9d   :  { %6049 = vmatmul.msk.bf16.gmra.mxu3 %vm254_vm0, %v8116_v8  ;;  %1144 = vmatpush.bf16.msrb.mxu2 %v8958_v1 }
  0x9e   :  { %1056 = vmatpush.bf16.msrb.mxu0 %v8944_v53  ;;  %1188 = vmatpush.bf16.msrb.mxu3 %v8969_v20 }
  0x9f   :  { %v9092_v17 = vpop.f32.mrf.mxu2  ;;  %1100 = vmatpush.bf16.msrb.mxu1 %v8946_v54 }
  0xa0   :  { %v9095_v21 = vpop.f32.mrf.mxu3  ;;  %v9097_v25 = vpop.f32.mrf.mxu0 }
  0xa1   :  { %v9099_v29 = vpop.f32.mrf.mxu1  ;;  %1145 = vmatpush.bf16.msrb.mxu2 %v8996_v52 }
  0xa2   :  { %1057 = vmatpush.bf16.msrb.mxu0 %v8981_v36  ;;  %1189 = vmatpush.bf16.msrb.mxu3 %v8999_v59 }
  0xa3   :  { %1101 = vmatpush.bf16.msrb.mxu1 %v8994_v48  ;;  %v9225_v48 = vld [vmem:[%s12632_s0 + $0x4] sm:$0xff] }
  0xa7   :  { %v9105_v33 = vpop.f32.mrf.mxu2 }
  0xa8   :  { %v9110_v38 = vpop.f32.mrf.mxu3  ;;  %v9112_v44 = vpop.f32.mrf.mxu0 }
  0xa9   :  { %v9114_v45 = vpop.f32.mrf.mxu1 }
  0xab   :  { %6029 = vmatmul.msk.bf16.gmra.mxu0 %vm254_vm0, %v8117_v34 }
  0xac   :  { %6036 = vmatmul.msk.bf16.gmra.mxu1 %vm254_vm0, %v8117_v34  ;;  %6043 = vmatmul.msk.bf16.gmra.mxu2 %vm254_vm0, %v8117_v34 }
  0xad   :  { %6050 = vmatmul.msk.bf16.gmra.mxu3 %vm254_vm0, %v8117_v34 }
  0xaf   :  { %v9120_v46 = vpop.f32.mrf.mxu2 }
  0xb0   :  { %v9122_v50 = vpop.f32.mrf.mxu3  ;;  %v9124_v56 = vpop.f32.mrf.mxu0 }
  0xb1   :  { %12647 = vst [vmem:[#allocation2_spill] sm:$0xff] %v9124_v56  ;;  %v9126_v57 = vpop.f32.mrf.mxu1 }
  0xb2   :  { %12648 = vst [vmem:[#allocation3_spill] sm:$0xff] %v9126_v57  ;;  %v8163_v57 = vld [vmem:[%s12631_s1 + $0x194] sm:$0xf0] }
  0xb7   :  { %v9128_v58 = vpop.f32.mrf.mxu2 }
  0xb8   :  { %12649 = vst [vmem:[#allocation4_spill] sm:$0xff] %v9128_v58  ;;  %v9133_v5 = vpop.f32.mrf.mxu3  ;;  %v9135_v6 = vpop.f32.mrf.mxu0  ;;  %v6167_v58 = vld [vmem:[%s12631_s1 + $0x190] sm:$0xf0] }
  0xb9   :  { %12650 = vst [vmem:[#allocation5_spill] sm:$0xff] %v9133_v5  ;;  %v9137_v9 = vpop.f32.mrf.mxu1  ;;  %v8165_v5 = vld [vmem:[%s12631_s1 + $0x1ac] sm:$0xf] }
  0xba   :  { %12651 = vst [vmem:[#allocation6_spill] sm:$0xff] %v9135_v6 }
  0xbb   :  { %12652 = vst [vmem:[#allocation7_spill] sm:$0xff] %v9137_v9  ;;  %6030 = vmatmul.msk.bf16.gmra.mxu0 %vm254_vm0, %v8118_v62  ;;  %v8171_v9 = vld [vmem:[%s12631_s1 + $0x1d4] sm:$0xf0] }
  0xbc   :  { %6037 = vmatmul.msk.bf16.gmra.mxu1 %vm254_vm0, %v8118_v62  ;;  %6044 = vmatmul.msk.bf16.gmra.mxu2 %vm254_vm0, %v8118_v62 }
  0xbd   :  { %6051 = vmatmul.msk.bf16.gmra.mxu3 %vm254_vm0, %v8118_v62 }
  0xbf   :  { %v9143_v10 = vpop.f32.mrf.mxu2 }
  0xc0   :  { %12653 = vst [vmem:[#allocation8_spill] sm:$0xff] %v9143_v10  ;;  %v9145_v19 = vpop.f32.mrf.mxu3  ;;  %v9147_v24 = vpop.f32.mrf.mxu0 }
  0xc1   :  { %12654 = vst [vmem:[#allocation9_spill] sm:$0xff] %v9145_v19  ;;  %v9149_v26 = vpop.f32.mrf.mxu1 }
  0xc2   :  { %12655 = vst [vmem:[#allocation10_spill] sm:$0xff] %v9147_v24 }
  0xc3   :  { %12656 = vst [vmem:[#allocation11_spill] sm:$0xff] %v9149_v26 }
  0xc7   :  { %v9151_v30 = vpop.f32.mrf.mxu2 }
  0xc8   :  { %12657 = vst [vmem:[#allocation12_spill] sm:$0xff] %v9151_v30  ;;  %v9156_v42 = vpop.f32.mrf.mxu3  ;;  %v9158_v43 = vpop.f32.mrf.mxu0 }
  0xc9   :  { %12658 = vst [vmem:[#allocation13_spill] sm:$0xff] %v9156_v42  ;;  %v9160_v49 = vpop.f32.mrf.mxu1  ;;  %v9370_v42 = vld [vmem:[%s12632_s0 + $0x2c] sm:$0xff] }
  0xca   :  { %12659 = vst [vmem:[#allocation14_spill] sm:$0xff] %v9158_v43 }
  0xcb   :  { %12660 = vst [vmem:[#allocation15_spill] sm:$0xff] %v9160_v49  ;;  %6031 = vmatmul.msk.bf16.gmra.mxu0 %vm254_vm0, %v8119_v37 }
  0xcc   :  { %6038 = vmatmul.msk.bf16.gmra.mxu1 %vm254_vm0, %v8119_v37  ;;  %6045 = vmatmul.msk.bf16.gmra.mxu2 %vm254_vm0, %v8119_v37 }
  0xcd   :  { %6052 = vmatmul.msk.bf16.gmra.mxu3 %vm254_vm0, %v8119_v37 }
  0xcf   :  { %v9166_v55 = vpop.f32.mrf.mxu2 }
  0xd0   :  { %12661 = vst [vmem:[#allocation16_spill] sm:$0xff] %v9166_v55  ;;  %v9168_v63 = vpop.f32.mrf.mxu3  ;;  %v9170_v0 = vpop.f32.mrf.mxu0 }
  0xd1   :  { %12662 = vst [vmem:[#allocation17_spill] sm:$0xff] %v9168_v63  ;;  %v9172_v4 = vpop.f32.mrf.mxu1 }
  0xd2   :  { %12663 = vst [vmem:[#allocation18_spill] sm:$0xff] %v9170_v0 }
  0xd3   :  { %12664 = vst [vmem:[#allocation19_spill] sm:$0xff] %v9172_v4  ;;  %v9341_v4 = vld [vmem:[%s12632_s0 + $0x24] sm:$0xff] }
  0xd7   :  { %v9174_v22 = vpop.f32.mrf.mxu2 }
  0xd8   :  { %12665 = vst [vmem:[#allocation20_spill] sm:$0xff] %v9174_v22  ;;  %v9179_v35 = vpop.f32.mrf.mxu3  ;;  %v9181_v41 = vpop.f32.mrf.mxu0 }
  0xd9   :  { %12666 = vst [vmem:[#allocation21_spill] sm:$0xff] %v9179_v35  ;;  %v9183_v53 = vpop.f32.mrf.mxu1 }
  0xda   :  { %12667 = vst [vmem:[#allocation22_spill] sm:$0xff] %v9181_v41 }
  0xdb   :  { %12668 = vst [vmem:[#allocation23_spill] sm:$0xff] %v9183_v53  ;;  %6032 = vmatmul.msk.bf16.gmra.mxu0 %vm254_vm0, %v8120_v32 }
  0xdc   :  { %6039 = vmatmul.msk.bf16.gmra.mxu1 %vm254_vm0, %v8120_v32  ;;  %6046 = vmatmul.msk.bf16.gmra.mxu2 %vm254_vm0, %v8120_v32 }
  0xdd   :  { %6053 = vmatmul.msk.bf16.gmra.mxu3 %vm254_vm0, %v8120_v32 }
  0xdf   :  { %v9189_v54 = vpop.f32.mrf.mxu2 }
  0xe0   :  { %12669 = vst [vmem:[#allocation24_spill] sm:$0xff] %v9189_v54  ;;  %v9191_v61 = vpop.f32.mrf.mxu3  ;;  %v9193_v1 = vpop.f32.mrf.mxu0 }
  0xe1   :  { %12670 = vst [vmem:[#allocation25_spill] sm:$0xff] %v9191_v61  ;;  %v9195_v2 = vpop.f32.mrf.mxu1 }
  0xe2   :  { %12671 = vst [vmem:[#allocation26_spill] sm:$0xff] %v9193_v1 }
  0xe3   :  { %12672 = vst [vmem:[#allocation27_spill] sm:$0xff] %v9195_v2 }
  0xe7   :  { %v9197_v15 = vpop.f32.mrf.mxu2 }
  0xe8   :  { %12673 = vst [vmem:[#allocation28_spill] sm:$0xff] %v9197_v15  ;;  %v9202_v20 = vpop.f32.mrf.mxu3  ;;  %v9204_v23 = vpop.f32.mrf.mxu0  ;;  %v9312_v15 = vld [vmem:[%s12632_s0 + $0x1c] sm:$0xff] }
  0xe9   :  { %12674 = vst [vmem:[#allocation29_spill] sm:$0xff] %v9202_v20  ;;  %v9206_v27 = vpop.f32.mrf.mxu1 }
  0xea   :  { %12675 = vst [vmem:[#allocation30_spill] sm:$0xff] %v9204_v23 }
  0xeb   :  { %12676 = vst [vmem:[#allocation31_spill] sm:$0xff] %v9206_v27  ;;  %6033 = vmatmul.msk.bf16.gmra.mxu0 %vm254_vm0, %v8121_v18 }
  0xec   :  { %6040 = vmatmul.msk.bf16.gmra.mxu1 %vm254_vm0, %v8121_v18  ;;  %6047 = vmatmul.msk.bf16.gmra.mxu2 %vm254_vm0, %v8121_v18 }
  0xed   :  { %6054 = vmatmul.msk.bf16.gmra.mxu3 %vm254_vm0, %v8121_v18  ;;  %v9254_v18 = vld [vmem:[%s12632_s0 + $0xc] sm:$0xff] }
  0xef   :  { %v9212_v28 = vpop.f32.mrf.mxu2 }
  0xf0   :  { %12677 = vst [vmem:[#allocation32_spill] sm:$0xff] %v9212_v28  ;;  %v9214_v36 = vpop.f32.mrf.mxu3  ;;  %v9216_v39 = vpop.f32.mrf.mxu0 }
  0xf1   :  { %12678 = vst [vmem:[#allocation33_spill] sm:$0xff] %v9214_v36  ;;  %v9218_v40 = vpop.f32.mrf.mxu1 }
  0xf2   :  { %12679 = vst [vmem:[#allocation34_spill] sm:$0xff] %v9216_v39 }
  0xf3   :  { %12680 = vst [vmem:[#allocation35_spill] sm:$0xff] %v9218_v40 }
  0xf7   :  { %v9220_v47 = vpop.f32.mrf.mxu2 }
  0xf8   :  { %12681 = vst [vmem:[#allocation36_spill] sm:$0xff] %v9220_v47  ;;  %v9227_v52 = vpop.f32.mrf.mxu3  ;;  %v9229_v59 = vpop.f32.mrf.mxu0 }
  0xf9   :  { %12682 = vst [vmem:[#allocation37_spill] sm:$0xff] %v9227_v52  ;;  %v9231_v7 = vpop.f32.mrf.mxu1 }
  0xfa   :  { %12683 = vst [vmem:[#allocation38_spill] sm:$0xff] %v9229_v59 }
  0xfb   :  { %12684 = vst [vmem:[#allocation39_spill] sm:$0xff] %v9231_v7  ;;  %6083 = vmatmul.msk.bf16.vlgmr.msra.gmra.mxu0 %vm254_vm0, %v9225_v48 }
  0xfc   :  { %6090 = vmatmul.msk.bf16.vlgmr.msra.gmra.mxu1 %vm254_vm0, %v9225_v48  ;;  %6097 = vmatmul.msk.bf16.vlgmr.msra.gmra.mxu2 %vm254_vm0, %v9225_v48 }
  0xfd   :  { %6104 = vmatmul.msk.bf16.vlgmr.msra.gmra.mxu3 %vm254_vm0, %v9225_v48 }
  0xff   :  { %v9241_v8 = vpop.f32.mrf.mxu2 }
 0x100   :  { %12685 = vst [vmem:[#allocation40_spill] sm:$0xff] %v9241_v8  ;;  %v9243_v34 = vpop.f32.mrf.mxu3  ;;  %v9245_v62 = vpop.f32.mrf.mxu0  ;;  %v9283_v8 = vld [vmem:[%s12632_s0 + $0x14] sm:$0xff] }
 0x101   :  { %12686 = vst [vmem:[#allocation41_spill] sm:$0xff] %v9243_v34  ;;  %v9247_v37 = vpop.f32.mrf.mxu1 }
 0x102   :  { %12687 = vst [vmem:[#allocation42_spill] sm:$0xff] %v9245_v62 }
 0x103   :  { %12688 = vst [vmem:[#allocation43_spill] sm:$0xff] %v9247_v37 }
 0x107   :  { %v9249_v32 = vpop.f32.mrf.mxu2 }
 0x108   :  { %12689 = vst [vmem:[#allocation44_spill] sm:$0xff] %v9249_v32  ;;  %v9256_v7 = vpop.f32.mrf.mxu3  ;;  %v9258_v59 = vpop.f32.mrf.mxu0 }
 0x109   :  { %12690 = vst [vmem:[#allocation45_spill] sm:$0xff] %v9256_v7  ;;  %v9260_v52 = vpop.f32.mrf.mxu1 }
 0x10b   :  { %6084 = vmatmul.msk.bf16.gmra.mxu0 %vm254_vm0, %v9254_v18 }
 0x10c   :  { %6091 = vmatmul.msk.bf16.gmra.mxu1 %vm254_vm0, %v9254_v18  ;;  %6098 = vmatmul.msk.bf16.gmra.mxu2 %vm254_vm0, %v9254_v18 }
 0x10d   :  { %6105 = vmatmul.msk.bf16.gmra.mxu3 %vm254_vm0, %v9254_v18 }
 0x10f   :  { %v9270_v32 = vpop.f32.mrf.mxu2 }
 0x110   :  { %v9272_v37 = vpop.f32.mrf.mxu3  ;;  %v9274_v7 = vpop.f32.mrf.mxu0 }
 0x111   :  { %v9276_v62 = vpop.f32.mrf.mxu1 }
 0x117   :  { %v9278_v34 = vpop.f32.mrf.mxu2 }
 0x118   :  { %v9285_v47 = vpop.f32.mrf.mxu3  ;;  %v9287_v40 = vpop.f32.mrf.mxu0 }
 0x119   :  { %v9289_v39 = vpop.f32.mrf.mxu1 }
 0x11b   :  { %6085 = vmatmul.msk.bf16.gmra.mxu0 %vm254_vm0, %v9283_v8 }
 0x11c   :  { %6092 = vmatmul.msk.bf16.gmra.mxu1 %vm254_vm0, %v9283_v8  ;;  %6099 = vmatmul.msk.bf16.gmra.mxu2 %vm254_vm0, %v9283_v8 }
 0x11d   :  { %6106 = vmatmul.msk.bf16.gmra.mxu3 %vm254_vm0, %v9283_v8 }
 0x11f   :  { %v9299_v36 = vpop.f32.mrf.mxu2 }
 0x120   :  { %v9301_v28 = vpop.f32.mrf.mxu3  ;;  %v9303_v27 = vpop.f32.mrf.mxu0 }
 0x121   :  { %12691 = vst [vmem:[#allocation46_spill] sm:$0xff] %v9303_v27  ;;  %v9305_v23 = vpop.f32.mrf.mxu1 }
 0x122   :  { %12692 = vst [vmem:[#allocation47_spill] sm:$0xff] %v9305_v23  ;;  %v6173_v23 = vld [vmem:[%s12631_s1 + $0x188] sm:$0xf] }
 0x127   :  { %v9307_v20 = vpop.f32.mrf.mxu2 }
 0x128   :  { %12693 = vst [vmem:[#allocation48_spill] sm:$0xff] %v9307_v20  ;;  %v9314_v2 = vpop.f32.mrf.mxu3  ;;  %v9316_v1 = vpop.f32.mrf.mxu0 }
 0x129   :  { %12694 = vst [vmem:[#allocation49_spill] sm:$0xff] %v9314_v2  ;;  %v9318_v61 = vpop.f32.mrf.mxu1 }
 0x12a   :  { %12695 = vst [vmem:[#allocation50_spill] sm:$0xff] %v9316_v1 }
 0x12b   :  { %12696 = vst [vmem:[#allocation51_spill] sm:$0xff] %v9318_v61  ;;  %6086 = vmatmul.msk.bf16.gmra.mxu0 %vm254_vm0, %v9312_v15  ;;  %v6205_v61 = vld [vmem:[%s12631_s1 + $0x1c8] sm:$0xf] }
 0x12c   :  { %6093 = vmatmul.msk.bf16.gmra.mxu1 %vm254_vm0, %v9312_v15  ;;  %6100 = vmatmul.msk.bf16.gmra.mxu2 %vm254_vm0, %v9312_v15 }
 0x12d   :  { %6107 = vmatmul.msk.bf16.gmra.mxu3 %vm254_vm0, %v9312_v15 }
 0x12f   :  { %v9328_v54 = vpop.f32.mrf.mxu2 }
 0x130   :  { %12697 = vst [vmem:[#allocation52_spill] sm:$0xff] %v9328_v54  ;;  %v9330_v53 = vpop.f32.mrf.mxu3  ;;  %v9332_v41 = vpop.f32.mrf.mxu0 }
 0x131   :  { %12698 = vst [vmem:[#allocation53_spill] sm:$0xff] %v9330_v53  ;;  %v9334_v35 = vpop.f32.mrf.mxu1 }
 0x132   :  { %12699 = vst [vmem:[#allocation54_spill] sm:$0xff] %v9332_v41 }
 0x133   :  { %12700 = vst [vmem:[#allocation55_spill] sm:$0xff] %v9334_v35 }
 0x137   :  { %v9336_v22 = vpop.f32.mrf.mxu2 }
 0x138   :  { %12701 = vst [vmem:[#allocation56_spill] sm:$0xff] %v9336_v22  ;;  %v9343_v0 = vpop.f32.mrf.mxu3  ;;  %v9345_v63 = vpop.f32.mrf.mxu0 }
 0x139   :  { %12702 = vst [vmem:[#allocation57_spill] sm:$0xff] %v9343_v0  ;;  %v9347_v55 = vpop.f32.mrf.mxu1 }
 0x13a   :  { %12703 = vst [vmem:[#allocation58_spill] sm:$0xff] %v9345_v63 }
 0x13b   :  { %12704 = vst [vmem:[#allocation59_spill] sm:$0xff] %v9347_v55  ;;  %6087 = vmatmul.msk.bf16.gmra.mxu0 %vm254_vm0, %v9341_v4 }
 0x13c   :  { %6094 = vmatmul.msk.bf16.gmra.mxu1 %vm254_vm0, %v9341_v4  ;;  %6101 = vmatmul.msk.bf16.gmra.mxu2 %vm254_vm0, %v9341_v4 }
 0x13d   :  { %6108 = vmatmul.msk.bf16.gmra.mxu3 %vm254_vm0, %v9341_v4 }
 0x13f   :  { %v9357_v49 = vpop.f32.mrf.mxu2 }
 0x140   :  { %12705 = vst [vmem:[#allocation60_spill] sm:$0xff] %v9357_v49  ;;  %v9359_v43 = vpop.f32.mrf.mxu3  ;;  %v9361_v0 = vpop.f32.mrf.mxu0 }
 0x141   :  { %12706 = vst [vmem:[#allocation61_spill] sm:$0xff] %v9359_v43  ;;  %v9363_v63 = vpop.f32.mrf.mxu1 }
 0x142   :  { %12707 = vst [vmem:[#allocation62_spill] sm:$0xff] %v9361_v0  ;;  %v9399_v0 = vld [vmem:[%s12632_s0 + $0x34] sm:$0xff] }
 0x143   :  { %12708 = vst [vmem:[#allocation63_spill] sm:$0xff] %v9363_v63 }
 0x147   :  { %v9365_v55 = vpop.f32.mrf.mxu2 }
 0x148   :  { %12709 = vst [vmem:[#allocation64_spill] sm:$0xff] %v9365_v55  ;;  %v9372_v22 = vpop.f32.mrf.mxu3  ;;  %v9374_v30 = vpop.f32.mrf.mxu0 }
 0x149   :  { %12710 = vst [vmem:[#allocation65_spill] sm:$0xff] %v9372_v22  ;;  %v9376_v35 = vpop.f32.mrf.mxu1 }
 0x14a   :  { %12711 = vst [vmem:[#allocation66_spill] sm:$0xff] %v9374_v30 }
 0x14b   :  { %12712 = vst [vmem:[#allocation67_spill] sm:$0xff] %v9376_v35  ;;  %6088 = vmatmul.msk.bf16.gmra.mxu0 %vm254_vm0, %v9370_v42 }
 0x14c   :  { %6095 = vmatmul.msk.bf16.gmra.mxu1 %vm254_vm0, %v9370_v42  ;;  %6102 = vmatmul.msk.bf16.gmra.mxu2 %vm254_vm0, %v9370_v42 }
 0x14d   :  { %6109 = vmatmul.msk.bf16.gmra.mxu3 %vm254_vm0, %v9370_v42 }
 0x14f   :  { %v9386_v55 = vpop.f32.mrf.mxu2 }
 0x150   :  { %12713 = vst [vmem:[#allocation68_spill] sm:$0xff] %v9386_v55  ;;  %v9388_v63 = vpop.f32.mrf.mxu3  ;;  %v9390_v22 = vpop.f32.mrf.mxu0 }
 0x151   :  { %12714 = vst [vmem:[#allocation69_spill] sm:$0xff] %v9388_v63  ;;  %v9392_v30 = vpop.f32.mrf.mxu1 }
 0x152   :  { %12715 = vst [vmem:[#allocation70_spill] sm:$0xff] %v9390_v22 }
 0x153   :  { %12716 = vst [vmem:[#allocation71_spill] sm:$0xff] %v9392_v30 }
 0x157   :  { %v9394_v35 = vpop.f32.mrf.mxu2 }
 0x158   :  { %12717 = vst [vmem:[#allocation72_spill] sm:$0xff] %v9394_v35  ;;  %v9401_v43 = vpop.f32.mrf.mxu3  ;;  %v9403_v49 = vpop.f32.mrf.mxu0 }
 0x159   :  { %12718 = vst [vmem:[#allocation73_spill] sm:$0xff] %v9401_v43  ;;  %v9405_v26 = vpop.f32.mrf.mxu1 }
 0x15a   :  { %12719 = vst [vmem:[#allocation74_spill] sm:$0xff] %v9403_v49 }
 0x15b   :  { %12720 = vst [vmem:[#allocation75_spill] sm:$0xff] %v9405_v26  ;;  %6089 = vmatmul.msk.bf16.gmra.mxu0 %vm254_vm0, %v9399_v0 }
 0x15c   :  { %6096 = vmatmul.msk.bf16.gmra.mxu1 %vm254_vm0, %v9399_v0  ;;  %6103 = vmatmul.msk.bf16.gmra.mxu2 %vm254_vm0, %v9399_v0 }
 0x15d   :  { %6110 = vmatmul.msk.bf16.gmra.mxu3 %vm254_vm0, %v9399_v0 }
 0x15f   :  { %v9415_v35 = vpop.f32.mrf.mxu2 }
 0x160   :  { %12721 = vst [vmem:[#allocation76_spill] sm:$0xff] %v9415_v35  ;;  %v9417_v30 = vpop.f32.mrf.mxu3  ;;  %v9419_v43 = vpop.f32.mrf.mxu0 }
 0x161   :  { %12722 = vst [vmem:[#allocation77_spill] sm:$0xff] %v9417_v30  ;;  %v9421_v49 = vpop.f32.mrf.mxu1 }
 0x162   :  { %12723 = vst [vmem:[#allocation78_spill] sm:$0xff] %v9419_v43 }
 0x163   :  { %12724 = vst [vmem:[#allocation79_spill] sm:$0xff] %v9421_v49 }
 0x167   :  { %v9423_v26 = vpop.f32.mrf.mxu2 }
 0x168   :  { %12725 = vst [vmem:[#allocation80_spill] sm:$0xff] %v9423_v26  ;;  %v9425_v22 = vpop.f32.mrf.mxu3  ;;  %v9427_v63 = vpop.f32.mrf.mxu0 }
 0x169   :  { %12726 = vst [vmem:[#allocation81_spill] sm:$0xff] %v9425_v22  ;;  %v9429_v55 = vpop.f32.mrf.mxu1 }
 0x16a   :  { %12727 = vst [vmem:[#allocation82_spill] sm:$0xff] %v9427_v63 }
 0x16b   :  { %12728 = vst [vmem:[#allocation83_spill] sm:$0xff] %v9429_v55  ;;  %6111 = vmatmul.msk.bf16.vlgmr.msrb.gmra.mxu0 %vm254_vm0, %v8723_v11 }
 0x16c   :  { %6118 = vmatmul.msk.bf16.vlgmr.msrb.gmra.mxu1 %vm254_vm0, %v8723_v11  ;;  %6125 = vmatmul.msk.bf16.vlgmr.msrb.gmra.mxu2 %vm254_vm0, %v8723_v11 }
 0x16d   :  { %6132 = vmatmul.msk.bf16.vlgmr.msrb.gmra.mxu3 %vm254_vm0, %v8723_v11 }
 0x16f   :  { %v9439_v49 = vpop.f32.mrf.mxu2 }
 0x170   :  { %12729 = vst [vmem:[#allocation84_spill] sm:$0xff] %v9439_v49  ;;  %v9441_v26 = vpop.f32.mrf.mxu3  ;;  %v9443_v22 = vpop.f32.mrf.mxu0 }
 0x171   :  { %12730 = vst [vmem:[#allocation85_spill] sm:$0xff] %v9441_v26  ;;  %v9445_v63 = vpop.f32.mrf.mxu1 }
 0x172   :  { %12731 = vst [vmem:[#allocation86_spill] sm:$0xff] %v9443_v22 }
 0x173   :  { %12732 = vst [vmem:[#allocation87_spill] sm:$0xff] %v9445_v63  ;;  %v8181_v63 = vld [vmem:[%s12631_s1 + $0x22c] sm:$0xf] }
 0x177   :  { %v9447_v55 = vpop.f32.mrf.mxu2 }
 0x178   :  { %12733 = vst [vmem:[#allocation88_spill] sm:$0xff] %v9447_v55  ;;  %v9449_v43 = vpop.f32.mrf.mxu3  ;;  %v9451_v30 = vpop.f32.mrf.mxu0 }
 0x179   :  { %12734 = vst [vmem:[#allocation89_spill] sm:$0xff] %v9449_v43  ;;  %v9453_v35 = vpop.f32.mrf.mxu1 }
 0x17a   :  { %12735 = vst [vmem:[#allocation90_spill] sm:$0xff] %v9451_v30  ;;  %v8183_v30 = vld [vmem:[%s12631_s1 + $0x234] sm:$0xf0] }
 0x17b   :  { %12736 = vst [vmem:[#allocation91_spill] sm:$0xff] %v9453_v35  ;;  %6112 = vmatmul.msk.bf16.gmra.mxu0 %vm254_vm0, %v8740_v13  ;;  %v6253_v35 = vld [vmem:[%s12631_s1 + $0x228] sm:$0xf] }
 0x17c   :  { %6119 = vmatmul.msk.bf16.gmra.mxu1 %vm254_vm0, %v8740_v13  ;;  %6126 = vmatmul.msk.bf16.gmra.mxu2 %vm254_vm0, %v8740_v13 }
 0x17d   :  { %6133 = vmatmul.msk.bf16.gmra.mxu3 %vm254_vm0, %v8740_v13  ;;  %v9480_v13 = vor.u32 %v8183_v30, %v6253_v35  ;;  %v8180_v30 = vld [vmem:[%s12631_s1 + $0x224] sm:$0xf]  ;;  %v6247_v35 = vld [vmem:[%s12631_s1 + $0x230] sm:$0xf0] }
 0x17f   :  { %v9463_v11 = vpop.f32.mrf.mxu2  ;;  %1461 = vmatpush.bf16.msra.mxu2 %v9480_v13 }
 0x180   :  { %12737 = vst [vmem:[#allocation92_spill] sm:$0xff] %v9463_v11  ;;  %v9465_v55 = vpop.f32.mrf.mxu3  ;;  %v9467_v43 = vpop.f32.mrf.mxu0  ;;  %v8182_v11 = vld [vmem:[%s12631_s1 + $0x22c] sm:$0xf0] }
 0x181   :  { %12738 = vst [vmem:[#allocation93_spill] sm:$0xff] %v9465_v55  ;;  %v9478_v22 = vpop.f32.mrf.mxu1  ;;  %v6245_v55 = vld [vmem:[%s12631_s1 + $0x220] sm:$0xf] }
 0x182   :  { %12739 = vst [vmem:[#allocation94_spill] sm:$0xff] %v9467_v43  ;;  %v6255_v43 = vld [vmem:[%s12631_s1 + $0x238] sm:$0xf0]  ;;  %v9493_v49 = vor.u32 %v8182_v11, %v6245_v55 }
 0x183   :  { %12740 = vst [vmem:[#allocation95_spill] sm:$0xff] %v9478_v22  ;;  %v9491_v26 = vor.u32 %v8181_v63, %v6255_v43  ;;  %v9502_v22 = vor.u32 %v8180_v30, %v6247_v35 }
 0x184   :  { %1373 = vmatpush.bf16.msra.mxu0 %v9493_v49 }
 0x185   :  { %1505 = vmatpush.bf16.msra.mxu3 %v9491_v26  ;;  %1417 = vmatpush.bf16.msra.mxu1 %v9502_v22 }
 0x187   :  { %v9507_v43 = vpop.f32.mrf.mxu2 }
 0x188   :  { %12741 = vst [vmem:[#allocation96_spill] sm:$0xff] %v9507_v43  ;;  %v9509_v55 = vpop.f32.mrf.mxu3  ;;  %v9511_v63 = vpop.f32.mrf.mxu0  ;;  %v8179_v43 = vld [vmem:[%s12631_s1 + $0x214] sm:$0xf0] }
 0x189   :  { %12742 = vst [vmem:[#allocation97_spill] sm:$0xff] %v9509_v55  ;;  %v9513_v11 = vpop.f32.mrf.mxu1 }
 0x18a   :  { %12743 = vst [vmem:[#allocation98_spill] sm:$0xff] %v9511_v63 }
 0x18b   :  { %12744 = vst [vmem:[#allocation99_spill] sm:$0xff] %v9513_v11  ;;  %6113 = vmatmul.msk.bf16.gmra.mxu0 %vm254_vm0, %v8789_v31  ;;  %v6237_v11 = vld [vmem:[%s12631_s1 + $0x208] sm:$0xf] }
 0x18c   :  { %6120 = vmatmul.msk.bf16.gmra.mxu1 %vm254_vm0, %v8789_v31  ;;  %6127 = vmatmul.msk.bf16.gmra.mxu2 %vm254_vm0, %v8789_v31  ;;  %v9540_v41 = vor.u32 %v8179_v43, %v6237_v11  ;;  %v6229_v43 = vld [vmem:[%s12631_s1 + $0x200] sm:$0xf]  ;;  %v8178_v11 = vld [vmem:[%s12631_s1 + $0x20c] sm:$0xf0] }
 0x18d   :  { %6134 = vmatmul.msk.bf16.gmra.mxu3 %vm254_vm0, %v8789_v31  ;;  %v8177_v31 = vld [vmem:[%s12631_s1 + $0x20c] sm:$0xf]  ;;  %v9566_v53 = vor.u32 %v8178_v11, %v6229_v43 }
 0x18e   :  { %1462 = vmatpush.bf16.msra.mxu2 %v9540_v41 }
 0x18f   :  { %v9523_v30 = vpop.f32.mrf.mxu2  ;;  %1374 = vmatpush.bf16.msra.mxu0 %v9566_v53 }
 0x190   :  { %12745 = vst [vmem:[#allocation100_spill] sm:$0xff] %v9523_v30  ;;  %v9525_v35 = vpop.f32.mrf.mxu3  ;;  %v9527_v55 = vpop.f32.mrf.mxu0 }
 0x191   :  { %12746 = vst [vmem:[#allocation101_spill] sm:$0xff] %v9525_v35  ;;  %v9529_v63 = vpop.f32.mrf.mxu1 }
 0x192   :  { %12747 = vst [vmem:[#allocation102_spill] sm:$0xff] %v9527_v55  ;;  %v6239_v55 = vld [vmem:[%s12631_s1 + $0x218] sm:$0xf0] }
 0x193   :  { %12748 = vst [vmem:[#allocation103_spill] sm:$0xff] %v9529_v63  ;;  %v9545_v35 = vor.u32 %v8177_v31, %v6239_v55  ;;  %v8176_v55 = vld [vmem:[%s12631_s1 + $0x204] sm:$0xf] }
 0x195   :  { %1506 = vmatpush.bf16.msra.mxu3 %v9545_v35 }
 0x197   :  { %v9549_v63 = vpop.f32.mrf.mxu2 }
 0x198   :  { %12749 = vst [vmem:[#allocation104_spill] sm:$0xff] %v9549_v63  ;;  %v9551_v30 = vpop.f32.mrf.mxu3  ;;  %v9553_v24 = vpop.f32.mrf.mxu0  ;;  %v8173_v63 = vld [vmem:[%s12631_s1 + $0x1ec] sm:$0xf] }
 0x199   :  { %12750 = vst [vmem:[#allocation105_spill] sm:$0xff] %v9551_v30  ;;  %v9564_v31 = vpop.f32.mrf.mxu1 }
 0x19a   :  { %12751 = vst [vmem:[#allocation106_spill] sm:$0xff] %v9553_v24  ;;  %v6231_v24 = vld [vmem:[%s12631_s1 + $0x210] sm:$0xf0] }
 0x19b   :  { %12752 = vst [vmem:[#allocation107_spill] sm:$0xff] %v9564_v31  ;;  %v9571_v30 = vor.u32 %v8176_v55, %v6231_v24  ;;  %6114 = vmatmul.msk.bf16.gmra.mxu0 %vm254_vm0, %v8838_v51  ;;  %v6221_v31 = vld [vmem:[%s12631_s1 + $0x1e8] sm:$0xf] }
 0x19c   :  { %6121 = vmatmul.msk.bf16.gmra.mxu1 %vm254_vm0, %v8838_v51  ;;  %6128 = vmatmul.msk.bf16.gmra.mxu2 %vm254_vm0, %v8838_v51 }
 0x19d   :  { %6135 = vmatmul.msk.bf16.gmra.mxu3 %vm254_vm0, %v8838_v51  ;;  %1418 = vmatpush.bf16.msra.mxu1 %v9571_v30  ;;  %v8175_v51 = vld [vmem:[%s12631_s1 + $0x1f4] sm:$0xf0] }
 0x19e   :  { %v9600_v19 = vor.u32 %v8175_v51, %v6221_v31  ;;  %v6213_v31 = vld [vmem:[%s12631_s1 + $0x1e0] sm:$0xf] }
 0x19f   :  { %v9583_v43 = vpop.f32.mrf.mxu2 }
 0x1a0   :  { %12753 = vst [vmem:[#allocation108_spill] sm:$0xff] %v9583_v43  ;;  %v9585_v24 = vpop.f32.mrf.mxu3  ;;  %v9587_v11 = vpop.f32.mrf.mxu0  ;;  %1463 = vmatpush.bf16.msra.mxu2 %v9600_v19 }
 0x1a1   :  { %12754 = vst [vmem:[#allocation109_spill] sm:$0xff] %v9585_v24  ;;  %v9589_v55 = vpop.f32.mrf.mxu1 }
 0x1a2   :  { %12755 = vst [vmem:[#allocation110_spill] sm:$0xff] %v9587_v11  ;;  %v6223_v11 = vld [vmem:[%s12631_s1 + $0x1f8] sm:$0xf0] }
 0x1a3   :  { %12756 = vst [vmem:[#allocation111_spill] sm:$0xff] %v9589_v55  ;;  %v9605_v24 = vor.u32 %v8173_v63, %v6223_v11  ;;  %v8174_v63 = vld [vmem:[%s12631_s1 + $0x1ec] sm:$0xf0]  ;;  %v8172_v11 = vld [vmem:[%s12631_s1 + $0x1e4] sm:$0xf] }
 0x1a4   :  { %v9626_v51 = vor.u32 %v8174_v63, %v6213_v31  ;;  %v8170_v63 = vld [vmem:[%s12631_s1 + $0x1cc] sm:$0xf0] }
 0x1a5   :  { %1507 = vmatpush.bf16.msra.mxu3 %v9605_v24 }
 0x1a6   :  { %1375 = vmatpush.bf16.msra.mxu0 %v9626_v51 }
 0x1a7   :  { %v9609_v55 = vpop.f32.mrf.mxu2 }
 0x1a8   :  { %12757 = vst [vmem:[#allocation112_spill] sm:$0xff] %v9609_v55  ;;  %v9611_v43 = vpop.f32.mrf.mxu3  ;;  %v9613_v54 = vpop.f32.mrf.mxu0 }
 0x1a9   :  { %12758 = vst [vmem:[#allocation113_spill] sm:$0xff] %v9611_v43  ;;  %v9615_v10 = vpop.f32.mrf.mxu1 }
 0x1aa   :  { %12759 = vst [vmem:[#allocation114_spill] sm:$0xff] %v9613_v54  ;;  %v6215_v54 = vld [vmem:[%s12631_s1 + $0x1f0] sm:$0xf0] }
 0x1ab   :  { %12760 = vst [vmem:[#allocation115_spill] sm:$0xff] %v9615_v10  ;;  %6115 = vmatmul.msk.bf16.gmra.mxu0 %vm254_vm0, %v8887_v14  ;;  %v9633_v10 = vor.u32 %v8172_v11, %v6215_v54  ;;  %v6197_v54 = vld [vmem:[%s12631_s1 + $0x1c0] sm:$0xf]  ;;  %v8168_v11 = vld [vmem:[%s12631_s1 + $0x1c4] sm:$0xf] }
 0x1ac   :  { %6122 = vmatmul.msk.bf16.gmra.mxu1 %vm254_vm0, %v8887_v14  ;;  %6129 = vmatmul.msk.bf16.gmra.mxu2 %vm254_vm0, %v8887_v14  ;;  %v9658_v55 = vor.u32 %v8170_v63, %v6197_v54  ;;  %v8169_v54 = vld [vmem:[%s12631_s1 + $0x1cc] sm:$0xf]  ;;  %v6207_v63 = vld [vmem:[%s12631_s1 + $0x1d8] sm:$0xf0] }
 0x1ad   :  { %6136 = vmatmul.msk.bf16.gmra.mxu3 %vm254_vm0, %v8887_v14  ;;  %1419 = vmatpush.bf16.msra.mxu1 %v9633_v10  ;;  %v9685_v2 = vor.u32 %v8169_v54, %v6207_v63  ;;  %v6189_v63 = vld [vmem:[%s12631_s1 + $0x1a8] sm:$0xf] }
 0x1ae   :  { %1376 = vmatpush.bf16.msra.mxu0 %v9658_v55 }
 0x1af   :  { %v9643_v31 = vpop.f32.mrf.mxu2  ;;  %1508 = vmatpush.bf16.msra.mxu3 %v9685_v2 }
 0x1b0   :  { %12761 = vst [vmem:[#allocation116_spill] sm:$0xff] %v9643_v31  ;;  %v9654_v43 = vpop.f32.mrf.mxu3  ;;  %v9656_v14 = vpop.f32.mrf.mxu0  ;;  %v6199_v31 = vld [vmem:[%s12631_s1 + $0x1d0] sm:$0xf0] }
 0x1b1   :  { %12762 = vst [vmem:[#allocation117_spill] sm:$0xff] %v9654_v43  ;;  %v9669_v1 = vpop.f32.mrf.mxu1  ;;  %v9671_v6 = vor.u32 %v8168_v11, %v6199_v31  ;;  %v9673_v43 = vor.u32 %v8171_v9, %v6205_v61  ;;  %v8166_v9 = vld [vmem:[%s12631_s1 + $0x1ac] sm:$0xf0]  ;;  %v8164_v61 = vld [vmem:[%s12631_s1 + $0x1a4] sm:$0xf] }
 0x1b2   :  { %12763 = vst [vmem:[#allocation118_spill] sm:$0xff] %v9656_v14  ;;  %v6181_v14 = vld [vmem:[%s12631_s1 + $0x1a0] sm:$0xf]  ;;  %v6183_v31 = vld [vmem:[%s12631_s1 + $0x1b0] sm:$0xf0] }
 0x1b3   :  { %12764 = vst [vmem:[#allocation119_spill] sm:$0xff] %v9669_v1  ;;  %1420 = vmatpush.bf16.msra.mxu1 %v9671_v6  ;;  %1464 = vmatpush.bf16.msra.mxu2 %v9673_v43  ;;  %v9698_v11 = vor.u32 %v8166_v9, %v6181_v14  ;;  %v9700_v54 = vor.u32 %v8164_v61, %v6183_v31  ;;  %v8167_v1 = vld [vmem:[%s12631_s1 + $0x1b4] sm:$0xf0]  ;;  %v6191_v14 = vld [vmem:[%s12631_s1 + $0x1b8] sm:$0xf0] }
 0x1b4   :  { %v6190_v20 = vor.u32 %v8167_v1, %v6189_v63  ;;  %v6194_v9 = vor.u32 %v8165_v5, %v6191_v14  ;;  %v6165_v31 = vld [vmem:[%s12631_s1 + $0x180] sm:$0xf]  ;;  %v8162_v1 = vld [vmem:[%s12631_s1 + $0x18c] sm:$0xf0]  ;;  %v8160_v63 = vld [vmem:[%s12631_s1 + $0x184] sm:$0xf] }
 0x1b5   :  { %1377 = vmatpush.bf16.msra.mxu0 %v9698_v11  ;;  %v6170_v56 = vor.u32 %v8160_v63, %v6167_v58 }
 0x1b6   :  { %1509 = vmatpush.bf16.msra.mxu3 %v6194_v9 }
 0x1b7   :  { %v9716_v61 = vpop.f32.mrf.mxu2  ;;  %1421 = vmatpush.bf16.msra.mxu1 %v9700_v54  ;;  %1465 = vmatpush.bf16.msra.mxu2 %v6190_v20 }
 0x1b8   :  { %12765 = vst [vmem:[#allocation120_spill] sm:$0xff] %v9716_v61  ;;  %v9728_v5 = vpop.f32.mrf.mxu3  ;;  %v9730_v14 = vpop.f32.mrf.mxu0  ;;  %v6166_v61 = vor.u32 %v8162_v1, %v6165_v31  ;;  %v8161_v31 = vld [vmem:[%s12631_s1 + $0x18c] sm:$0xf]  ;;  %v6175_v1 = vld [vmem:[%s12631_s1 + $0x198] sm:$0xf0] }
 0x1b9   :  { %12766 = vst [vmem:[#allocation121_spill] sm:$0xff] %v9728_v5  ;;  %v9741_v27 = vpop.f32.mrf.mxu1  ;;  %v6174_v5 = vor.u32 %v8163_v57, %v6173_v23 }
 0x1ba   :  { %12767 = vst [vmem:[#allocation122_spill] sm:$0xff] %v9730_v14  ;;  %1378 = vmatpush.bf16.msra.mxu0 %v6166_v61  ;;  %v6178_v14 = vor.u32 %v8161_v31, %v6175_v1 }
 0x1bb   :  { %12768 = vst [vmem:[#allocation123_spill] sm:$0xff] %v9741_v27  ;;  %6116 = vmatmul.msk.bf16.gmra.mxu0 %vm254_vm0, %v9004_v60  ;;  %1422 = vmatpush.bf16.msra.mxu1 %v6170_v56 }
 0x1bc   :  { %6123 = vmatmul.msk.bf16.gmra.mxu1 %vm254_vm0, %v9004_v60  ;;  %6130 = vmatmul.msk.bf16.gmra.mxu2 %vm254_vm0, %v9004_v60 }
 0x1bd   :  { %6137 = vmatmul.msk.bf16.gmra.mxu3 %vm254_vm0, %v9004_v60  ;;  %1466 = vmatpush.bf16.msra.mxu2 %v6174_v5 }
 0x1be   :  { %1510 = vmatpush.bf16.msra.mxu3 %v6178_v14  ;;  %1675 = vmatpush.bf16.msrb.mxu0 %v9493_v49 }
 0x1bf   :  { %v9758_v57 = vpop.f32.mrf.mxu2  ;;  %1719 = vmatpush.bf16.msrb.mxu1 %v9502_v22 }
 0x1c0   :  { %12769 = vst [vmem:[#allocation124_spill] sm:$0xff] %v9758_v57  ;;  %v9762_v58 = vpop.f32.mrf.mxu3  ;;  %v9764_v23 = vpop.f32.mrf.mxu0 }
 0x1c1   :  { %1763 = vmatpush.bf16.msrb.mxu2 %v9480_v13  ;;  %12770 = vst [vmem:[#allocation125_spill] sm:$0xff] %v9762_v58  ;;  %v9767_v63 = vpop.f32.mrf.mxu1 }
 0x1c2   :  { %1807 = vmatpush.bf16.msrb.mxu3 %v9491_v26  ;;  %12771 = vst [vmem:[#allocation126_spill] sm:$0xff] %v9764_v23  ;;  %1676 = vmatpush.bf16.msrb.mxu0 %v9566_v53 }
 0x1c3   :  { %12772 = vst [vmem:[#allocation127_spill] sm:$0xff] %v9767_v63  ;;  %1720 = vmatpush.bf16.msrb.mxu1 %v9571_v30 }
 0x1c5   :  { %1764 = vmatpush.bf16.msrb.mxu2 %v9540_v41 }
 0x1c6   :  { %1808 = vmatpush.bf16.msrb.mxu3 %v9545_v35  ;;  %1677 = vmatpush.bf16.msrb.mxu0 %v9626_v51 }
 0x1c7   :  { %v9774_v60 = vpop.f32.mrf.mxu2  ;;  %1721 = vmatpush.bf16.msrb.mxu1 %v9633_v10 }
 0x1c8   :  { %12773 = vst [vmem:[#allocation128_spill] sm:$0xff] %v9774_v60  ;;  %v9778_v26 = vpop.f32.mrf.mxu3  ;;  %v9780_v49 = vpop.f32.mrf.mxu0 }
 0x1c9   :  { %1765 = vmatpush.bf16.msrb.mxu2 %v9600_v19  ;;  %12774 = vst [vmem:[#allocation129_spill] sm:$0xff] %v9778_v26  ;;  %v9783_v22 = vpop.f32.mrf.mxu1 }
 0x1ca   :  { %1809 = vmatpush.bf16.msrb.mxu3 %v9605_v24  ;;  %12775 = vst [vmem:[#allocation130_spill] sm:$0xff] %v9780_v49  ;;  %1678 = vmatpush.bf16.msrb.mxu0 %v9658_v55 }
 0x1cb   :  { %12776 = vst [vmem:[#allocation131_spill] sm:$0xff] %v9783_v22  ;;  %6117 = vmatmul.msk.bf16.gmra.mxu0 %vm254_vm0, %v9034_v3  ;;  %1722 = vmatpush.bf16.msrb.mxu1 %v9671_v6 }
 0x1cc   :  { %6124 = vmatmul.msk.bf16.gmra.mxu1 %vm254_vm0, %v9034_v3  ;;  %6131 = vmatmul.msk.bf16.gmra.mxu2 %vm254_vm0, %v9034_v3 }
 0x1cd   :  { %1766 = vmatpush.bf16.msrb.mxu2 %v9673_v43  ;;  %6138 = vmatmul.msk.bf16.gmra.mxu3 %vm254_vm0, %v9034_v3 }
 0x1ce   :  { %1810 = vmatpush.bf16.msrb.mxu3 %v9685_v2  ;;  %1679 = vmatpush.bf16.msrb.mxu0 %v9698_v11 }
 0x1cf   :  { %v9797_v10 = vpop.f32.mrf.mxu2  ;;  %1723 = vmatpush.bf16.msrb.mxu1 %v9700_v54 }
 0x1d0   :  { %12777 = vst [vmem:[#allocation132_spill] sm:$0xff] %v9797_v10  ;;  %v9799_v19 = vpop.f32.mrf.mxu3  ;;  %v9801_v41 = vpop.f32.mrf.mxu0 }
 0x1d1   :  { %1767 = vmatpush.bf16.msrb.mxu2 %v6190_v20  ;;  %12778 = vst [vmem:[#allocation133_spill] sm:$0xff] %v9799_v19  ;;  %v9803_v53 = vpop.f32.mrf.mxu1 }
 0x1d2   :  { %1811 = vmatpush.bf16.msrb.mxu3 %v6194_v9  ;;  %12779 = vst [vmem:[#allocation134_spill] sm:$0xff] %v9801_v41  ;;  %1680 = vmatpush.bf16.msrb.mxu0 %v6166_v61 }
 0x1d3   :  { %12780 = vst [vmem:[#allocation135_spill] sm:$0xff] %v9803_v53  ;;  %1724 = vmatpush.bf16.msrb.mxu1 %v6170_v56 }
 0x1d5   :  { %1768 = vmatpush.bf16.msrb.mxu2 %v6174_v5 }
 0x1d6   :  { %1812 = vmatpush.bf16.msrb.mxu3 %v6178_v14 }
 0x1d7   :  { %v9807_v3 = vpop.f32.mrf.mxu2 }
 0x1d8   :  { %12781 = vst [vmem:[#allocation136_spill] sm:$0xff] %v9807_v3  ;;  %v9809_v6 = vpop.f32.mrf.mxu3  ;;  %v9811_v2 = vpop.f32.mrf.mxu0 }
 0x1d9   :  { %12782 = vst [vmem:[#allocation137_spill] sm:$0xff] %v9809_v6  ;;  %v9813_v20 = vpop.f32.mrf.mxu1 }
 0x1da   :  { %12783 = vst [vmem:[#allocation138_spill] sm:$0xff] %v9811_v2 }
 0x1db   :  { %12784 = vst [vmem:[#allocation139_spill] sm:$0xff] %v9813_v20  ;;  %6259 = vmatmul.msk.bf16.vlgmr.msra.gmra.mxu0 %vm254_vm0, %v9225_v48 }
 0x1dc   :  { %6266 = vmatmul.msk.bf16.vlgmr.msra.gmra.mxu1 %vm254_vm0, %v9225_v48  ;;  %6273 = vmatmul.msk.bf16.vlgmr.msra.gmra.mxu2 %vm254_vm0, %v9225_v48 }
 0x1dd   :  { %6280 = vmatmul.msk.bf16.vlgmr.msra.gmra.mxu3 %vm254_vm0, %v9225_v48 }
 0x1df   :  { %v9823_v56 = vpop.f32.mrf.mxu2 }
 0x1e0   :  { %12785 = vst [vmem:[#allocation140_spill] sm:$0xff] %v9823_v56  ;;  %v9825_v13 = vpop.f32.mrf.mxu3  ;;  %v9827_v30 = vpop.f32.mrf.mxu0 }
 0x1e1   :  { %12786 = vst [vmem:[#allocation141_spill] sm:$0xff] %v9825_v13  ;;  %v9829_v35 = vpop.f32.mrf.mxu1 }
 0x1e2   :  { %12787 = vst [vmem:[#allocation142_spill] sm:$0xff] %v9827_v30 }
 0x1e3   :  { %12788 = vst [vmem:[#allocation143_spill] sm:$0xff] %v9829_v35 }
 0x1e7   :  { %v9831_v43 = vpop.f32.mrf.mxu2 }
 0x1e8   :  { %12789 = vst [vmem:[#allocation144_spill] sm:$0xff] %v9831_v43  ;;  %v9833_v24 = vpop.f32.mrf.mxu3  ;;  %v9835_v55 = vpop.f32.mrf.mxu0 }
 0x1e9   :  { %12790 = vst [vmem:[#allocation145_spill] sm:$0xff] %v9833_v24  ;;  %v9837_v51 = vpop.f32.mrf.mxu1 }
 0x1eb   :  { %6260 = vmatmul.msk.bf16.gmra.mxu0 %vm254_vm0, %v9254_v18 }
 0x1ec   :  { %6267 = vmatmul.msk.bf16.gmra.mxu1 %vm254_vm0, %v9254_v18  ;;  %6274 = vmatmul.msk.bf16.gmra.mxu2 %vm254_vm0, %v9254_v18 }
 0x1ed   :  { %6281 = vmatmul.msk.bf16.gmra.mxu3 %vm254_vm0, %v9254_v18 }
 0x1ef   :  { %v9847_v48 = vpop.f32.mrf.mxu2 }
 0x1f0   :  { %v9849_v11 = vpop.f32.mrf.mxu3  ;;  %v9851_v54 = vpop.f32.mrf.mxu0 }
 0x1f1   :  { %v9853_v9 = vpop.f32.mrf.mxu1 }
 0x1f7   :  { %v9855_v61 = vpop.f32.mrf.mxu2 }
 0x1f8   :  { %v9857_v5 = vpop.f32.mrf.mxu3  ;;  %v9859_v14 = vpop.f32.mrf.mxu0 }
 0x1f9   :  { %v9861_v31 = vpop.f32.mrf.mxu1 }
 0x1fb   :  { %6261 = vmatmul.msk.bf16.gmra.mxu0 %vm254_vm0, %v9283_v8 }
 0x1fc   :  { %6268 = vmatmul.msk.bf16.gmra.mxu1 %vm254_vm0, %v9283_v8  ;;  %6275 = vmatmul.msk.bf16.gmra.mxu2 %vm254_vm0, %v9283_v8 }
 0x1fd   :  { %6282 = vmatmul.msk.bf16.gmra.mxu3 %vm254_vm0, %v9283_v8 }
 0x1ff   :  { %v9871_v18 = vpop.f32.mrf.mxu2 }
 0x200   :  { %v9873_v1 = vpop.f32.mrf.mxu3  ;;  %v9875_v24 = vpop.f32.mrf.mxu0 }
 0x201   :  { %v9877_v43 = vpop.f32.mrf.mxu1 }
 0x207   :  { %v9879_v35 = vpop.f32.mrf.mxu2 }
 0x208   :  { %v9881_v30 = vpop.f32.mrf.mxu3  ;;  %v9883_v13 = vpop.f32.mrf.mxu0 }
 0x209   :  { %v9885_v56 = vpop.f32.mrf.mxu1 }
 0x20b   :  { %6262 = vmatmul.msk.bf16.gmra.mxu0 %vm254_vm0, %v9312_v15 }
 0x20c   :  { %6269 = vmatmul.msk.bf16.gmra.mxu1 %vm254_vm0, %v9312_v15  ;;  %6276 = vmatmul.msk.bf16.gmra.mxu2 %vm254_vm0, %v9312_v15 }
 0x20d   :  { %6283 = vmatmul.msk.bf16.gmra.mxu3 %vm254_vm0, %v9312_v15 }
 0x20f   :  { %v9895_v8 = vpop.f32.mrf.mxu2 }
 0x210   :  { %v9897_v20 = vpop.f32.mrf.mxu3  ;;  %v9899_v2 = vpop.f32.mrf.mxu0 }
 0x211   :  { %v9901_v6 = vpop.f32.mrf.mxu1 }
 0x212   :  { %12791 = vst [vmem:[#allocation146_spill] sm:$0xff] %v9901_v6 }
 0x217   :  { %v9903_v3 = vpop.f32.mrf.mxu2 }
 0x218   :  { %12792 = vst [vmem:[#allocation147_spill] sm:$0xff] %v9903_v3  ;;  %v9905_v53 = vpop.f32.mrf.mxu3  ;;  %v9907_v41 = vpop.f32.mrf.mxu0  ;;  %v6393_v3 = vld [vmem:[%s12631_s1 + $0x258] sm:$0xf0] }
 0x219   :  { %12793 = vst [vmem:[#allocation148_spill] sm:$0xff] %v9905_v53  ;;  %v9909_v19 = vpop.f32.mrf.mxu1  ;;  %v6391_v53 = vld [vmem:[%s12631_s1 + $0x248] sm:$0xf] }
 0x21a   :  { %12794 = vst [vmem:[#allocation149_spill] sm:$0xff] %v9907_v41  ;;  %v6385_v41 = vld [vmem:[%s12631_s1 + $0x250] sm:$0xf0] }
 0x21b   :  { %12795 = vst [vmem:[#allocation150_spill] sm:$0xff] %v9909_v19  ;;  %6263 = vmatmul.msk.bf16.gmra.mxu0 %vm254_vm0, %v9341_v4 }
 0x21c   :  { %6270 = vmatmul.msk.bf16.gmra.mxu1 %vm254_vm0, %v9341_v4  ;;  %6277 = vmatmul.msk.bf16.gmra.mxu2 %vm254_vm0, %v9341_v4 }
 0x21d   :  { %6284 = vmatmul.msk.bf16.gmra.mxu3 %vm254_vm0, %v9341_v4 }
 0x21f   :  { %v9919_v15 = vpop.f32.mrf.mxu2 }
 0x220   :  { %12796 = vst [vmem:[#allocation151_spill] sm:$0xff] %v9919_v15  ;;  %v9921_v10 = vpop.f32.mrf.mxu3  ;;  %v9923_v22 = vpop.f32.mrf.mxu0 }
 0x221   :  { %12797 = vst [vmem:[#allocation152_spill] sm:$0xff] %v9921_v10  ;;  %v9925_v49 = vpop.f32.mrf.mxu1 }
 0x222   :  { %12798 = vst [vmem:[#allocation153_spill] sm:$0xff] %v9923_v22  ;;  %v12898_v22 = vld [vmem:[#allocation66_spill] sm:$0xff] }
 0x223   :  { %12799 = vst [vmem:[#allocation154_spill] sm:$0xff] %v9925_v49 }
 0x227   :  { %v9927_v26 = vpop.f32.mrf.mxu2 }
 0x228   :  { %12800 = vst [vmem:[#allocation155_spill] sm:$0xff] %v9927_v26  ;;  %v9929_v60 = vpop.f32.mrf.mxu3  ;;  %v9931_v63 = vpop.f32.mrf.mxu0 }
 0x229   :  { %12801 = vst [vmem:[#allocation156_spill] sm:$0xff] %v9929_v60  ;;  %v9933_v23 = vpop.f32.mrf.mxu1 }
 0x22a   :  { %12802 = vst [vmem:[#allocation157_spill] sm:$0xff] %v9931_v63 }
 0x22b   :  { %12803 = vst [vmem:[#allocation158_spill] sm:$0xff] %v9933_v23  ;;  %6264 = vmatmul.msk.bf16.gmra.mxu0 %vm254_vm0, %v9370_v42 }
 0x22c   :  { %6271 = vmatmul.msk.bf16.gmra.mxu1 %vm254_vm0, %v9370_v42  ;;  %6278 = vmatmul.msk.bf16.gmra.mxu2 %vm254_vm0, %v9370_v42 }
 0x22d   :  { %6285 = vmatmul.msk.bf16.gmra.mxu3 %vm254_vm0, %v9370_v42 }
 0x22f   :  { %v9943_v4 = vpop.f32.mrf.mxu2 }
 0x230   :  { %12804 = vst [vmem:[#allocation159_spill] sm:$0xff] %v9943_v4  ;;  %v9945_v58 = vpop.f32.mrf.mxu3  ;;  %v9947_v57 = vpop.f32.mrf.mxu0 }
 0x231   :  { %12805 = vst [vmem:[#allocation160_spill] sm:$0xff] %v9945_v58  ;;  %v9949_v27 = vpop.f32.mrf.mxu1 }
 0x232   :  { %12806 = vst [vmem:[#allocation161_spill] sm:$0xff] %v9947_v57 }
 0x233   :  { %12807 = vst [vmem:[#allocation162_spill] sm:$0xff] %v9949_v27  ;;  %v9980_v27 = vld [vmem:[%s12632_s0 + $0x44] sm:$0xff] }
 0x237   :  { %v9951_v23 = vpop.f32.mrf.mxu2 }
 0x238   :  { %12808 = vst [vmem:[#allocation163_spill] sm:$0xff] %v9951_v23  ;;  %v9953_v63 = vpop.f32.mrf.mxu3  ;;  %v9955_v60 = vpop.f32.mrf.mxu0 }
 0x239   :  { %12809 = vst [vmem:[#allocation164_spill] sm:$0xff] %v9953_v63  ;;  %v9957_v26 = vpop.f32.mrf.mxu1 }
 0x23a   :  { %12810 = vst [vmem:[#allocation165_spill] sm:$0xff] %v9955_v60 }
 0x23b   :  { %12811 = vst [vmem:[#allocation166_spill] sm:$0xff] %v9957_v26  ;;  %6265 = vmatmul.msk.bf16.gmra.mxu0 %vm254_vm0, %v9399_v0 }
 0x23c   :  { %6272 = vmatmul.msk.bf16.gmra.mxu1 %vm254_vm0, %v9399_v0  ;;  %6279 = vmatmul.msk.bf16.gmra.mxu2 %vm254_vm0, %v9399_v0 }
 0x23d   :  { %6286 = vmatmul.msk.bf16.gmra.mxu3 %vm254_vm0, %v9399_v0 }
 0x23f   :  { %v9967_v42 = vpop.f32.mrf.mxu2 }
 0x240   :  { %12812 = vst [vmem:[#allocation167_spill] sm:$0xff] %v9967_v42  ;;  %v9969_v23 = vpop.f32.mrf.mxu3  ;;  %v9971_v63 = vpop.f32.mrf.mxu0  ;;  %v682_v42 = vadd.f32 %v9260_v52, %v9079_v16  ;;  %v770_v16 = vadd.f32 %v9272_v37, %v9095_v21  ;;  %v640_v52 = vadd.f32 %v9274_v7, %v9097_v25  ;;  %v8214_v21 = vld [vmem:[%s12631_s1 + $0x2f4] sm:$0xf0]  ;;  %v8212_v25 = vld [vmem:[%s12631_s1 + $0x2ec] sm:$0xf] }
 0x241   :  { %12813 = vst [vmem:[#allocation168_spill] sm:$0xff] %v9969_v23  ;;  %v9973_v60 = vpop.f32.mrf.mxu1  ;;  %v10011_v23 = vld [vmem:[%s12632_s0 + $0x4c] sm:$0xff]  ;;  %v6463_v37 = vld [vmem:[%s12631_s1 + $0x2e0] sm:$0xf] }
 0x242   :  { %12814 = vst [vmem:[#allocation169_spill] sm:$0xff] %v9971_v63 }
 0x243   :  { %12815 = vst [vmem:[#allocation170_spill] sm:$0xff] %v9973_v60 }
 0x247   :  { %v9975_v26 = vpop.f32.mrf.mxu2 }
 0x248   :  { %12816 = vst [vmem:[#allocation171_spill] sm:$0xff] %v9975_v26  ;;  %v9982_v57 = vpop.f32.mrf.mxu3  ;;  %v9984_v58 = vpop.f32.mrf.mxu0 }
 0x249   :  { %12817 = vst [vmem:[#allocation172_spill] sm:$0xff] %v9982_v57  ;;  %v9986_v0 = vpop.f32.mrf.mxu1 }
 0x24a   :  { %12818 = vst [vmem:[#allocation173_spill] sm:$0xff] %v9984_v58 }
 0x24b   :  { %12819 = vst [vmem:[#allocation174_spill] sm:$0xff] %v9986_v0  ;;  %6329 = vmatmul.msk.bf16.vlgmr.msrb.gmra.mxu0 %vm254_vm0, %v9980_v27  ;;  %v638_v0 = vadd.f32 %v9258_v59, %v9077_v12  ;;  %v726_v12 = vadd.f32 %v9270_v32, %v9092_v17  ;;  %v6471_v17 = vld [vmem:[%s12631_s1 + $0x2e8] sm:$0xf]  ;;  %v8213_v32 = vld [vmem:[%s12631_s1 + $0x2ec] sm:$0xf0] }
 0x24c   :  { %6336 = vmatmul.msk.bf16.vlgmr.msrb.gmra.mxu1 %vm254_vm0, %v9980_v27  ;;  %6343 = vmatmul.msk.bf16.vlgmr.msrb.gmra.mxu2 %vm254_vm0, %v9980_v27  ;;  %v10054_v7 = vor.u32 %v8214_v21, %v6471_v17  ;;  %v10090_v21 = vld [vmem:[%s12632_s0 + $0x54] sm:$0xff] }
 0x24d   :  { %6350 = vmatmul.msk.bf16.vlgmr.msrb.gmra.mxu3 %vm254_vm0, %v9980_v27 }
 0x24e   :  { %2140 = vmatpush.bf16.msra.mxu2 %v10054_v7 }
 0x24f   :  { %v9996_v26 = vpop.f32.mrf.mxu2 }
 0x250   :  { %12820 = vst [vmem:[#allocation175_spill] sm:$0xff] %v9996_v26  ;;  %v9998_v60 = vpop.f32.mrf.mxu3  ;;  %v10000_v57 = vpop.f32.mrf.mxu0 }
 0x251   :  { %12821 = vst [vmem:[#allocation176_spill] sm:$0xff] %v9998_v60  ;;  %v10002_v58 = vpop.f32.mrf.mxu1 }
 0x252   :  { %12822 = vst [vmem:[#allocation177_spill] sm:$0xff] %v10000_v57 }
 0x253   :  { %12823 = vst [vmem:[#allocation178_spill] sm:$0xff] %v10002_v58 }
 0x257   :  { %v10006_v63 = vpop.f32.mrf.mxu2 }
 0x258   :  { %12824 = vst [vmem:[#allocation179_spill] sm:$0xff] %v10006_v63  ;;  %v10015_v26 = vpop.f32.mrf.mxu3  ;;  %v1380_v60 = vpop.f32.mrf.mxu0  ;;  %v8202_v63 = vld [vmem:[%s12631_s1 + $0x294] sm:$0xf0] }
 0x259   :  { %12825 = vst [vmem:[#allocation180_spill] sm:$0xff] %v10015_v26  ;;  %v10017_v4 = vadd.f32 %v1380_v60, %v638_v0  ;;  %v1424_v57 = vpop.f32.mrf.mxu1 }
 0x25a   :  { %v10019_v58 = vadd.f32 %v1424_v57, %v682_v42  ;;  %v684_v57 = vadd.f32 %v9276_v62, %v9099_v29  ;;  %v6473_v62 = vld [vmem:[%s12631_s1 + $0x2f8] sm:$0xf0] }
 0x25b   :  { %12826 = vst [vmem:[#allocation181_spill] sm:$0xff] %v10017_v4  ;;  %6330 = vmatmul.msk.bf16.gmra.mxu0 %vm254_vm0, %v10011_v23 }
 0x25c   :  { %12827 = vst [vmem:[#allocation182_spill] sm:$0xff] %v10019_v58  ;;  %6337 = vmatmul.msk.bf16.gmra.mxu1 %vm254_vm0, %v10011_v23  ;;  %6344 = vmatmul.msk.bf16.gmra.mxu2 %vm254_vm0, %v10011_v23 }
 0x25d   :  { %6351 = vmatmul.msk.bf16.gmra.mxu3 %vm254_vm0, %v10011_v23 }
 0x25f   :  { %v1468_v59 = vpop.f32.mrf.mxu2 }
 0x260   :  { %v10037_v60 = vadd.f32 %v1468_v59, %v726_v12  ;;  %v1512_v42 = vpop.f32.mrf.mxu3  ;;  %v1382_v0 = vpop.f32.mrf.mxu0  ;;  %v10065_v12 = vor.u32 %v8212_v25, %v6473_v62  ;;  %v687_v25 = vadd.f32 %v9289_v39, %v9114_v45  ;;  %v775_v45 = vadd.f32 %v9301_v28, %v9122_v50  ;;  %v12836_v39 = vld [vmem:[#allocation2_spill] sm:$0xff]  ;;  %v6455_v50 = vld [vmem:[%s12631_s1 + $0x2c8] sm:$0xf]  ;;  %v8210_v28 = vld [vmem:[%s12631_s1 + $0x2d4] sm:$0xf0] }
 0x261   :  { %v10039_v58 = vadd.f32 %v1512_v42, %v770_v16  ;;  %v10041_v4 = vadd.f32 %v1382_v0, %v640_v52  ;;  %v1426_v26 = vpop.f32.mrf.mxu1  ;;  %v10067_v16 = vor.u32 %v8213_v32, %v6463_v37  ;;  %v6465_v52 = vld [vmem:[%s12631_s1 + $0x2f0] sm:$0xf0]  ;;  %v772_v42 = vadd.f32 %v9285_v47, %v9110_v38 }
 0x262   :  { %12828 = vst [vmem:[#allocation183_spill] sm:$0xff] %v10037_v60  ;;  %v10052_v29 = vadd.f32 %v1426_v26, %v684_v57  ;;  %v8211_v26 = vld [vmem:[%s12631_s1 + $0x2e4] sm:$0xf]  ;;  %2184 = vmatpush.bf16.msra.mxu3 %v10065_v12  ;;  %v728_v57 = vadd.f32 %v9278_v34, %v9105_v33  ;;  %v643_v0 = vadd.f32 %v9287_v40, %v9112_v44  ;;  %v6423_v60 = vld [vmem:[%s12631_s1 + $0x288] sm:$0xf] }
 0x263   :  { %12829 = vst [vmem:[#allocation184_spill] sm:$0xff] %v10039_v58  ;;  %v10076_v59 = vor.u32 %v8211_v26, %v6465_v52  ;;  %2052 = vmatpush.bf16.msra.mxu0 %v10067_v16  ;;  %v731_v44 = vadd.f32 %v9299_v36, %v9120_v46  ;;  %v12837_v40 = vld [vmem:[#allocation46_spill] sm:$0xff]  ;;  %v8208_v36 = vld [vmem:[%s12631_s1 + $0x2cc] sm:$0xf]  ;;  %v6417_v58 = vld [vmem:[%s12631_s1 + $0x290] sm:$0xf0] }
 0x264   :  { %12830 = vst [vmem:[#allocation185_spill] sm:$0xff] %v10041_v4  ;;  %v645_v26 = vadd.f32 %v12837_v40, %v12836_v39  ;;  %v12844_v39 = vld [vmem:[#allocation4_spill] sm:$0xff] }
 0x265   :  { %12831 = vst [vmem:[#allocation186_spill] sm:$0xff] %v10052_v29  ;;  %2096 = vmatpush.bf16.msra.mxu1 %v10076_v59  ;;  %v12845_v40 = vld [vmem:[#allocation48_spill] sm:$0xff] }
 0x267   :  { %v1470_v17 = vpop.f32.mrf.mxu2 }
 0x268   :  { %v10094_v62 = vadd.f32 %v1470_v17, %v728_v57  ;;  %v1514_v33 = vpop.f32.mrf.mxu3  ;;  %v1385_v34 = vpop.f32.mrf.mxu0  ;;  %v12838_v57 = vld [vmem:[#allocation3_spill] sm:$0xff] }
 0x269   :  { %v10096_v37 = vadd.f32 %v1514_v33, %v772_v42  ;;  %v10098_v32 = vadd.f32 %v1385_v34, %v643_v0  ;;  %v1429_v38 = vpop.f32.mrf.mxu1  ;;  %v12839_v42 = vld [vmem:[#allocation47_spill] sm:$0xff] }
 0x26a   :  { %12832 = vst [vmem:[#allocation187_spill] sm:$0xff] %v10094_v62  ;;  %v10100_v47 = vadd.f32 %v1429_v38, %v687_v25  ;;  %v689_v0 = vadd.f32 %v12839_v42, %v12838_v57  ;;  %v12847_v57 = vld [vmem:[#allocation49_spill] sm:$0xff] }
 0x26b   :  { %12833 = vst [vmem:[#allocation188_spill] sm:$0xff] %v10096_v37  ;;  %6331 = vmatmul.msk.bf16.gmra.mxu0 %vm254_vm0, %v10090_v21 }
 0x26c   :  { %12834 = vst [vmem:[#allocation189_spill] sm:$0xff] %v10098_v32  ;;  %6338 = vmatmul.msk.bf16.gmra.mxu1 %vm254_vm0, %v10090_v21  ;;  %6345 = vmatmul.msk.bf16.gmra.mxu2 %vm254_vm0, %v10090_v21 }
 0x26d   :  { %12835 = vst [vmem:[#allocation190_spill] sm:$0xff] %v10100_v47  ;;  %6352 = vmatmul.msk.bf16.gmra.mxu3 %vm254_vm0, %v10090_v21 }
 0x26f   :  { %v1473_v52 = vpop.f32.mrf.mxu2 }
 0x270   :  { %v10118_v17 = vadd.f32 %v1473_v52, %v731_v44  ;;  %v1517_v25 = vpop.f32.mrf.mxu3  ;;  %v1387_v33 = vpop.f32.mrf.mxu0  ;;  %v10135_v44 = vor.u32 %v8210_v28, %v6455_v50  ;;  %v12846_v52 = vld [vmem:[#allocation5_spill] sm:$0xff] }
 0x271   :  { %v10120_v34 = vadd.f32 %v1517_v25, %v775_v45  ;;  %v10122_v38 = vadd.f32 %v1387_v33, %v645_v26  ;;  %v1431_v47 = vpop.f32.mrf.mxu1  ;;  %v6457_v45 = vld [vmem:[%s12631_s1 + $0x2d8] sm:$0xf0]  ;;  %v733_v26 = vadd.f32 %v12845_v40, %v12844_v39  ;;  %v777_v42 = vadd.f32 %v12847_v57, %v12846_v52  ;;  %v12849_v25 = vld [vmem:[#allocation50_spill] sm:$0xff] }
 0x272   :  { %12840 = vst [vmem:[#allocation2_spill] sm:$0xff] %v10118_v17  ;;  %v10124_v46 = vadd.f32 %v1431_v47, %v689_v0  ;;  %v10140_v47 = vor.u32 %v8208_v36, %v6457_v45  ;;  %2141 = vmatpush.bf16.msra.mxu2 %v10135_v44  ;;  %v12848_v0 = vld [vmem:[#allocation6_spill] sm:$0xff]  ;;  %v12850_v36 = vld [vmem:[#allocation7_spill] sm:$0xff] }
 0x273   :  { %12841 = vst [vmem:[#allocation46_spill] sm:$0xff] %v10120_v34  ;;  %v648_v33 = vadd.f32 %v12849_v25, %v12848_v0  ;;  %v10153_v28 = vld [vmem:[%s12632_s0 + $0x5c] sm:$0xff]  ;;  %v12851_v45 = vld [vmem:[#allocation51_spill] sm:$0xff]  ;;  %v8209_v0 = vld [vmem:[%s12631_s1 + $0x2cc] sm:$0xf0] }
 0x274   :  { %12842 = vst [vmem:[#allocation3_spill] sm:$0xff] %v10122_v38  ;;  %2185 = vmatpush.bf16.msra.mxu3 %v10140_v47  ;;  %v6447_v57 = vld [vmem:[%s12631_s1 + $0x2c0] sm:$0xf] }
 0x275   :  { %12843 = vst [vmem:[#allocation47_spill] sm:$0xff] %v10124_v46  ;;  %v692_v46 = vadd.f32 %v12851_v45, %v12850_v36  ;;  %v12857_v36 = vld [vmem:[#allocation52_spill] sm:$0xff] }
 0x277   :  { %v1475_v50 = vpop.f32.mrf.mxu2 }
 0x278   :  { %v10157_v38 = vadd.f32 %v1475_v50, %v733_v26  ;;  %v1519_v39 = vpop.f32.mrf.mxu3  ;;  %v1390_v40 = vpop.f32.mrf.mxu0  ;;  %v8207_v26 = vld [vmem:[%s12631_s1 + $0x2c4] sm:$0xf]  ;;  %v10174_v50 = vor.u32 %v8209_v0, %v6447_v57 }
 0x279   :  { %v10159_v34 = vadd.f32 %v1519_v39, %v777_v42  ;;  %v10161_v17 = vadd.f32 %v1390_v40, %v648_v33  ;;  %v1434_v52 = vpop.f32.mrf.mxu1  ;;  %v6449_v42 = vld [vmem:[%s12631_s1 + $0x2d0] sm:$0xf0]  ;;  %v12858_v39 = vld [vmem:[#allocation9_spill] sm:$0xff]  ;;  %v12860_v57 = vld [vmem:[#allocation10_spill] sm:$0xff] }
 0x27a   :  { %12852 = vst [vmem:[#allocation4_spill] sm:$0xff] %v10157_v38  ;;  %v10172_v25 = vadd.f32 %v1434_v52, %v692_v46  ;;  %v10181_v33 = vor.u32 %v8207_v26, %v6449_v42  ;;  %2053 = vmatpush.bf16.msra.mxu0 %v10174_v50  ;;  %v12856_v46 = vld [vmem:[#allocation8_spill] sm:$0xff]  ;;  %v12859_v40 = vld [vmem:[#allocation53_spill] sm:$0xff]  ;;  %v12861_v0 = vld [vmem:[#allocation54_spill] sm:$0xff] }
 0x27b   :  { %12853 = vst [vmem:[#allocation48_spill] sm:$0xff] %v10159_v34  ;;  %6332 = vmatmul.msk.bf16.gmra.mxu0 %vm254_vm0, %v10153_v28  ;;  %v736_v45 = vadd.f32 %v12857_v36, %v12856_v46  ;;  %v780_v52 = vadd.f32 %v12859_v40, %v12858_v39  ;;  %v650_v26 = vadd.f32 %v12861_v0, %v12860_v57  ;;  %v6439_v39 = vld [vmem:[%s12631_s1 + $0x2a8] sm:$0xf]  ;;  %v8206_v40 = vld [vmem:[%s12631_s1 + $0x2b4] sm:$0xf0] }
 0x27c   :  { %12854 = vst [vmem:[#allocation5_spill] sm:$0xff] %v10161_v17  ;;  %6339 = vmatmul.msk.bf16.gmra.mxu1 %vm254_vm0, %v10153_v28  ;;  %6346 = vmatmul.msk.bf16.gmra.mxu2 %vm254_vm0, %v10153_v28  ;;  %v12863_v17 = vld [vmem:[#allocation55_spill] sm:$0xff]  ;;  %v12870_v57 = vld [vmem:[#allocation13_spill] sm:$0xff] }
 0x27d   :  { %12855 = vst [vmem:[#allocation49_spill] sm:$0xff] %v10172_v25  ;;  %6353 = vmatmul.msk.bf16.gmra.mxu3 %vm254_vm0, %v10153_v28  ;;  %2097 = vmatpush.bf16.msra.mxu1 %v10181_v33  ;;  %v12862_v25 = vld [vmem:[#allocation11_spill] sm:$0xff]  ;;  %v12871_v0 = vld [vmem:[#allocation57_spill] sm:$0xff] }
 0x27e   :  { %v694_v34 = vadd.f32 %v12863_v17, %v12862_v25  ;;  %v8204_v17 = vld [vmem:[%s12631_s1 + $0x2ac] sm:$0xf]  ;;  %v10216_v25 = vor.u32 %v8206_v40, %v6439_v39 }
 0x27f   :  { %v1478_v42 = vpop.f32.mrf.mxu2 }
 0x280   :  { %v10199_v38 = vadd.f32 %v1478_v42, %v736_v45  ;;  %v1522_v32 = vpop.f32.mrf.mxu3  ;;  %v1392_v37 = vpop.f32.mrf.mxu0  ;;  %2142 = vmatpush.bf16.msra.mxu2 %v10216_v25  ;;  %v12869_v45 = vld [vmem:[#allocation56_spill] sm:$0xff]  ;;  %v12872_v42 = vld [vmem:[#allocation14_spill] sm:$0xff] }
 0x281   :  { %v10201_v62 = vadd.f32 %v1522_v32, %v780_v52  ;;  %v10203_v29 = vadd.f32 %v1392_v37, %v650_v26  ;;  %v1436_v46 = vpop.f32.mrf.mxu1  ;;  %v6441_v37 = vld [vmem:[%s12631_s1 + $0x2b8] sm:$0xf0]  ;;  %v782_v26 = vadd.f32 %v12871_v0, %v12870_v57 }
 0x282   :  { %12864 = vst [vmem:[#allocation6_spill] sm:$0xff] %v10199_v38  ;;  %v10205_v36 = vadd.f32 %v1436_v46, %v694_v34  ;;  %v10221_v32 = vor.u32 %v8204_v17, %v6441_v37  ;;  %v12868_v34 = vld [vmem:[#allocation12_spill] sm:$0xff]  ;;  %v12873_v46 = vld [vmem:[#allocation58_spill] sm:$0xff]  ;;  %v12875_v17 = vld [vmem:[#allocation15_spill] sm:$0xff] }
 0x283   :  { %12865 = vst [vmem:[#allocation50_spill] sm:$0xff] %v10201_v62  ;;  %v738_v52 = vadd.f32 %v12869_v45, %v12868_v34  ;;  %v653_v39 = vadd.f32 %v12873_v46, %v12872_v42  ;;  %v12876_v37 = vld [vmem:[#allocation59_spill] sm:$0xff]  ;;  %v6431_v42 = vld [vmem:[%s12631_s1 + $0x2a0] sm:$0xf]  ;;  %v8205_v46 = vld [vmem:[%s12631_s1 + $0x2ac] sm:$0xf0] }
 0x284   :  { %12866 = vst [vmem:[#allocation7_spill] sm:$0xff] %v10203_v29  ;;  %2186 = vmatpush.bf16.msra.mxu3 %v10221_v32  ;;  %v697_v29 = vadd.f32 %v12876_v37, %v12875_v17  ;;  %v12882_v17 = vld [vmem:[#allocation60_spill] sm:$0xff] }
 0x285   :  { %12867 = vst [vmem:[#allocation51_spill] sm:$0xff] %v10205_v36  ;;  %v10234_v36 = vld [vmem:[%s12632_s0 + $0x64] sm:$0xff] }
 0x286   :  { %12874 = vst [vmem:[#allocation8_spill] sm:$0xff] %v10234_v36 }
 0x287   :  { %v1480_v40 = vpop.f32.mrf.mxu2 }
 0x288   :  { %v10238_v62 = vadd.f32 %v1480_v40, %v738_v52  ;;  %v1524_v34 = vpop.f32.mrf.mxu3  ;;  %v1395_v45 = vpop.f32.mrf.mxu0  ;;  %v8203_v52 = vld [vmem:[%s12631_s1 + $0x2a4] sm:$0xf]  ;;  %v12881_v40 = vld [vmem:[#allocation16_spill] sm:$0xff] }
 0x289   :  { %v10240_v38 = vadd.f32 %v1524_v34, %v782_v26  ;;  %v10242_v4 = vadd.f32 %v1395_v45, %v653_v39  ;;  %v1439_v57 = vpop.f32.mrf.mxu1  ;;  %v10257_v26 = vor.u32 %v8205_v46, %v6431_v42  ;;  %v741_v37 = vadd.f32 %v12882_v17, %v12881_v40  ;;  %v12883_v34 = vld [vmem:[#allocation17_spill] sm:$0xff]  ;;  %v12885_v42 = vld [vmem:[#allocation18_spill] sm:$0xff]  ;;  %v12887_v17 = vld [vmem:[#allocation19_spill] sm:$0xff] }
 0x28a   :  { %12877 = vst [vmem:[#allocation52_spill] sm:$0xff] %v10238_v62  ;;  %v10244_v0 = vadd.f32 %v1439_v57, %v697_v29  ;;  %v6433_v29 = vld [vmem:[%s12631_s1 + $0x2b0] sm:$0xf0]  ;;  %v12884_v45 = vld [vmem:[#allocation61_spill] sm:$0xff]  ;;  %v12886_v46 = vld [vmem:[#allocation62_spill] sm:$0xff] }
 0x28b   :  { %12878 = vst [vmem:[#allocation9_spill] sm:$0xff] %v10240_v38  ;;  %6333 = vmatmul.msk.bf16.gmra.mxu0 %vm254_vm0, %v10234_v36  ;;  %v10266_v39 = vor.u32 %v8203_v52, %v6433_v29  ;;  %v785_v57 = vadd.f32 %v12884_v45, %v12883_v34  ;;  %v6415_v52 = vld [vmem:[%s12631_s1 + $0x280] sm:$0xf]  ;;  %v8201_v29 = vld [vmem:[%s12631_s1 + $0x28c] sm:$0xf0]  ;;  %v12888_v38 = vld [vmem:[#allocation63_spill] sm:$0xff] }
 0x28c   :  { %12879 = vst [vmem:[#allocation53_spill] sm:$0xff] %v10242_v4  ;;  %6340 = vmatmul.msk.bf16.gmra.mxu1 %vm254_vm0, %v10234_v36  ;;  %6347 = vmatmul.msk.bf16.gmra.mxu2 %vm254_vm0, %v10234_v36  ;;  %v8199_v40 = vld [vmem:[%s12631_s1 + $0x284] sm:$0xf]  ;;  %v699_v62 = vadd.f32 %v12888_v38, %v12887_v17  ;;  %v6425_v17 = vld [vmem:[%s12631_s1 + $0x298] sm:$0xf0] }
 0x28d   :  { %12880 = vst [vmem:[#allocation10_spill] sm:$0xff] %v10244_v0  ;;  %6354 = vmatmul.msk.bf16.gmra.mxu3 %vm254_vm0, %v10234_v36  ;;  %2054 = vmatpush.bf16.msra.mxu0 %v10257_v26  ;;  %v655_v0 = vadd.f32 %v12886_v46, %v12885_v42  ;;  %v10291_v46 = vor.u32 %v8201_v29, %v6415_v52  ;;  %v8200_v29 = vld [vmem:[%s12631_s1 + $0x28c] sm:$0xf] }
 0x28e   :  { %2098 = vmatpush.bf16.msra.mxu1 %v10266_v39  ;;  %v10308_v52 = vor.u32 %v8202_v63, %v6423_v60  ;;  %v8197_v63 = vld [vmem:[%s12631_s1 + $0x26c] sm:$0xf0]  ;;  %v8195_v60 = vld [vmem:[%s12631_s1 + $0x264] sm:$0xf] }
 0x28f   :  { %v1483_v4 = vpop.f32.mrf.mxu2 }
 0x290   :  { %v10289_v34 = vadd.f32 %v1483_v4, %v741_v37  ;;  %v1527_v45 = vpop.f32.mrf.mxu3  ;;  %v1397_v42 = vpop.f32.mrf.mxu0  ;;  %v10306_v37 = vor.u32 %v8199_v40, %v6417_v58  ;;  %v6399_v58 = vld [vmem:[%s12631_s1 + $0x260] sm:$0xf]  ;;  %2143 = vmatpush.bf16.msra.mxu2 %v10308_v52  ;;  %v6407_v40 = vld [vmem:[%s12631_s1 + $0x268] sm:$0xf] }
 0x291   :  { %v10302_v49 = vadd.f32 %v1527_v45, %v785_v57  ;;  %v10304_v4 = vadd.f32 %v1397_v42, %v655_v0  ;;  %v1441_v38 = vpop.f32.mrf.mxu1  ;;  %2055 = vmatpush.bf16.msra.mxu0 %v10291_v46  ;;  %v10319_v57 = vor.u32 %v8200_v29, %v6425_v17  ;;  %v6401_v0 = vld [vmem:[%s12631_s1 + $0x270] sm:$0xf0]  ;;  %v8198_v45 = vld [vmem:[%s12631_s1 + $0x274] sm:$0xf0]  ;;  %v8196_v29 = vld [vmem:[%s12631_s1 + $0x26c] sm:$0xf] }
 0x292   :  { %12889 = vst [vmem:[#allocation54_spill] sm:$0xff] %v10289_v34  ;;  %v10316_v34 = vadd.f32 %v1441_v38, %v699_v62  ;;  %2099 = vmatpush.bf16.msra.mxu1 %v10306_v37  ;;  %v10332_v62 = vor.u32 %v8197_v63, %v6399_v58  ;;  %v10344_v42 = vor.u32 %v8195_v60, %v6401_v0  ;;  %v6409_v17 = vld [vmem:[%s12631_s1 + $0x278] sm:$0xf0]  ;;  %v12893_v63 = vld [vmem:[#allocation20_spill] sm:$0xff] }
 0x293   :  { %12890 = vst [vmem:[#allocation11_spill] sm:$0xff] %v10302_v49  ;;  %2187 = vmatpush.bf16.msra.mxu3 %v10319_v57  ;;  %v10346_v38 = vor.u32 %v8198_v45, %v6407_v40  ;;  %v10354_v58 = vor.u32 %v8196_v29, %v6409_v17  ;;  %v10361_v60 = vld [vmem:[%s12632_s0 + $0x6c] sm:$0xff]  ;;  %v12895_v0 = vld [vmem:[#allocation21_spill] sm:$0xff]  ;;  %v12897_v49 = vld [vmem:[#allocation22_spill] sm:$0xff] }
 0x294   :  { %12891 = vst [vmem:[#allocation55_spill] sm:$0xff] %v10304_v4  ;;  %v12896_v40 = vld [vmem:[#allocation65_spill] sm:$0xff]  ;;  %v658_v10 = vadd.f32 %v12898_v22, %v12897_v49  ;;  %v8193_v29 = vld [vmem:[%s12631_s1 + $0x24c] sm:$0xf0]  ;;  %v8191_v17 = vld [vmem:[%s12631_s1 + $0x244] sm:$0xf] }
 0x295   :  { %12892 = vst [vmem:[#allocation12_spill] sm:$0xff] %v10316_v34  ;;  %v12894_v34 = vld [vmem:[#allocation64_spill] sm:$0xff]  ;;  %2056 = vmatpush.bf16.msra.mxu0 %v10332_v62  ;;  %v787_v45 = vadd.f32 %v12896_v40, %v12895_v0  ;;  %2144 = vmatpush.bf16.msra.mxu2 %v10346_v38  ;;  %v12900_v0 = vld [vmem:[#allocation67_spill] sm:$0xff] }
 0x296   :  { %v743_v4 = vadd.f32 %v12894_v34, %v12893_v63  ;;  %2100 = vmatpush.bf16.msra.mxu1 %v10344_v42  ;;  %v6383_v34 = vld [vmem:[%s12631_s1 + $0x240] sm:$0xf]  ;;  %v12899_v63 = vld [vmem:[#allocation23_spill] sm:$0xff] }
 0x297   :  { %v1485_v15 = vpop.f32.mrf.mxu2  ;;  %v702_v49 = vadd.f32 %v12900_v0, %v12899_v63  ;;  %2188 = vmatpush.bf16.msra.mxu3 %v10354_v58  ;;  %v10384_v19 = vor.u32 %v8193_v29, %v6383_v34  ;;  %v8194_v63 = vld [vmem:[%s12631_s1 + $0x254] sm:$0xf0]  ;;  %v8192_v29 = vld [vmem:[%s12631_s1 + $0x24c] sm:$0xf] }
 0x298   :  { %v10381_v22 = vadd.f32 %v1485_v15, %v743_v4  ;;  %v1529_v40 = vpop.f32.mrf.mxu3  ;;  %v1400_v36 = vpop.f32.mrf.mxu0  ;;  %v10401_v34 = vor.u32 %v8194_v63, %v6391_v53 }
 0x299   :  { %v10395_v15 = vadd.f32 %v1529_v40, %v787_v45  ;;  %v10397_v4 = vadd.f32 %v1400_v36, %v658_v10  ;;  %v1444_v0 = vpop.f32.mrf.mxu1  ;;  %2057 = vmatpush.bf16.msra.mxu0 %v10384_v19  ;;  %v10412_v45 = vor.u32 %v8192_v29, %v6393_v3  ;;  %v12905_v10 = vld [vmem:[#allocation24_spill] sm:$0xff]  ;;  %v12907_v3 = vld [vmem:[#allocation25_spill] sm:$0xff]  ;;  %v12910_v40 = vld [vmem:[#allocation70_spill] sm:$0xff] }
 0x29a   :  { %12901 = vst [vmem:[#allocation56_spill] sm:$0xff] %v10381_v22  ;;  %v10399_v22 = vor.u32 %v8191_v17, %v6385_v41  ;;  %v10409_v6 = vadd.f32 %v1444_v0, %v702_v49  ;;  %2145 = vmatpush.bf16.msra.mxu2 %v10401_v34  ;;  %v12906_v41 = vld [vmem:[#allocation68_spill] sm:$0xff]  ;;  %v12908_v36 = vld [vmem:[#allocation69_spill] sm:$0xff]  ;;  %v12909_v49 = vld [vmem:[#allocation26_spill] sm:$0xff] }
 0x29b   :  { %12902 = vst [vmem:[#allocation13_spill] sm:$0xff] %v10395_v15  ;;  %6334 = vmatmul.msk.bf16.gmra.mxu0 %vm254_vm0, %v10361_v60  ;;  %v746_v53 = vadd.f32 %v12906_v41, %v12905_v10  ;;  %2189 = vmatpush.bf16.msra.mxu3 %v10412_v45  ;;  %v790_v17 = vadd.f32 %v12908_v36, %v12907_v3  ;;  %v12911_v29 = vld [vmem:[#allocation27_spill] sm:$0xff] }
 0x29c   :  { %12903 = vst [vmem:[#allocation57_spill] sm:$0xff] %v10397_v4  ;;  %2101 = vmatpush.bf16.msra.mxu1 %v10399_v22  ;;  %6348 = vmatmul.msk.bf16.gmra.mxu2 %vm254_vm0, %v10361_v60  ;;  %v660_v63 = vadd.f32 %v12910_v40, %v12909_v49  ;;  %v12917_v40 = vld [vmem:[#allocation30_spill] sm:$0xff] }
 0x29d   :  { %12904 = vst [vmem:[#allocation14_spill] sm:$0xff] %v10409_v6  ;;  %6341 = vmatmul.msk.bf16.gmra.mxu1 %vm254_vm0, %v10361_v60  ;;  %6355 = vmatmul.msk.bf16.gmra.mxu3 %vm254_vm0, %v10361_v60  ;;  %v12912_v6 = vld [vmem:[#allocation71_spill] sm:$0xff] }
 0x29e   :  { %2442 = vmatpush.bf16.msrb.mxu2 %v10054_v7  ;;  %2354 = vmatpush.bf16.msrb.mxu0 %v10067_v16  ;;  %v704_v4 = vadd.f32 %v12912_v6, %v12911_v29  ;;  %v12913_v6 = vld [vmem:[#allocation28_spill] sm:$0xff] }
 0x29f   :  { %v1488_v0 = vpop.f32.mrf.mxu2  ;;  %2486 = vmatpush.bf16.msrb.mxu3 %v10065_v12  ;;  %v12914_v12 = vld [vmem:[#allocation72_spill] sm:$0xff] }
 0x2a0   :  { %v10436_v15 = vadd.f32 %v1488_v0, %v746_v53  ;;  %v1532_v10 = vpop.f32.mrf.mxu3  ;;  %v1402_v41 = vpop.f32.mrf.mxu0  ;;  %2398 = vmatpush.bf16.msrb.mxu1 %v10076_v59  ;;  %v748_v16 = vadd.f32 %v12914_v12, %v12913_v6  ;;  %v12915_v59 = vld [vmem:[#allocation29_spill] sm:$0xff] }
 0x2a1   :  { %v10439_v7 = vadd.f32 %v1532_v10, %v790_v17  ;;  %v10441_v3 = vadd.f32 %v1402_v41, %v660_v63  ;;  %v1446_v36 = vpop.f32.mrf.mxu1  ;;  %v12916_v53 = vld [vmem:[#allocation73_spill] sm:$0xff]  ;;  %v12918_v63 = vld [vmem:[#allocation74_spill] sm:$0xff] }
 0x2a2   :  { %v10443_v49 = vadd.f32 %v1446_v36, %v704_v4  ;;  %2443 = vmatpush.bf16.msrb.mxu2 %v10135_v44  ;;  %2355 = vmatpush.bf16.msrb.mxu0 %v10174_v50  ;;  %v792_v17 = vadd.f32 %v12916_v53, %v12915_v59  ;;  %v663_v4 = vadd.f32 %v12918_v63, %v12917_v40  ;;  %v10459_v44 = vld [vmem:[%s12632_s0 + $0x74] sm:$0xff]  ;;  %v12920_v50 = vld [vmem:[#allocation75_spill] sm:$0xff]  ;;  %v12925_v59 = vld [vmem:[#allocation34_spill] sm:$0xff] }
 0x2a3   :  { %2487 = vmatpush.bf16.msrb.mxu3 %v10140_v47  ;;  %v12919_v47 = vld [vmem:[#allocation31_spill] sm:$0xff]  ;;  %v12926_v53 = vld [vmem:[#allocation78_spill] sm:$0xff] }
 0x2a4   :  { %2399 = vmatpush.bf16.msrb.mxu1 %v10181_v33  ;;  %v707_v33 = vadd.f32 %v12920_v50, %v12919_v47  ;;  %v12927_v63 = vld [vmem:[#allocation35_spill] sm:$0xff] }
 0x2a6   :  { %2444 = vmatpush.bf16.msrb.mxu2 %v10216_v25  ;;  %2356 = vmatpush.bf16.msrb.mxu0 %v10257_v26  ;;  %v12922_v26 = vld [vmem:[#allocation76_spill] sm:$0xff] }
 0x2a7   :  { %v1490_v0 = vpop.f32.mrf.mxu2  ;;  %2488 = vmatpush.bf16.msrb.mxu3 %v10221_v32  ;;  %v12921_v32 = vld [vmem:[#allocation32_spill] sm:$0xff] }
 0x2a8   :  { %v10465_v25 = vadd.f32 %v1490_v0, %v748_v16  ;;  %v1534_v29 = vpop.f32.mrf.mxu3  ;;  %v1405_v10 = vpop.f32.mrf.mxu0  ;;  %2400 = vmatpush.bf16.msrb.mxu1 %v10266_v39  ;;  %v751_v39 = vadd.f32 %v12922_v26, %v12921_v32  ;;  %v12931_v32 = vld [vmem:[#allocation37_spill] sm:$0xff] }
 0x2a9   :  { %v10468_v41 = vadd.f32 %v1534_v29, %v792_v17  ;;  %v10470_v36 = vadd.f32 %v1405_v10, %v663_v4  ;;  %v1449_v6 = vpop.f32.mrf.mxu1  ;;  %v665_v17 = vadd.f32 %v12926_v53, %v12925_v59  ;;  %v12928_v4 = vld [vmem:[#allocation79_spill] sm:$0xff]  ;;  %v12930_v10 = vld [vmem:[#allocation80_spill] sm:$0xff]  ;;  %v12932_v26 = vld [vmem:[#allocation81_spill] sm:$0xff] }
 0x2aa   :  { %v10472_v12 = vadd.f32 %v1449_v6, %v707_v33  ;;  %2445 = vmatpush.bf16.msrb.mxu2 %v10308_v52  ;;  %2357 = vmatpush.bf16.msrb.mxu0 %v10291_v46  ;;  %v12923_v52 = vld [vmem:[#allocation33_spill] sm:$0xff]  ;;  %v709_v0 = vadd.f32 %v12928_v4, %v12927_v63  ;;  %v12935_v59 = vld [vmem:[#allocation39_spill] sm:$0xff]  ;;  %v12937_v4 = vld [vmem:[#allocation40_spill] sm:$0xff] }
 0x2ab   :  { %6335 = vmatmul.msk.bf16.gmra.mxu0 %vm254_vm0, %v10459_v44  ;;  %2489 = vmatpush.bf16.msrb.mxu3 %v10319_v57  ;;  %v12924_v57 = vld [vmem:[#allocation77_spill] sm:$0xff] }
 0x2ac   :  { %6349 = vmatmul.msk.bf16.gmra.mxu2 %vm254_vm0, %v10459_v44  ;;  %2401 = vmatpush.bf16.msrb.mxu1 %v10306_v37  ;;  %v795_v16 = vadd.f32 %v12924_v57, %v12923_v52  ;;  %v12933_v52 = vld [vmem:[#allocation38_spill] sm:$0xff] }
 0x2ad   :  { %6342 = vmatmul.msk.bf16.gmra.mxu1 %vm254_vm0, %v10459_v44  ;;  %6356 = vmatmul.msk.bf16.gmra.mxu3 %vm254_vm0, %v10459_v44 }
 0x2ae   :  { %2446 = vmatpush.bf16.msrb.mxu2 %v10346_v38  ;;  %2358 = vmatpush.bf16.msrb.mxu0 %v10332_v62  ;;  %v12934_v62 = vld [vmem:[#allocation82_spill] sm:$0xff] }
 0x2af   :  { %v1493_v40 = vpop.f32.mrf.mxu2  ;;  %2490 = vmatpush.bf16.msrb.mxu3 %v10354_v58  ;;  %v12929_v58 = vld [vmem:[#allocation36_spill] sm:$0xff]  ;;  %v668_v57 = vadd.f32 %v12934_v62, %v12933_v52  ;;  %v12944_v52 = vld [vmem:[#allocation87_spill] sm:$0xff] }
 0x2b0   :  { %v10496_v46 = vadd.f32 %v1493_v40, %v751_v39  ;;  %v1537_v47 = vpop.f32.mrf.mxu3  ;;  %v1407_v50 = vpop.f32.mrf.mxu0  ;;  %2402 = vmatpush.bf16.msrb.mxu1 %v10344_v42  ;;  %v753_v6 = vadd.f32 %v12930_v10, %v12929_v58  ;;  %v797_v39 = vadd.f32 %v12932_v26, %v12931_v32  ;;  %v12936_v42 = vld [vmem:[#allocation83_spill] sm:$0xff]  ;;  %v12941_v10 = vld [vmem:[#allocation42_spill] sm:$0xff] }
 0x2b1   :  { %v10498_v33 = vadd.f32 %v1537_v47, %v795_v16  ;;  %v10500_v37 = vadd.f32 %v1407_v50, %v665_v17  ;;  %v1451_v38 = vpop.f32.mrf.mxu1  ;;  %v712_v53 = vadd.f32 %v12936_v42, %v12935_v59  ;;  %v12939_v50 = vld [vmem:[#allocation41_spill] sm:$0xff] }
 0x2b2   :  { %v10503_v29 = vadd.f32 %v1451_v38, %v709_v0  ;;  %2447 = vmatpush.bf16.msrb.mxu2 %v10401_v34  ;;  %2359 = vmatpush.bf16.msrb.mxu0 %v10384_v19  ;;  %v12938_v0 = vld [vmem:[#allocation84_spill] sm:$0xff]  ;;  %v12940_v38 = vld [vmem:[#allocation85_spill] sm:$0xff] }
 0x2b3   :  { %2491 = vmatpush.bf16.msrb.mxu3 %v10412_v45  ;;  %v756_v47 = vadd.f32 %v12938_v0, %v12937_v4  ;;  %v800_v58 = vadd.f32 %v12940_v38, %v12939_v50  ;;  %v12947_v0 = vld [vmem:[#allocation45_spill] sm:$0xff] }
 0x2b4   :  { %2403 = vmatpush.bf16.msrb.mxu1 %v10399_v22  ;;  %v12948_v50 = vld [vmem:[#allocation89_spill] sm:$0xff] }
 0x2b5   :  { %v802_v38 = vadd.f32 %v12948_v50, %v12947_v0 }
 0x2b7   :  { %v1495_v16 = vpop.f32.mrf.mxu2 }
 0x2b8   :  { %v10518_v34 = vadd.f32 %v1495_v16, %v753_v6  ;;  %v1539_v45 = vpop.f32.mrf.mxu3  ;;  %v1410_v17 = vpop.f32.mrf.mxu0  ;;  %v12942_v6 = vld [vmem:[#allocation86_spill] sm:$0xff] }
 0x2b9   :  { %v10520_v19 = vadd.f32 %v1539_v45, %v797_v39  ;;  %v10522_v40 = vadd.f32 %v1410_v17, %v668_v57  ;;  %v1454_v63 = vpop.f32.mrf.mxu1  ;;  %v670_v32 = vadd.f32 %v12942_v6, %v12941_v10  ;;  %v12943_v39 = vld [vmem:[#allocation43_spill] sm:$0xff]  ;;  %v12945_v17 = vld [vmem:[#allocation44_spill] sm:$0xff]  ;;  %v12949_v10 = vld [vmem:[#allocation90_spill] sm:$0xff] }
 0x2ba   :  { %v10524_v22 = vadd.f32 %v1454_v63, %v712_v53  ;;  %v714_v62 = vadd.f32 %v12944_v52, %v12943_v39  ;;  %v12946_v63 = vld [vmem:[#allocation88_spill] sm:$0xff]  ;;  %v1060_v6 = vadd.f32 %v9835_v55, %v12949_v10 }
 0x2bb   :  { %6477 = vmatmul.msk.bf16.vlgmr.msra.gmra.mxu0 %vm254_vm0, %v9980_v27  ;;  %v758_v4 = vadd.f32 %v12946_v63, %v12945_v17  ;;  %v12951_v55 = vld [vmem:[#allocation92_spill] sm:$0xff]  ;;  %v12952_v17 = vld [vmem:[#allocation93_spill] sm:$0xff] }
 0x2bc   :  { %6491 = vmatmul.msk.bf16.vlgmr.msra.gmra.mxu2 %vm254_vm0, %v9980_v27  ;;  %v1192_v63 = vadd.f32 %v9849_v11, %v12952_v17  ;;  %v12962_v17 = vld [vmem:[#allocation99_spill] sm:$0xff] }
 0x2bd   :  { %6484 = vmatmul.msk.bf16.vlgmr.msra.gmra.mxu1 %vm254_vm0, %v9980_v27  ;;  %6498 = vmatmul.msk.bf16.vlgmr.msra.gmra.mxu3 %vm254_vm0, %v9980_v27 }
 0x2bf   :  { %v1498_v26 = vpop.f32.mrf.mxu2 }
 0x2c0   :  { %v10542_v57 = vadd.f32 %v1498_v26, %v756_v47  ;;  %v1542_v16 = vpop.f32.mrf.mxu3  ;;  %v1412_v59 = vpop.f32.mrf.mxu0  ;;  %v12950_v26 = vld [vmem:[#allocation91_spill] sm:$0xff] }
 0x2c1   :  { %v10544_v42 = vadd.f32 %v1542_v16, %v800_v58  ;;  %v10546_v27 = vadd.f32 %v1412_v59, %v670_v32  ;;  %v1456_v53 = vpop.f32.mrf.mxu1  ;;  %v1104_v39 = vadd.f32 %v9837_v51, %v12950_v26  ;;  %v1148_v51 = vadd.f32 %v9847_v48, %v12951_v55  ;;  %v12961_v55 = vld [vmem:[#allocation98_spill] sm:$0xff] }
 0x2c2   :  { %v10548_v45 = vadd.f32 %v1456_v53, %v714_v62 }
 0x2c7   :  { %v1500_v47 = vpop.f32.mrf.mxu2 }
 0x2c8   :  { %v10558_v58 = vadd.f32 %v1500_v47, %v758_v4  ;;  %v1544_v32 = vpop.f32.mrf.mxu3  ;;  %v1682_v52 = vpop.f32.mrf.mxu0  ;;  %v12953_v4 = vld [vmem:[#allocation94_spill] sm:$0xff] }
 0x2c9   :  { %v10560_v16 = vadd.f32 %v1544_v32, %v802_v38  ;;  %v10562_v62 = vadd.f32 %v1682_v52, %v1060_v6  ;;  %v1726_v59 = vpop.f32.mrf.mxu1  ;;  %v1062_v0 = vadd.f32 %v9851_v54, %v12953_v4  ;;  %v12954_v38 = vld [vmem:[#allocation95_spill] sm:$0xff]  ;;  %v12959_v52 = vld [vmem:[#allocation96_spill] sm:$0xff]  ;;  %v1109_v4 = vadd.f32 %v9861_v31, %v12962_v17  ;;  %v12968_v31 = vld [vmem:[#allocation101_spill] sm:$0xff] }
 0x2ca   :  { %v10564_v53 = vadd.f32 %v1726_v59, %v1104_v39  ;;  %v1106_v10 = vadd.f32 %v9853_v9, %v12954_v38  ;;  %v1150_v11 = vadd.f32 %v9855_v61, %v12959_v52  ;;  %v12960_v59 = vld [vmem:[#allocation97_spill] sm:$0xff]  ;;  %v1065_v9 = vadd.f32 %v9859_v14, %v12961_v55 }
 0x2cb   :  { %6478 = vmatmul.msk.bf16.gmra.mxu0 %vm254_vm0, %v10011_v23  ;;  %v1194_v54 = vadd.f32 %v9857_v5, %v12960_v59  ;;  %v12967_v5 = vld [vmem:[#allocation100_spill] sm:$0xff]  ;;  %v12970_v59 = vld [vmem:[#allocation103_spill] sm:$0xff] }
 0x2cc   :  { %6492 = vmatmul.msk.bf16.gmra.mxu2 %vm254_vm0, %v10011_v23  ;;  %v1153_v14 = vadd.f32 %v9871_v18, %v12967_v5 }
 0x2cd   :  { %6485 = vmatmul.msk.bf16.gmra.mxu1 %vm254_vm0, %v10011_v23  ;;  %6499 = vmatmul.msk.bf16.gmra.mxu3 %vm254_vm0, %v10011_v23 }
 0x2cf   :  { %v1770_v50 = vpop.f32.mrf.mxu2 }
 0x2d0   :  { %v10582_v6 = vadd.f32 %v1770_v50, %v1148_v51  ;;  %v1814_v47 = vpop.f32.mrf.mxu3  ;;  %v1684_v26 = vpop.f32.mrf.mxu0 }
 0x2d1   :  { %v10584_v39 = vadd.f32 %v1814_v47, %v1192_v63  ;;  %v10586_v23 = vadd.f32 %v1684_v26, %v1062_v0  ;;  %v1728_v32 = vpop.f32.mrf.mxu1  ;;  %v1197_v26 = vadd.f32 %v9873_v1, %v12968_v31 }
 0x2d2   :  { %12955 = vst [vmem:[#allocation58_spill] sm:$0xff] %v10582_v6  ;;  %v10588_v48 = vadd.f32 %v1728_v32, %v1106_v10  ;;  %v12969_v32 = vld [vmem:[#allocation102_spill] sm:$0xff] }
 0x2d3   :  { %12956 = vst [vmem:[#allocation15_spill] sm:$0xff] %v10584_v39  ;;  %v1067_v52 = vadd.f32 %v9875_v24, %v12969_v32  ;;  %v6597_v39 = vld [vmem:[%s12631_s1 + $0x318] sm:$0xf0]  ;;  %v13164_v6 = vld [vmem:[#allocation14_spill] sm:$0xff] }
 0x2d4   :  { %12957 = vst [vmem:[#allocation59_spill] sm:$0xff] %v10586_v23  ;;  %v8223_v23 = vld [vmem:[%s12631_s1 + $0x30c] sm:$0xf] }
 0x2d5   :  { %12958 = vst [vmem:[#allocation16_spill] sm:$0xff] %v10588_v48 }
 0x2d7   :  { %v1772_v51 = vpop.f32.mrf.mxu2 }
 0x2d8   :  { %v10598_v63 = vadd.f32 %v1772_v51, %v1150_v11  ;;  %v1816_v0 = vpop.f32.mrf.mxu3  ;;  %v1687_v50 = vpop.f32.mrf.mxu0 }
 0x2d9   :  { %v10600_v38 = vadd.f32 %v1816_v0, %v1194_v54  ;;  %v10602_v10 = vadd.f32 %v1687_v50, %v1065_v9  ;;  %v1731_v47 = vpop.f32.mrf.mxu1  ;;  %v1111_v54 = vadd.f32 %v9877_v43, %v12970_v59  ;;  %v12975_v0 = vld [vmem:[#allocation104_spill] sm:$0xff]  ;;  %v12976_v50 = vld [vmem:[#allocation105_spill] sm:$0xff] }
 0x2da   :  { %12963 = vst [vmem:[#allocation60_spill] sm:$0xff] %v10598_v63  ;;  %v10604_v61 = vadd.f32 %v1731_v47, %v1109_v4  ;;  %v1155_v1 = vadd.f32 %v9879_v35, %v12975_v0  ;;  %v1199_v24 = vadd.f32 %v9881_v30, %v12976_v50  ;;  %v12977_v47 = vld [vmem:[#allocation106_spill] sm:$0xff]  ;;  %v12984_v30 = vld [vmem:[#allocation109_spill] sm:$0xff] }
 0x2db   :  { %12964 = vst [vmem:[#allocation17_spill] sm:$0xff] %v10600_v38  ;;  %6479 = vmatmul.msk.bf16.gmra.mxu0 %vm254_vm0, %v10090_v21  ;;  %v1070_v43 = vadd.f32 %v9883_v13, %v12977_v47  ;;  %v12987_v50 = vld [vmem:[#allocation146_spill] sm:$0xff]  ;;  %v8225_v38 = vld [vmem:[%s12631_s1 + $0x314] sm:$0xf0] }
 0x2dc   :  { %12965 = vst [vmem:[#allocation61_spill] sm:$0xff] %v10602_v10  ;;  %6493 = vmatmul.msk.bf16.gmra.mxu2 %vm254_vm0, %v10090_v21  ;;  %v6595_v10 = vld [vmem:[%s12631_s1 + $0x308] sm:$0xf] }
 0x2dd   :  { %12966 = vst [vmem:[#allocation18_spill] sm:$0xff] %v10604_v61  ;;  %6486 = vmatmul.msk.bf16.gmra.mxu1 %vm254_vm0, %v10090_v21  ;;  %6500 = vmatmul.msk.bf16.gmra.mxu3 %vm254_vm0, %v10090_v21  ;;  %v6589_v61 = vld [vmem:[%s12631_s1 + $0x310] sm:$0xf0]  ;;  %v6596_v48 = vor.u32 %v8225_v38, %v6595_v10 }
 0x2df   :  { %v1775_v11 = vpop.f32.mrf.mxu2 }
 0x2e0   :  { %v10622_v55 = vadd.f32 %v1775_v11, %v1153_v14  ;;  %v1819_v9 = vpop.f32.mrf.mxu3  ;;  %v1689_v51 = vpop.f32.mrf.mxu0  ;;  %v12978_v14 = vld [vmem:[#allocation107_spill] sm:$0xff] }
 0x2e1   :  { %v10624_v17 = vadd.f32 %v1819_v9, %v1197_v26  ;;  %v10626_v21 = vadd.f32 %v1689_v51, %v1067_v52  ;;  %v1733_v4 = vpop.f32.mrf.mxu1  ;;  %v1114_v31 = vadd.f32 %v9885_v56, %v12978_v14  ;;  %v12983_v56 = vld [vmem:[#allocation108_spill] sm:$0xff]  ;;  %v1202_v9 = vadd.f32 %v9897_v20, %v12984_v30  ;;  %v12985_v51 = vld [vmem:[#allocation110_spill] sm:$0xff]  ;;  %v12993_v20 = vld [vmem:[#allocation147_spill] sm:$0xff] }
 0x2e2   :  { %12971 = vst [vmem:[#allocation62_spill] sm:$0xff] %v10622_v55  ;;  %v10628_v18 = vadd.f32 %v1733_v4, %v1111_v54  ;;  %v1158_v13 = vadd.f32 %v9895_v8, %v12983_v56  ;;  %v1072_v4 = vadd.f32 %v9899_v2, %v12985_v51  ;;  %v12995_v2 = vld [vmem:[#allocation148_spill] sm:$0xff]  ;;  %v12996_v30 = vld [vmem:[#allocation114_spill] sm:$0xff]  ;;  %v12997_v51 = vld [vmem:[#allocation149_spill] sm:$0xff] }
 0x2e3   :  { %12972 = vst [vmem:[#allocation19_spill] sm:$0xff] %v10624_v17  ;;  %v6629_v17 = vld [vmem:[%s12631_s1 + $0x358] sm:$0xf0]  ;;  %v13157_v55 = vld [vmem:[#allocation12_spill] sm:$0xff] }
 0x2e4   :  { %12973 = vst [vmem:[#allocation63_spill] sm:$0xff] %v10626_v21  ;;  %v8231_v21 = vld [vmem:[%s12631_s1 + $0x34c] sm:$0xf] }
 0x2e5   :  { %12974 = vst [vmem:[#allocation20_spill] sm:$0xff] %v10628_v18 }
 0x2e7   :  { %v1777_v5 = vpop.f32.mrf.mxu2 }
 0x2e8   :  { %v10638_v26 = vadd.f32 %v1777_v5, %v1155_v1  ;;  %v1821_v32 = vpop.f32.mrf.mxu3  ;;  %v1692_v52 = vpop.f32.mrf.mxu0  ;;  %v12986_v1 = vld [vmem:[#allocation111_spill] sm:$0xff] }
 0x2e9   :  { %v10640_v11 = vadd.f32 %v1821_v32, %v1199_v24  ;;  %v10642_v59 = vadd.f32 %v1692_v52, %v1070_v43  ;;  %v1736_v54 = vpop.f32.mrf.mxu1  ;;  %v1116_v24 = vadd.f32 %v12987_v50, %v12986_v1  ;;  %v12992_v32 = vld [vmem:[#allocation112_spill] sm:$0xff]  ;;  %v1075_v1 = vadd.f32 %v12997_v51, %v12996_v30  ;;  %v12999_v50 = vld [vmem:[#allocation150_spill] sm:$0xff] }
 0x2ea   :  { %12979 = vst [vmem:[#allocation64_spill] sm:$0xff] %v10638_v26  ;;  %v10644_v35 = vadd.f32 %v1736_v54, %v1114_v31  ;;  %v1160_v52 = vadd.f32 %v12993_v20, %v12992_v32  ;;  %v12994_v54 = vld [vmem:[#allocation113_spill] sm:$0xff]  ;;  %v13004_v20 = vld [vmem:[#allocation8_spill] sm:$0xff]  ;;  %v13153_v26 = vld [vmem:[#allocation11_spill] sm:$0xff] }
 0x2eb   :  { %12980 = vst [vmem:[#allocation21_spill] sm:$0xff] %v10640_v11  ;;  %6480 = vmatmul.msk.bf16.gmra.mxu0 %vm254_vm0, %v10153_v28  ;;  %v1204_v56 = vadd.f32 %v12995_v2, %v12994_v54  ;;  %v13006_v54 = vld [vmem:[#allocation151_spill] sm:$0xff]  ;;  %v13008_v30 = vld [vmem:[#allocation152_spill] sm:$0xff]  ;;  %v6635_v11 = vld [vmem:[%s12631_s1 + $0x360] sm:$0xf] }
 0x2ec   :  { %12981 = vst [vmem:[#allocation65_spill] sm:$0xff] %v10642_v59  ;;  %6494 = vmatmul.msk.bf16.gmra.mxu2 %vm254_vm0, %v10153_v28 }
 0x2ed   :  { %12982 = vst [vmem:[#allocation22_spill] sm:$0xff] %v10644_v35  ;;  %6487 = vmatmul.msk.bf16.gmra.mxu1 %vm254_vm0, %v10153_v28  ;;  %6501 = vmatmul.msk.bf16.gmra.mxu3 %vm254_vm0, %v10153_v28  ;;  %v13149_v35 = vld [vmem:[#allocation10_spill] sm:$0xff] }
 0x2ef   :  { %v1780_v0 = vpop.f32.mrf.mxu2 }
 0x2f0   :  { %v10662_v47 = vadd.f32 %v1780_v0, %v1158_v13  ;;  %v1824_v43 = vpop.f32.mrf.mxu3  ;;  %v1694_v5 = vpop.f32.mrf.mxu0  ;;  %v12998_v0 = vld [vmem:[#allocation115_spill] sm:$0xff] }
 0x2f1   :  { %v10664_v14 = vadd.f32 %v1824_v43, %v1202_v9  ;;  %v10666_v28 = vadd.f32 %v1694_v5, %v1072_v4  ;;  %v1738_v31 = vpop.f32.mrf.mxu1 }
 0x2f2   :  { %12988 = vst [vmem:[#allocation66_spill] sm:$0xff] %v10662_v47  ;;  %v10668_v8 = vadd.f32 %v1738_v31, %v1116_v24  ;;  %v1119_v47 = vadd.f32 %v12999_v50, %v12998_v0  ;;  %v13011_v50 = vld [vmem:[#allocation119_spill] sm:$0xff] }
 0x2f3   :  { %12989 = vst [vmem:[#allocation23_spill] sm:$0xff] %v10664_v14  ;;  %v13022_v14 = vld [vmem:[#allocation157_spill] sm:$0xff] }
 0x2f4   :  { %12990 = vst [vmem:[#allocation67_spill] sm:$0xff] %v10666_v28  ;;  %v13021_v28 = vld [vmem:[#allocation122_spill] sm:$0xff] }
 0x2f5   :  { %12991 = vst [vmem:[#allocation24_spill] sm:$0xff] %v10668_v8  ;;  %v13019_v8 = vld [vmem:[#allocation121_spill] sm:$0xff] }
 0x2f7   :  { %v1782_v13 = vpop.f32.mrf.mxu2 }
 0x2f8   :  { %v10678_v9 = vadd.f32 %v1782_v13, %v1160_v52  ;;  %v1826_v4 = vpop.f32.mrf.mxu3  ;;  %v1697_v43 = vpop.f32.mrf.mxu0  ;;  %v13005_v52 = vld [vmem:[#allocation116_spill] sm:$0xff] }
 0x2f9   :  { %v10680_v5 = vadd.f32 %v1826_v4, %v1204_v56  ;;  %v10682_v24 = vadd.f32 %v1697_v43, %v1075_v1  ;;  %v1741_v31 = vpop.f32.mrf.mxu1  ;;  %v1163_v2 = vadd.f32 %v13006_v54, %v13005_v52  ;;  %v13007_v56 = vld [vmem:[#allocation117_spill] sm:$0xff]  ;;  %v13012_v4 = vld [vmem:[#allocation154_spill] sm:$0xff]  ;;  %v13017_v54 = vld [vmem:[#allocation120_spill] sm:$0xff] }
 0x2fa   :  { %13000 = vst [vmem:[#allocation68_spill] sm:$0xff] %v10678_v9  ;;  %v10684_v32 = vadd.f32 %v1741_v31, %v1119_v47  ;;  %v1207_v51 = vadd.f32 %v13008_v30, %v13007_v56  ;;  %v13009_v47 = vld [vmem:[#allocation118_spill] sm:$0xff]  ;;  %v13010_v1 = vld [vmem:[#allocation153_spill] sm:$0xff]  ;;  %v1121_v43 = vadd.f32 %v13012_v4, %v13011_v50  ;;  %v13018_v56 = vld [vmem:[#allocation155_spill] sm:$0xff]  ;;  %v1080_v50 = vadd.f32 %v13022_v14, %v13021_v28 }
 0x2fb   :  { %13001 = vst [vmem:[#allocation25_spill] sm:$0xff] %v10680_v5  ;;  %6481 = vmatmul.msk.bf16.gmra.mxu0 %vm254_vm0, %v13004_v20  ;;  %v1077_v13 = vadd.f32 %v13010_v1, %v13009_v47  ;;  %v1165_v30 = vadd.f32 %v13018_v56, %v13017_v54  ;;  %v13020_v47 = vld [vmem:[#allocation156_spill] sm:$0xff]  ;;  %v13024_v4 = vld [vmem:[#allocation158_spill] sm:$0xff]  ;;  %v13030_v28 = vld [vmem:[#allocation159_spill] sm:$0xff] }
 0x2fc   :  { %13002 = vst [vmem:[#allocation69_spill] sm:$0xff] %v10682_v24  ;;  %6495 = vmatmul.msk.bf16.gmra.mxu2 %vm254_vm0, %v13004_v20  ;;  %v1209_v1 = vadd.f32 %v13020_v47, %v13019_v8  ;;  %v13029_v14 = vld [vmem:[#allocation124_spill] sm:$0xff]  ;;  %v13031_v56 = vld [vmem:[#allocation125_spill] sm:$0xff] }
 0x2fd   :  { %13003 = vst [vmem:[#allocation26_spill] sm:$0xff] %v10684_v32  ;;  %6488 = vmatmul.msk.bf16.gmra.mxu1 %vm254_vm0, %v13004_v20  ;;  %6502 = vmatmul.msk.bf16.gmra.mxu3 %vm254_vm0, %v13004_v20  ;;  %v1168_v8 = vadd.f32 %v13030_v28, %v13029_v14  ;;  %v13041_v28 = vld [vmem:[#allocation128_spill] sm:$0xff] }
 0x2ff   :  { %v1785_v0 = vpop.f32.mrf.mxu2 }
 0x300   :  { %v10702_v31 = vadd.f32 %v1785_v0, %v1163_v2  ;;  %v1829_v32 = vpop.f32.mrf.mxu3  ;;  %v1699_v24 = vpop.f32.mrf.mxu0  ;;  %v13023_v0 = vld [vmem:[#allocation123_spill] sm:$0xff] }
 0x301   :  { %v10704_v5 = vadd.f32 %v1829_v32, %v1207_v51  ;;  %v10706_v20 = vadd.f32 %v1699_v24, %v1077_v13  ;;  %v1743_v9 = vpop.f32.mrf.mxu1 }
 0x302   :  { %13013 = vst [vmem:[#allocation70_spill] sm:$0xff] %v10702_v31  ;;  %v10708_v52 = vadd.f32 %v1743_v9, %v1121_v43  ;;  %v1124_v31 = vadd.f32 %v13024_v4, %v13023_v0  ;;  %v13035_v0 = vld [vmem:[#allocation127_spill] sm:$0xff]  ;;  %v13036_v4 = vld [vmem:[#allocation162_spill] sm:$0xff] }
 0x303   :  { %13014 = vst [vmem:[#allocation27_spill] sm:$0xff] %v10704_v5 }
 0x304   :  { %13015 = vst [vmem:[#allocation71_spill] sm:$0xff] %v10706_v20  ;;  %v13046_v20 = vld [vmem:[#allocation165_spill] sm:$0xff] }
 0x305   :  { %13016 = vst [vmem:[#allocation28_spill] sm:$0xff] %v10708_v52  ;;  %v13045_v52 = vld [vmem:[#allocation130_spill] sm:$0xff] }
 0x307   :  { %v1787_v2 = vpop.f32.mrf.mxu2 }
 0x308   :  { %v10718_v32 = vadd.f32 %v1787_v2, %v1165_v30  ;;  %v1831_v24 = vpop.f32.mrf.mxu3  ;;  %v1702_v51 = vpop.f32.mrf.mxu0  ;;  %v13032_v30 = vld [vmem:[#allocation160_spill] sm:$0xff] }
 0x309   :  { %v10720_v13 = vadd.f32 %v1831_v24, %v1209_v1  ;;  %v10722_v9 = vadd.f32 %v1702_v51, %v1080_v50  ;;  %v1746_v43 = vpop.f32.mrf.mxu1  ;;  %v1212_v47 = vadd.f32 %v13032_v30, %v13031_v56  ;;  %v13034_v1 = vld [vmem:[#allocation161_spill] sm:$0xff]  ;;  %v1126_v24 = vadd.f32 %v13036_v4, %v13035_v0  ;;  %v13042_v56 = vld [vmem:[#allocation163_spill] sm:$0xff]  ;;  %v13048_v4 = vld [vmem:[#allocation166_spill] sm:$0xff] }
 0x30a   :  { %13025 = vst [vmem:[#allocation72_spill] sm:$0xff] %v10718_v32  ;;  %v10724_v54 = vadd.f32 %v1746_v43, %v1124_v31  ;;  %v13033_v31 = vld [vmem:[#allocation126_spill] sm:$0xff]  ;;  %v1170_v30 = vadd.f32 %v13042_v56, %v13041_v28  ;;  %v13043_v32 = vld [vmem:[#allocation129_spill] sm:$0xff]  ;;  %v1085_v0 = vadd.f32 %v13046_v20, %v13045_v52  ;;  %v13053_v20 = vld [vmem:[#allocation132_spill] sm:$0xff] }
 0x30b   :  { %13026 = vst [vmem:[#allocation29_spill] sm:$0xff] %v10720_v13  ;;  %6482 = vmatmul.msk.bf16.gmra.mxu0 %vm254_vm0, %v10361_v60  ;;  %v1082_v50 = vadd.f32 %v13034_v1, %v13033_v31  ;;  %v13044_v31 = vld [vmem:[#allocation164_spill] sm:$0xff]  ;;  %v13054_v52 = vld [vmem:[#allocation167_spill] sm:$0xff]  ;;  %v13055_v56 = vld [vmem:[#allocation133_spill] sm:$0xff] }
 0x30c   :  { %13027 = vst [vmem:[#allocation73_spill] sm:$0xff] %v10722_v9  ;;  %6496 = vmatmul.msk.bf16.gmra.mxu2 %vm254_vm0, %v10361_v60  ;;  %v1214_v1 = vadd.f32 %v13044_v31, %v13043_v32  ;;  %v1173_v32 = vadd.f32 %v13054_v52, %v13053_v20  ;;  %v13065_v52 = vld [vmem:[#allocation136_spill] sm:$0xff] }
 0x30d   :  { %13028 = vst [vmem:[#allocation30_spill] sm:$0xff] %v10724_v54  ;;  %6489 = vmatmul.msk.bf16.gmra.mxu1 %vm254_vm0, %v10361_v60  ;;  %6503 = vmatmul.msk.bf16.gmra.mxu3 %vm254_vm0, %v10361_v60 }
 0x30f   :  { %v1790_v2 = vpop.f32.mrf.mxu2 }
 0x310   :  { %v10742_v51 = vadd.f32 %v1790_v2, %v1168_v8  ;;  %v1834_v43 = vpop.f32.mrf.mxu3  ;;  %v1704_v54 = vpop.f32.mrf.mxu0  ;;  %v13047_v2 = vld [vmem:[#allocation131_spill] sm:$0xff] }
 0x311   :  { %v10744_v9 = vadd.f32 %v1834_v43, %v1212_v47  ;;  %v10746_v60 = vadd.f32 %v1704_v54, %v1082_v50  ;;  %v1748_v13 = vpop.f32.mrf.mxu1 }
 0x312   :  { %13037 = vst [vmem:[#allocation74_spill] sm:$0xff] %v10742_v51  ;;  %v10748_v14 = vadd.f32 %v1748_v13, %v1126_v24  ;;  %v1129_v51 = vadd.f32 %v13048_v4, %v13047_v2  ;;  %v13059_v2 = vld [vmem:[#allocation135_spill] sm:$0xff]  ;;  %v13060_v4 = vld [vmem:[#allocation170_spill] sm:$0xff] }
 0x313   :  { %13038 = vst [vmem:[#allocation31_spill] sm:$0xff] %v10744_v9  ;;  %v13140_v9 = vld [vmem:[#allocation51_spill] sm:$0xff] }
 0x314   :  { %13039 = vst [vmem:[#allocation75_spill] sm:$0xff] %v10746_v60  ;;  %v13070_v60 = vld [vmem:[#allocation173_spill] sm:$0xff] }
 0x315   :  { %13040 = vst [vmem:[#allocation32_spill] sm:$0xff] %v10748_v14  ;;  %v13069_v14 = vld [vmem:[#allocation138_spill] sm:$0xff] }
 0x317   :  { %v1792_v8 = vpop.f32.mrf.mxu2 }
 0x318   :  { %v10758_v47 = vadd.f32 %v1792_v8, %v1170_v30  ;;  %v1836_v54 = vpop.f32.mrf.mxu3  ;;  %v1707_v50 = vpop.f32.mrf.mxu0  ;;  %v13056_v30 = vld [vmem:[#allocation168_spill] sm:$0xff] }
 0x319   :  { %v10760_v43 = vadd.f32 %v1836_v54, %v1214_v1  ;;  %v10762_v13 = vadd.f32 %v1707_v50, %v1085_v0  ;;  %v1217_v31 = vadd.f32 %v13056_v30, %v13055_v56  ;;  %v13058_v1 = vld [vmem:[#allocation169_spill] sm:$0xff]  ;;  %v1131_v54 = vadd.f32 %v13060_v4, %v13059_v2  ;;  %v13066_v56 = vld [vmem:[#allocation171_spill] sm:$0xff] }
 0x31a   :  { %13049 = vst [vmem:[#allocation76_spill] sm:$0xff] %v10758_v47  ;;  %v1751_v24 = vpop.f32.mrf.mxu1  ;;  %v1175_v30 = vadd.f32 %v13066_v56, %v13065_v52  ;;  %v13067_v47 = vld [vmem:[#allocation137_spill] sm:$0xff]  ;;  %v1090_v2 = vadd.f32 %v13070_v60, %v13069_v14  ;;  %v13077_v60 = vld [vmem:[#allocation140_spill] sm:$0xff]  ;;  %v13078_v14 = vld [vmem:[#allocation175_spill] sm:$0xff] }
 0x31b   :  { %13050 = vst [vmem:[#allocation33_spill] sm:$0xff] %v10760_v43  ;;  %v10764_v28 = vadd.f32 %v1751_v24, %v1129_v51  ;;  %6483 = vmatmul.msk.bf16.gmra.mxu0 %vm254_vm0, %v10459_v44  ;;  %v13057_v51 = vld [vmem:[#allocation134_spill] sm:$0xff] }
 0x31c   :  { %13051 = vst [vmem:[#allocation77_spill] sm:$0xff] %v10762_v13  ;;  %6497 = vmatmul.msk.bf16.gmra.mxu2 %vm254_vm0, %v10459_v44  ;;  %v1087_v0 = vadd.f32 %v13058_v1, %v13057_v51  ;;  %v13068_v51 = vld [vmem:[#allocation172_spill] sm:$0xff] }
 0x31d   :  { %13052 = vst [vmem:[#allocation34_spill] sm:$0xff] %v10764_v28  ;;  %6490 = vmatmul.msk.bf16.gmra.mxu1 %vm254_vm0, %v10459_v44  ;;  %6504 = vmatmul.msk.bf16.gmra.mxu3 %vm254_vm0, %v10459_v44  ;;  %v1219_v1 = vadd.f32 %v13068_v51, %v13067_v47  ;;  %v13079_v51 = vld [vmem:[#allocation141_spill] sm:$0xff] }
 0x31f   :  { %v1795_v8 = vpop.f32.mrf.mxu2 }
 0x320   :  { %v10782_v50 = vadd.f32 %v1795_v8, %v1173_v32  ;;  %v1839_v24 = vpop.f32.mrf.mxu3  ;;  %v1709_v28 = vpop.f32.mrf.mxu0 }
 0x321   :  { %v10784_v13 = vadd.f32 %v1839_v24, %v1217_v31  ;;  %v10786_v44 = vadd.f32 %v1709_v28, %v1087_v0  ;;  %v10799_v31 = vld [vmem:[%s12632_s0 + $0x8] sm:$0xff]  ;;  %v13072_v0 = vld [vmem:[#allocation174_spill] sm:$0xff] }
 0x322   :  { %13061 = vst [vmem:[#allocation78_spill] sm:$0xff] %v10782_v50  ;;  %v1753_v43 = vpop.f32.mrf.mxu1  ;;  %v13071_v28 = vld [vmem:[#allocation139_spill] sm:$0xff] }
 0x323   :  { %13062 = vst [vmem:[#allocation35_spill] sm:$0xff] %v10784_v13  ;;  %v10788_v20 = vadd.f32 %v1753_v43, %v1131_v54  ;;  %v1134_v8 = vadd.f32 %v13072_v0, %v13071_v28  ;;  %v13082_v28 = vld [vmem:[#allocation177_spill] sm:$0xff] }
 0x324   :  { %13063 = vst [vmem:[#allocation79_spill] sm:$0xff] %v10786_v44  ;;  %v13091_v13 = vld [vmem:[#allocation145_spill] sm:$0xff] }
 0x325   :  { %13064 = vst [vmem:[#allocation36_spill] sm:$0xff] %v10788_v20 }
 0x327   :  { %v1797_v32 = vpop.f32.mrf.mxu2 }
 0x328   :  { %v10803_v43 = vadd.f32 %v1797_v32, %v1175_v30  ;;  %v1841_v4 = vpop.f32.mrf.mxu3  ;;  %v1712_v54 = vpop.f32.mrf.mxu0  ;;  %v1178_v30 = vadd.f32 %v13078_v14, %v13077_v60  ;;  %v13081_v32 = vld [vmem:[#allocation142_spill] sm:$0xff]  ;;  %v13089_v14 = vld [vmem:[#allocation144_spill] sm:$0xff] }
 0x329   :  { %v10805_v24 = vadd.f32 %v1841_v4, %v1219_v1  ;;  %v10807_v52 = vadd.f32 %v1712_v54, %v1090_v2  ;;  %v13080_v1 = vld [vmem:[#allocation176_spill] sm:$0xff]  ;;  %v1092_v0 = vadd.f32 %v13082_v28, %v13081_v32  ;;  %v13083_v4 = vld [vmem:[#allocation143_spill] sm:$0xff]  ;;  %v13084_v54 = vld [vmem:[#allocation178_spill] sm:$0xff] }
 0x32a   :  { %13073 = vst [vmem:[#allocation80_spill] sm:$0xff] %v10803_v43  ;;  %v1756_v47 = vpop.f32.mrf.mxu1  ;;  %v1222_v2 = vadd.f32 %v13080_v1, %v13079_v51  ;;  %v13090_v51 = vld [vmem:[#allocation179_spill] sm:$0xff]  ;;  %v13092_v32 = vld [vmem:[#allocation180_spill] sm:$0xff] }
 0x32b   :  { %13074 = vst [vmem:[#allocation37_spill] sm:$0xff] %v10805_v24  ;;  %v10809_v56 = vadd.f32 %v1756_v47, %v1134_v8  ;;  %6533 = vmatmul.msk.bf16.vlgmr.msrb.gmra.mxu0 %vm254_vm0, %v10799_v31  ;;  %v1136_v47 = vadd.f32 %v13084_v54, %v13083_v4  ;;  %v1180_v1 = vadd.f32 %v13090_v51, %v13089_v14  ;;  %v13098_v54 = vld [vmem:[#allocation182_spill] sm:$0xff] }
 0x32c   :  { %13075 = vst [vmem:[#allocation81_spill] sm:$0xff] %v10807_v52  ;;  %6547 = vmatmul.msk.bf16.vlgmr.msrb.gmra.mxu2 %vm254_vm0, %v10799_v31  ;;  %v1224_v28 = vadd.f32 %v13092_v32, %v13091_v13  ;;  %v13102_v32 = vld [vmem:[#allocation184_spill] sm:$0xff] }
 0x32d   :  { %13076 = vst [vmem:[#allocation38_spill] sm:$0xff] %v10809_v56  ;;  %6540 = vmatmul.msk.bf16.vlgmr.msrb.gmra.mxu1 %vm254_vm0, %v10799_v31  ;;  %6554 = vmatmul.msk.bf16.vlgmr.msrb.gmra.mxu3 %vm254_vm0, %v10799_v31 }
 0x32f   :  { %v1800_v8 = vpop.f32.mrf.mxu2 }
 0x330   :  { %v10827_v56 = vadd.f32 %v1800_v8, %v1178_v30  ;;  %v1844_v52 = vpop.f32.mrf.mxu3  ;;  %v1714_v24 = vpop.f32.mrf.mxu0  ;;  %v10842_v30 = vld [vmem:[%s12632_s0 + $0x10] sm:$0xff] }
 0x331   :  { %v10829_v43 = vadd.f32 %v1844_v52, %v1222_v2  ;;  %v10831_v20 = vadd.f32 %v1714_v24, %v1092_v0  ;;  %13093 = vst [vmem:[#allocation84_spill] sm:$0xff] %v10842_v30 }
 0x332   :  { %13085 = vst [vmem:[#allocation82_spill] sm:$0xff] %v10827_v56  ;;  %v1758_v44 = vpop.f32.mrf.mxu1  ;;  %v8240_v56 = vld [vmem:[%s12631_s1 + $0x38c] sm:$0xf0] }
 0x333   :  { %13086 = vst [vmem:[#allocation39_spill] sm:$0xff] %v10829_v43  ;;  %v10833_v60 = vadd.f32 %v1758_v44, %v1136_v47  ;;  %v13096_v44 = vld [vmem:[#allocation181_spill] sm:$0xff]  ;;  %v6651_v43 = vld [vmem:[%s12631_s1 + $0x380] sm:$0xf] }
 0x334   :  { %13087 = vst [vmem:[#allocation83_spill] sm:$0xff] %v10831_v20  ;;  %v6659_v20 = vld [vmem:[%s12631_s1 + $0x388] sm:$0xf] }
 0x335   :  { %13088 = vst [vmem:[#allocation40_spill] sm:$0xff] %v10833_v60 }
 0x337   :  { %v1802_v50 = vpop.f32.mrf.mxu2 }
 0x338   :  { %v10844_v8 = vadd.f32 %v1802_v50, %v1180_v1  ;;  %v1846_v52 = vpop.f32.mrf.mxu3  ;;  %v2059_v24 = vpop.f32.mrf.mxu0  ;;  %v13100_v50 = vld [vmem:[#allocation183_spill] sm:$0xff] }
 0x339   :  { %v10846_v2 = vadd.f32 %v1846_v52, %v1224_v28  ;;  %v10849_v0 = vadd.f32 %v2059_v24, %v13096_v44  ;;  %v13104_v52 = vld [vmem:[#allocation185_spill] sm:$0xff] }
 0x33a   :  { %13094 = vst [vmem:[#allocation41_spill] sm:$0xff] %v10844_v8  ;;  %v2103_v4 = vpop.f32.mrf.mxu1  ;;  %v13115_v8 = vld [vmem:[#allocation190_spill] sm:$0xff] }
 0x33b   :  { %13095 = vst [vmem:[#allocation85_spill] sm:$0xff] %v10846_v2  ;;  %v10852_v47 = vadd.f32 %v2103_v4, %v13098_v54  ;;  %6534 = vmatmul.msk.bf16.gmra.mxu0 %vm254_vm0, %v10842_v30  ;;  %v6675_v4 = vld [vmem:[%s12631_s1 + $0x3a8] sm:$0xf]  ;;  %v8245_v54 = vld [vmem:[%s12631_s1 + $0x3b4] sm:$0xf0] }
 0x33c   :  { %13097 = vst [vmem:[#allocation42_spill] sm:$0xff] %v10849_v0  ;;  %6548 = vmatmul.msk.bf16.gmra.mxu2 %vm254_vm0, %v10842_v30 }
 0x33d   :  { %13099 = vst [vmem:[#allocation86_spill] sm:$0xff] %v10852_v47  ;;  %6541 = vmatmul.msk.bf16.gmra.mxu1 %vm254_vm0, %v10842_v30  ;;  %6555 = vmatmul.msk.bf16.gmra.mxu3 %vm254_vm0, %v10842_v30  ;;  %v13111_v47 = vld [vmem:[#allocation188_spill] sm:$0xff] }
 0x33f   :  { %v2147_v13 = vpop.f32.mrf.mxu2 }
 0x340   :  { %v10863_v14 = vadd.f32 %v2147_v13, %v13100_v50  ;;  %v2191_v51 = vpop.f32.mrf.mxu3  ;;  %v2061_v1 = vpop.f32.mrf.mxu0  ;;  %v8243_v13 = vld [vmem:[%s12631_s1 + $0x3ac] sm:$0xf]  ;;  %v13106_v50 = vld [vmem:[#allocation186_spill] sm:$0xff] }
 0x341   :  { %v10866_v28 = vadd.f32 %v2191_v51, %v13102_v32  ;;  %v10869_v24 = vadd.f32 %v2061_v1, %v13104_v52  ;;  %v10883_v51 = vor.u32 %v8245_v54, %v6675_v4  ;;  %v6677_v1 = vld [vmem:[%s12631_s1 + $0x3b8] sm:$0xf0]  ;;  %v6667_v32 = vld [vmem:[%s12631_s1 + $0x3a0] sm:$0xf]  ;;  %v8244_v52 = vld [vmem:[%s12631_s1 + $0x3ac] sm:$0xf0] }
 0x342   :  { %13101 = vst [vmem:[#allocation43_spill] sm:$0xff] %v10863_v14  ;;  %v2105_v44 = vpop.f32.mrf.mxu1  ;;  %v6669_v4 = vld [vmem:[%s12631_s1 + $0x3b0] sm:$0xf0] }
 0x343   :  { %13103 = vst [vmem:[#allocation87_spill] sm:$0xff] %v10866_v28  ;;  %v10881_v14 = vadd.f32 %v2105_v44, %v13106_v50  ;;  %v10896_v28 = vor.u32 %v8244_v52, %v6667_v32  ;;  %v8242_v44 = vld [vmem:[%s12631_s1 + $0x3a4] sm:$0xf]  ;;  %2819 = vmatpush.bf16.msra.mxu2 %v10883_v51  ;;  %v10913_v50 = vld [vmem:[%s12632_s0 + $0x18] sm:$0xff] }
 0x344   :  { %13105 = vst [vmem:[#allocation44_spill] sm:$0xff] %v10869_v24  ;;  %v10894_v24 = vor.u32 %v8243_v13, %v6677_v1  ;;  %v10905_v54 = vor.u32 %v8242_v44, %v6669_v4  ;;  %v13109_v1 = vld [vmem:[#allocation187_spill] sm:$0xff]  ;;  %v13113_v4 = vld [vmem:[#allocation189_spill] sm:$0xff] }
 0x345   :  { %13107 = vst [vmem:[#allocation88_spill] sm:$0xff] %v10881_v14  ;;  %2731 = vmatpush.bf16.msra.mxu0 %v10896_v28 }
 0x346   :  { %2863 = vmatpush.bf16.msra.mxu3 %v10894_v24  ;;  %2775 = vmatpush.bf16.msra.mxu1 %v10905_v54  ;;  %13108 = vst [vmem:[#allocation45_spill] sm:$0xff] %v10913_v50 }
 0x347   :  { %v2149_v13 = vpop.f32.mrf.mxu2 }
 0x348   :  { %v10916_v32 = vadd.f32 %v2149_v13, %v13109_v1  ;;  %v2193_v52 = vpop.f32.mrf.mxu3  ;;  %v2064_v14 = vpop.f32.mrf.mxu0  ;;  %v13117_v13 = vld [vmem:[#allocation2_spill] sm:$0xff] }
 0x349   :  { %v10919_v44 = vadd.f32 %v2193_v52, %v13111_v47  ;;  %v10922_v0 = vadd.f32 %v2064_v14, %v13113_v4  ;;  %v13121_v4 = vld [vmem:[#allocation3_spill] sm:$0xff] }
 0x34a   :  { %13110 = vst [vmem:[#allocation89_spill] sm:$0xff] %v10916_v32  ;;  %v2108_v2 = vpop.f32.mrf.mxu1 }
 0x34b   :  { %13112 = vst [vmem:[#allocation90_spill] sm:$0xff] %v10919_v44  ;;  %v10925_v60 = vadd.f32 %v2108_v2, %v13115_v8  ;;  %6535 = vmatmul.msk.bf16.gmra.mxu0 %vm254_vm0, %v10913_v50  ;;  %v13119_v8 = vld [vmem:[#allocation46_spill] sm:$0xff]  ;;  %v13123_v44 = vld [vmem:[#allocation47_spill] sm:$0xff] }
 0x34c   :  { %13114 = vst [vmem:[#allocation91_spill] sm:$0xff] %v10922_v0  ;;  %6549 = vmatmul.msk.bf16.gmra.mxu2 %vm254_vm0, %v10913_v50 }
 0x34d   :  { %13116 = vst [vmem:[#allocation92_spill] sm:$0xff] %v10925_v60  ;;  %6542 = vmatmul.msk.bf16.gmra.mxu1 %vm254_vm0, %v10913_v50  ;;  %6556 = vmatmul.msk.bf16.gmra.mxu3 %vm254_vm0, %v10913_v50 }
 0x34f   :  { %v2152_v47 = vpop.f32.mrf.mxu2 }
 0x350   :  { %v10936_v14 = vadd.f32 %v2152_v47, %v13117_v13  ;;  %v2196_v1 = vpop.f32.mrf.mxu3  ;;  %v2066_v52 = vpop.f32.mrf.mxu0  ;;  %v8241_v47 = vld [vmem:[%s12631_s1 + $0x394] sm:$0xf0]  ;;  %v8239_v13 = vld [vmem:[%s12631_s1 + $0x38c] sm:$0xf] }
 0x351   :  { %v10939_v2 = vadd.f32 %v2196_v1, %v13119_v8  ;;  %v10942_v60 = vadd.f32 %v2066_v52, %v13121_v4  ;;  %v10956_v1 = vor.u32 %v8241_v47, %v6659_v20  ;;  %v6661_v52 = vld [vmem:[%s12631_s1 + $0x398] sm:$0xf0]  ;;  %v10968_v8 = vld [vmem:[%s12632_s0 + $0x20] sm:$0xff]  ;;  %v13126_v4 = vld [vmem:[#allocation4_spill] sm:$0xff] }
 0x352   :  { %13118 = vst [vmem:[#allocation93_spill] sm:$0xff] %v10936_v14  ;;  %v2110_v0 = vpop.f32.mrf.mxu1 }
 0x353   :  { %13120 = vst [vmem:[#allocation94_spill] sm:$0xff] %v10939_v2  ;;  %v10945_v32 = vadd.f32 %v2110_v0, %v13123_v44  ;;  %v10961_v0 = vor.u32 %v8239_v13, %v6661_v52  ;;  %2820 = vmatpush.bf16.msra.mxu2 %v10956_v1  ;;  %v13130_v13 = vld [vmem:[#allocation5_spill] sm:$0xff] }
 0x354   :  { %13122 = vst [vmem:[#allocation95_spill] sm:$0xff] %v10942_v60  ;;  %v13128_v60 = vld [vmem:[#allocation48_spill] sm:$0xff] }
 0x355   :  { %13124 = vst [vmem:[#allocation96_spill] sm:$0xff] %v10945_v32  ;;  %2864 = vmatpush.bf16.msra.mxu3 %v10961_v0 }
 0x356   :  { %13125 = vst [vmem:[#allocation97_spill] sm:$0xff] %v10968_v8 }
 0x357   :  { %v2154_v44 = vpop.f32.mrf.mxu2 }
 0x358   :  { %v10971_v32 = vadd.f32 %v2154_v44, %v13126_v4  ;;  %v2198_v20 = vpop.f32.mrf.mxu3  ;;  %v2069_v47 = vpop.f32.mrf.mxu0  ;;  %v8238_v44 = vld [vmem:[%s12631_s1 + $0x384] sm:$0xf]  ;;  %v13132_v4 = vld [vmem:[#allocation49_spill] sm:$0xff] }
 0x359   :  { %v10974_v2 = vadd.f32 %v2198_v20, %v13128_v60  ;;  %v10977_v52 = vadd.f32 %v2069_v47, %v13130_v13  ;;  %v10991_v60 = vor.u32 %v8240_v56, %v6651_v43  ;;  %v6653_v20 = vld [vmem:[%s12631_s1 + $0x390] sm:$0xf0]  ;;  %v13134_v56 = vld [vmem:[#allocation6_spill] sm:$0xff] }
 0x35a   :  { %13127 = vst [vmem:[#allocation98_spill] sm:$0xff] %v10971_v32  ;;  %v2113_v14 = vpop.f32.mrf.mxu1  ;;  %v10998_v47 = vor.u32 %v8238_v44, %v6653_v20 }
 0x35b   :  { %13129 = vst [vmem:[#allocation99_spill] sm:$0xff] %v10974_v2  ;;  %v10989_v32 = vadd.f32 %v2113_v14, %v13132_v4  ;;  %6536 = vmatmul.msk.bf16.gmra.mxu0 %vm254_vm0, %v10968_v8  ;;  %v13136_v4 = vld [vmem:[#allocation50_spill] sm:$0xff] }
 0x35c   :  { %13131 = vst [vmem:[#allocation100_spill] sm:$0xff] %v10977_v52  ;;  %6550 = vmatmul.msk.bf16.gmra.mxu2 %vm254_vm0, %v10968_v8  ;;  %2732 = vmatpush.bf16.msra.mxu0 %v10991_v60 }
 0x35d   :  { %13133 = vst [vmem:[#allocation101_spill] sm:$0xff] %v10989_v32  ;;  %6543 = vmatmul.msk.bf16.gmra.mxu1 %vm254_vm0, %v10968_v8  ;;  %6557 = vmatmul.msk.bf16.gmra.mxu3 %vm254_vm0, %v10968_v8  ;;  %v13138_v32 = vld [vmem:[#allocation7_spill] sm:$0xff] }
 0x35e   :  { %2776 = vmatpush.bf16.msra.mxu1 %v10998_v47  ;;  %v6643_v8 = vld [vmem:[%s12631_s1 + $0x368] sm:$0xf] }
 0x35f   :  { %v2157_v43 = vpop.f32.mrf.mxu2 }
 0x360   :  { %v11009_v14 = vadd.f32 %v2157_v43, %v13134_v56  ;;  %v2201_v13 = vpop.f32.mrf.mxu3  ;;  %v2071_v44 = vpop.f32.mrf.mxu0  ;;  %v8237_v43 = vld [vmem:[%s12631_s1 + $0x374] sm:$0xf0]  ;;  %v8235_v56 = vld [vmem:[%s12631_s1 + $0x36c] sm:$0xf] }
 0x361   :  { %v11012_v20 = vadd.f32 %v2201_v13, %v13136_v4  ;;  %v11015_v52 = vadd.f32 %v2071_v44, %v13138_v32  ;;  %v11029_v13 = vor.u32 %v8237_v43, %v6643_v8  ;;  %v6645_v32 = vld [vmem:[%s12631_s1 + $0x378] sm:$0xf0]  ;;  %v11041_v44 = vld [vmem:[%s12632_s0 + $0x28] sm:$0xff]  ;;  %v13143_v4 = vld [vmem:[#allocation52_spill] sm:$0xff] }
 0x362   :  { %13135 = vst [vmem:[#allocation102_spill] sm:$0xff] %v11009_v14  ;;  %v2115_v2 = vpop.f32.mrf.mxu1 }
 0x363   :  { %13137 = vst [vmem:[#allocation103_spill] sm:$0xff] %v11012_v20  ;;  %v11018_v5 = vadd.f32 %v2115_v2, %v13140_v9  ;;  %v11034_v9 = vor.u32 %v8235_v56, %v6645_v32  ;;  %2821 = vmatpush.bf16.msra.mxu2 %v11029_v13  ;;  %v13147_v56 = vld [vmem:[#allocation53_spill] sm:$0xff] }
 0x364   :  { %13139 = vst [vmem:[#allocation104_spill] sm:$0xff] %v11015_v52  ;;  %v13145_v52 = vld [vmem:[#allocation9_spill] sm:$0xff] }
 0x365   :  { %13141 = vst [vmem:[#allocation105_spill] sm:$0xff] %v11018_v5  ;;  %2865 = vmatpush.bf16.msra.mxu3 %v11034_v9 }
 0x366   :  { %13142 = vst [vmem:[#allocation106_spill] sm:$0xff] %v11041_v44 }
 0x367   :  { %v2159_v2 = vpop.f32.mrf.mxu2 }
 0x368   :  { %v11044_v5 = vadd.f32 %v2159_v2, %v13143_v4  ;;  %v2203_v8 = vpop.f32.mrf.mxu3  ;;  %v2074_v43 = vpop.f32.mrf.mxu0  ;;  %v8236_v2 = vld [vmem:[%s12631_s1 + $0x36c] sm:$0xf0] }
 0x369   :  { %v11047_v20 = vadd.f32 %v2203_v8, %v13145_v52  ;;  %v11050_v32 = vadd.f32 %v2074_v43, %v13147_v56  ;;  %v8234_v52 = vld [vmem:[%s12631_s1 + $0x364] sm:$0xf]  ;;  %v11066_v4 = vor.u32 %v8236_v2, %v6635_v11  ;;  %v6619_v8 = vld [vmem:[%s12631_s1 + $0x340] sm:$0xf]  ;;  %v8232_v43 = vld [vmem:[%s12631_s1 + $0x34c] sm:$0xf0] }
 0x36a   :  { %13144 = vst [vmem:[#allocation107_spill] sm:$0xff] %v11044_v5  ;;  %v2118_v14 = vpop.f32.mrf.mxu1  ;;  %v8230_v56 = vld [vmem:[%s12631_s1 + $0x344] sm:$0xf]  ;;  %v11093_v5 = vor.u32 %v8232_v43, %v6619_v8 }
 0x36b   :  { %13146 = vst [vmem:[#allocation108_spill] sm:$0xff] %v11047_v20  ;;  %v11053_v59 = vadd.f32 %v2118_v14, %v13149_v35  ;;  %6537 = vmatmul.msk.bf16.gmra.mxu0 %vm254_vm0, %v11041_v44  ;;  %v6637_v35 = vld [vmem:[%s12631_s1 + $0x370] sm:$0xf0]  ;;  %v13151_v2 = vld [vmem:[#allocation54_spill] sm:$0xff] }
 0x36c   :  { %13148 = vst [vmem:[#allocation109_spill] sm:$0xff] %v11050_v32  ;;  %6551 = vmatmul.msk.bf16.gmra.mxu2 %vm254_vm0, %v11041_v44  ;;  %v11075_v14 = vor.u32 %v8234_v52, %v6637_v35  ;;  %2733 = vmatpush.bf16.msra.mxu0 %v11066_v4  ;;  %v6627_v32 = vld [vmem:[%s12631_s1 + $0x348] sm:$0xf] }
 0x36d   :  { %13150 = vst [vmem:[#allocation110_spill] sm:$0xff] %v11053_v59  ;;  %6544 = vmatmul.msk.bf16.gmra.mxu1 %vm254_vm0, %v11041_v44  ;;  %6558 = vmatmul.msk.bf16.gmra.mxu3 %vm254_vm0, %v11041_v44  ;;  %v6621_v59 = vld [vmem:[%s12631_s1 + $0x350] sm:$0xf0]  ;;  %v8233_v44 = vld [vmem:[%s12631_s1 + $0x354] sm:$0xf0] }
 0x36e   :  { %2777 = vmatpush.bf16.msra.mxu1 %v11075_v14  ;;  %v11110_v43 = vor.u32 %v8230_v56, %v6621_v59  ;;  %v6603_v59 = vld [vmem:[%s12631_s1 + $0x320] sm:$0xf] }
 0x36f   :  { %v2162_v11 = vpop.f32.mrf.mxu2 }
 0x370   :  { %v11091_v52 = vadd.f32 %v2162_v11, %v13151_v2  ;;  %v2206_v35 = vpop.f32.mrf.mxu3  ;;  %v2076_v20 = vpop.f32.mrf.mxu0  ;;  %v13155_v11 = vld [vmem:[#allocation55_spill] sm:$0xff]  ;;  %2734 = vmatpush.bf16.msra.mxu0 %v11093_v5 }
 0x371   :  { %v11105_v18 = vadd.f32 %v2206_v35, %v13153_v26  ;;  %v11108_v2 = vadd.f32 %v2076_v20, %v13155_v11  ;;  %v11124_v26 = vor.u32 %v8231_v21, %v6629_v17  ;;  %v8228_v20 = vld [vmem:[%s12631_s1 + $0x32c] sm:$0xf0]  ;;  %v6605_v17 = vld [vmem:[%s12631_s1 + $0x330] sm:$0xf0]  ;;  %v6611_v21 = vld [vmem:[%s12631_s1 + $0x328] sm:$0xf] }
 0x372   :  { %13152 = vst [vmem:[#allocation111_spill] sm:$0xff] %v11091_v52  ;;  %v2120_v8 = vpop.f32.mrf.mxu1  ;;  %v11112_v52 = vor.u32 %v8233_v44, %v6627_v32  ;;  %v8226_v44 = vld [vmem:[%s12631_s1 + $0x324] sm:$0xf]  ;;  %2778 = vmatpush.bf16.msra.mxu1 %v11110_v43  ;;  %v8229_v32 = vld [vmem:[%s12631_s1 + $0x334] sm:$0xf0] }
 0x373   :  { %13154 = vst [vmem:[#allocation146_spill] sm:$0xff] %v11105_v18  ;;  %v11121_v50 = vadd.f32 %v2120_v8, %v13157_v55  ;;  %v11137_v55 = vor.u32 %v8228_v20, %v6603_v59  ;;  %2866 = vmatpush.bf16.msra.mxu3 %v11124_v26  ;;  %v11149_v56 = vor.u32 %v8226_v44, %v6605_v17  ;;  %v8227_v11 = vld [vmem:[%s12631_s1 + $0x32c] sm:$0xf]  ;;  %v6613_v8 = vld [vmem:[%s12631_s1 + $0x338] sm:$0xf0]  ;;  %v11164_v20 = vld [vmem:[%s12632_s0 + $0x30] sm:$0xff] }
 0x374   :  { %13156 = vst [vmem:[#allocation112_spill] sm:$0xff] %v11108_v2  ;;  %2822 = vmatpush.bf16.msra.mxu2 %v11112_v52  ;;  %v11151_v35 = vor.u32 %v8229_v32, %v6611_v21  ;;  %v11159_v59 = vor.u32 %v8227_v11, %v6613_v8  ;;  %v6587_v17 = vld [vmem:[%s12631_s1 + $0x300] sm:$0xf]  ;;  %v8224_v21 = vld [vmem:[%s12631_s1 + $0x30c] sm:$0xf0] }
 0x375   :  { %13158 = vst [vmem:[#allocation147_spill] sm:$0xff] %v11121_v50  ;;  %2735 = vmatpush.bf16.msra.mxu0 %v11137_v55  ;;  %v8222_v32 = vld [vmem:[%s12631_s1 + $0x304] sm:$0xf]  ;;  %v13159_v11 = vld [vmem:[#allocation56_spill] sm:$0xff]  ;;  %v11182_v18 = vor.u32 %v8224_v21, %v6587_v17 }
 0x376   :  { %2779 = vmatpush.bf16.msra.mxu1 %v11149_v56  ;;  %v11199_v21 = vor.u32 %v8222_v32, %v6589_v61  ;;  %v13177_v32 = vld [vmem:[#allocation84_spill] sm:$0xff] }
 0x377   :  { %v2164_v44 = vpop.f32.mrf.mxu2  ;;  %2867 = vmatpush.bf16.msra.mxu3 %v11159_v59 }
 0x378   :  { %2823 = vmatpush.bf16.msra.mxu2 %v11151_v35  ;;  %v11179_v8 = vadd.f32 %v2164_v44, %v13159_v11  ;;  %v2208_v50 = vpop.f32.mrf.mxu3  ;;  %v2079_v2 = vpop.f32.mrf.mxu0  ;;  %v13161_v44 = vld [vmem:[#allocation13_spill] sm:$0xff] }
 0x379   :  { %v11194_v11 = vadd.f32 %v2208_v50, %v13161_v44  ;;  %2736 = vmatpush.bf16.msra.mxu0 %v11182_v18  ;;  %v6600_v50 = vor.u32 %v8223_v23, %v6597_v39 }
 0x37a   :  { %13160 = vst [vmem:[#allocation113_spill] sm:$0xff] %v11179_v8  ;;  %v13163_v8 = vld [vmem:[#allocation57_spill] sm:$0xff]  ;;  %v2123_v17 = vpop.f32.mrf.mxu1  ;;  %2780 = vmatpush.bf16.msra.mxu1 %v11199_v21 }
 0x37b   :  { %13162 = vst [vmem:[#allocation148_spill] sm:$0xff] %v11194_v11  ;;  %v11197_v63 = vadd.f32 %v2079_v2, %v13163_v8  ;;  %v11208_v30 = vadd.f32 %v2123_v17, %v13164_v6  ;;  %6538 = vmatmul.msk.bf16.gmra.mxu0 %vm254_vm0, %v11164_v20  ;;  %2868 = vmatpush.bf16.msra.mxu3 %v6600_v50  ;;  %v13180_v17 = vld [vmem:[#allocation59_spill] sm:$0xff] }
 0x37c   :  { %6552 = vmatmul.msk.bf16.gmra.mxu2 %vm254_vm0, %v11164_v20  ;;  %v13283_v11 = vld [vmem:[#allocation95_spill] sm:$0xff] }
 0x37d   :  { %6545 = vmatmul.msk.bf16.gmra.mxu1 %vm254_vm0, %v11164_v20  ;;  %6559 = vmatmul.msk.bf16.gmra.mxu3 %vm254_vm0, %v11164_v20 }
 0x37e   :  { %2824 = vmatpush.bf16.msra.mxu2 %v6596_v48  ;;  %3033 = vmatpush.bf16.msrb.mxu0 %v10896_v28 }
 0x37f   :  { %v2167_v6 = vpop.f32.mrf.mxu2  ;;  %3165 = vmatpush.bf16.msrb.mxu3 %v10894_v24  ;;  %3077 = vmatpush.bf16.msrb.mxu1 %v10905_v54 }
 0x380   :  { %v11224_v39 = vadd.f32 %v2167_v6, %v10436_v15  ;;  %v2211_v23 = vpop.f32.mrf.mxu3  ;;  %v2081_v38 = vpop.f32.mrf.mxu0  ;;  %v13181_v6 = vld [vmem:[#allocation16_spill] sm:$0xff] }
 0x381   :  { %v11228_v10 = vadd.f32 %v2211_v23, %v10439_v7  ;;  %v11231_v61 = vadd.f32 %v2081_v38, %v10441_v3  ;;  %v11244_v7 = vld [vmem:[%s12632_s0 + $0x38] sm:$0xff] }
 0x382   :  { %3121 = vmatpush.bf16.msrb.mxu2 %v10883_v51  ;;  %v2125_v2 = vpop.f32.mrf.mxu1  ;;  %3034 = vmatpush.bf16.msrb.mxu0 %v10991_v60 }
 0x383   :  { %13165 = vst [vmem:[#allocation114_spill] sm:$0xff] %v11231_v61  ;;  %v11234_v51 = vadd.f32 %v2125_v2, %v10443_v49  ;;  %3166 = vmatpush.bf16.msrb.mxu3 %v10961_v0  ;;  %3078 = vmatpush.bf16.msrb.mxu1 %v10998_v47  ;;  %v13182_v2 = vld [vmem:[#allocation60_spill] sm:$0xff] }
 0x385   :  { %13166 = vst [vmem:[#allocation149_spill] sm:$0xff] %v11234_v51  ;;  %v13235_v51 = vld [vmem:[#allocation76_spill] sm:$0xff] }
 0x386   :  { %3122 = vmatpush.bf16.msrb.mxu2 %v10956_v1  ;;  %3035 = vmatpush.bf16.msrb.mxu0 %v11066_v4 }
 0x387   :  { %v2169_v15 = vpop.f32.mrf.mxu2  ;;  %3167 = vmatpush.bf16.msrb.mxu3 %v11034_v9  ;;  %3079 = vmatpush.bf16.msrb.mxu1 %v11075_v14 }
 0x388   :  { %v11249_v3 = vadd.f32 %v2169_v15, %v10465_v25  ;;  %v2213_v49 = vpop.f32.mrf.mxu3  ;;  %v2084_v28 = vpop.f32.mrf.mxu0 }
 0x389   :  { %v11253_v24 = vadd.f32 %v2213_v49, %v10468_v41  ;;  %v11256_v54 = vadd.f32 %v2084_v28, %v10470_v36 }
 0x38a   :  { %3123 = vmatpush.bf16.msrb.mxu2 %v11029_v13  ;;  %13167 = vst [vmem:[#allocation115_spill] sm:$0xff] %v11249_v3  ;;  %v2128_v1 = vpop.f32.mrf.mxu1  ;;  %3036 = vmatpush.bf16.msrb.mxu0 %v11093_v5 }
 0x38b   :  { %13168 = vst [vmem:[#allocation150_spill] sm:$0xff] %v11253_v24  ;;  %v11259_v0 = vadd.f32 %v2128_v1, %v10472_v12  ;;  %6539 = vmatmul.msk.bf16.gmra.mxu0 %vm254_vm0, %v11244_v7  ;;  %3168 = vmatpush.bf16.msrb.mxu3 %v11124_v26  ;;  %v13183_v1 = vld [vmem:[#allocation17_spill] sm:$0xff] }
 0x38c   :  { %6553 = vmatmul.msk.bf16.gmra.mxu2 %vm254_vm0, %v11244_v7  ;;  %3080 = vmatpush.bf16.msrb.mxu1 %v11110_v43 }
 0x38d   :  { %6546 = vmatmul.msk.bf16.gmra.mxu1 %vm254_vm0, %v11244_v7  ;;  %6560 = vmatmul.msk.bf16.gmra.mxu3 %vm254_vm0, %v11244_v7 }
 0x38e   :  { %3124 = vmatpush.bf16.msrb.mxu2 %v11112_v52  ;;  %3037 = vmatpush.bf16.msrb.mxu0 %v11137_v55 }
 0x38f   :  { %v2172_v25 = vpop.f32.mrf.mxu2  ;;  %3169 = vmatpush.bf16.msrb.mxu3 %v11159_v59 }
 0x390   :  { %v11276_v41 = vadd.f32 %v2172_v25, %v10496_v46  ;;  %v2216_v36 = vpop.f32.mrf.mxu3  ;;  %v2086_v12 = vpop.f32.mrf.mxu0  ;;  %3081 = vmatpush.bf16.msrb.mxu1 %v11149_v56 }
 0x391   :  { %v11279_v60 = vadd.f32 %v2216_v36, %v10498_v33  ;;  %v11282_v47 = vadd.f32 %v2086_v12, %v10500_v37  ;;  %v13184_v36 = vld [vmem:[#allocation61_spill] sm:$0xff] }
 0x392   :  { %3125 = vmatpush.bf16.msrb.mxu2 %v11151_v35  ;;  %v2130_v13 = vpop.f32.mrf.mxu1  ;;  %3038 = vmatpush.bf16.msrb.mxu0 %v11182_v18 }
 0x393   :  { %13169 = vst [vmem:[#allocation8_spill] sm:$0xff] %v11282_v47  ;;  %v11286_v5 = vadd.f32 %v2130_v13, %v10503_v29  ;;  %3170 = vmatpush.bf16.msrb.mxu3 %v6600_v50 }
 0x394   :  { %3082 = vmatpush.bf16.msrb.mxu1 %v11199_v21 }
 0x395   :  { %13170 = vst [vmem:[#allocation116_spill] sm:$0xff] %v11286_v5  ;;  %v13223_v5 = vld [vmem:[#allocation73_spill] sm:$0xff] }
 0x396   :  { %3126 = vmatpush.bf16.msrb.mxu2 %v6596_v48 }
 0x397   :  { %v2174_v46 = vpop.f32.mrf.mxu2 }
 0x398   :  { %v11292_v33 = vadd.f32 %v2174_v46, %v10518_v34  ;;  %v2218_v37 = vpop.f32.mrf.mxu3  ;;  %v2089_v9 = vpop.f32.mrf.mxu0  ;;  %v13185_v46 = vld [vmem:[#allocation18_spill] sm:$0xff] }
 0x399   :  { %v11295_v4 = vadd.f32 %v2218_v37, %v10520_v19  ;;  %v11298_v29 = vadd.f32 %v2089_v9, %v10522_v40  ;;  %v13186_v9 = vld [vmem:[#allocation45_spill] sm:$0xff] }
 0x39a   :  { %13171 = vst [vmem:[#allocation151_spill] sm:$0xff] %v11292_v33  ;;  %v2133_v14 = vpop.f32.mrf.mxu1 }
 0x39b   :  { %13172 = vst [vmem:[#allocation117_spill] sm:$0xff] %v11295_v4  ;;  %v11301_v48 = vadd.f32 %v2133_v14, %v10524_v22  ;;  %6681 = vmatmul.msk.bf16.vlgmr.msra.gmra.mxu0 %vm254_vm0, %v10799_v31 }
 0x39c   :  { %6695 = vmatmul.msk.bf16.vlgmr.msra.gmra.mxu2 %vm254_vm0, %v10799_v31 }
 0x39d   :  { %6688 = vmatmul.msk.bf16.vlgmr.msra.gmra.mxu1 %vm254_vm0, %v10799_v31  ;;  %6702 = vmatmul.msk.bf16.vlgmr.msra.gmra.mxu3 %vm254_vm0, %v10799_v31 }
 0x39f   :  { %v2177_v34 = vpop.f32.mrf.mxu2 }
 0x3a0   :  { %v11312_v19 = vadd.f32 %v2177_v34, %v10542_v57  ;;  %v2221_v40 = vpop.f32.mrf.mxu3  ;;  %v2091_v18 = vpop.f32.mrf.mxu0  ;;  %v13187_v34 = vld [vmem:[#allocation62_spill] sm:$0xff] }
 0x3a1   :  { %v11315_v22 = vadd.f32 %v2221_v40, %v10544_v42  ;;  %v11318_v52 = vadd.f32 %v2091_v18, %v10546_v27 }
 0x3a2   :  { %v2135_v43 = vpop.f32.mrf.mxu1 }
 0x3a3   :  { %13173 = vst [vmem:[#allocation152_spill] sm:$0xff] %v11318_v52  ;;  %v11321_v26 = vadd.f32 %v2135_v43, %v10548_v45  ;;  %v13219_v52 = vld [vmem:[#allocation72_spill] sm:$0xff] }
 0x3a5   :  { %13174 = vst [vmem:[#allocation118_spill] sm:$0xff] %v11321_v26 }
 0x3a7   :  { %v2179_v55 = vpop.f32.mrf.mxu2 }
 0x3a8   :  { %v11324_v56 = vadd.f32 %v2179_v55, %v10558_v58  ;;  %v2223_v31 = vpop.f32.mrf.mxu3  ;;  %v2361_v35 = vpop.f32.mrf.mxu0  ;;  %v13178_v58 = vld [vmem:[#allocation58_spill] sm:$0xff]  ;;  %v13188_v55 = vld [vmem:[#allocation19_spill] sm:$0xff] }
 0x3a9   :  { %v11327_v57 = vadd.f32 %v2223_v31, %v10560_v16  ;;  %v11330_v59 = vadd.f32 %v2361_v35, %v10562_v62  ;;  %v13189_v35 = vld [vmem:[#allocation63_spill] sm:$0xff] }
 0x3aa   :  { %13175 = vst [vmem:[#allocation153_spill] sm:$0xff] %v11324_v56  ;;  %v2405_v42 = vpop.f32.mrf.mxu1 }
 0x3ab   :  { %13176 = vst [vmem:[#allocation119_spill] sm:$0xff] %v11327_v57  ;;  %v11333_v27 = vadd.f32 %v2405_v42, %v10564_v53  ;;  %6682 = vmatmul.msk.bf16.gmra.mxu0 %vm254_vm0, %v13177_v32  ;;  %v13179_v53 = vld [vmem:[#allocation15_spill] sm:$0xff]  ;;  %v13217_v57 = vld [vmem:[#allocation28_spill] sm:$0xff] }
 0x3ac   :  { %6696 = vmatmul.msk.bf16.gmra.mxu2 %vm254_vm0, %v13177_v32 }
 0x3ad   :  { %6689 = vmatmul.msk.bf16.gmra.mxu1 %vm254_vm0, %v13177_v32  ;;  %6703 = vmatmul.msk.bf16.gmra.mxu3 %vm254_vm0, %v13177_v32 }
 0x3af   :  { %v2449_v45 = vpop.f32.mrf.mxu2 }
 0x3b0   :  { %v11344_v16 = vadd.f32 %v2449_v45, %v13178_v58  ;;  %v2493_v62 = vpop.f32.mrf.mxu3  ;;  %v2363_v8 = vpop.f32.mrf.mxu0  ;;  %v13190_v45 = vld [vmem:[#allocation20_spill] sm:$0xff] }
 0x3b1   :  { %v11347_v44 = vadd.f32 %v2493_v62, %v13179_v53  ;;  %v11350_v21 = vadd.f32 %v2363_v8, %v13180_v17  ;;  %v13191_v8 = vld [vmem:[#allocation64_spill] sm:$0xff] }
 0x3b2   :  { %v2407_v50 = vpop.f32.mrf.mxu1 }
 0x3b3   :  { %v11353_v23 = vadd.f32 %v2407_v50, %v13181_v6  ;;  %v13192_v6 = vld [vmem:[#allocation21_spill] sm:$0xff] }
 0x3b7   :  { %v2451_v38 = vpop.f32.mrf.mxu2 }
 0x3b8   :  { %v11356_v15 = vadd.f32 %v2451_v38, %v13182_v2  ;;  %v2495_v49 = vpop.f32.mrf.mxu3  ;;  %v2366_v28 = vpop.f32.mrf.mxu0  ;;  %v13193_v2 = vld [vmem:[#allocation65_spill] sm:$0xff] }
 0x3b9   :  { %v11359_v25 = vadd.f32 %v2495_v49, %v13183_v1  ;;  %v11362_v12 = vadd.f32 %v2366_v28, %v13184_v36  ;;  %v13194_v1 = vld [vmem:[#allocation22_spill] sm:$0xff] }
 0x3ba   :  { %v2410_v13 = vpop.f32.mrf.mxu1 }
 0x3bb   :  { %v11365_v37 = vadd.f32 %v2410_v13, %v13185_v46  ;;  %6683 = vmatmul.msk.bf16.gmra.mxu0 %vm254_vm0, %v13186_v9  ;;  %v13195_v13 = vld [vmem:[#allocation97_spill] sm:$0xff] }
 0x3bc   :  { %6697 = vmatmul.msk.bf16.gmra.mxu2 %vm254_vm0, %v13186_v9 }
 0x3bd   :  { %6690 = vmatmul.msk.bf16.gmra.mxu1 %vm254_vm0, %v13186_v9  ;;  %6704 = vmatmul.msk.bf16.gmra.mxu3 %vm254_vm0, %v13186_v9  ;;  %v13196_v9 = vld [vmem:[#allocation66_spill] sm:$0xff] }
 0x3bf   :  { %v2454_v14 = vpop.f32.mrf.mxu2 }
 0x3c0   :  { %v11376_v40 = vadd.f32 %v2454_v14, %v13187_v34  ;;  %v2498_v18 = vpop.f32.mrf.mxu3  ;;  %v2368_v43 = vpop.f32.mrf.mxu0 }
 0x3c1   :  { %v11379_v31 = vadd.f32 %v2498_v18, %v13188_v55  ;;  %v11382_v42 = vadd.f32 %v2368_v43, %v13189_v35  ;;  %v13197_v43 = vld [vmem:[#allocation23_spill] sm:$0xff] }
 0x3c2   :  { %v2412_v32 = vpop.f32.mrf.mxu1  ;;  %v13198_v35 = vld [vmem:[#allocation67_spill] sm:$0xff] }
 0x3c3   :  { %v11385_v58 = vadd.f32 %v2412_v32, %v13190_v45 }
 0x3c7   :  { %v2456_v62 = vpop.f32.mrf.mxu2 }
 0x3c8   :  { %v11388_v53 = vadd.f32 %v2456_v62, %v13191_v8  ;;  %v2500_v17 = vpop.f32.mrf.mxu3  ;;  %v2371_v50 = vpop.f32.mrf.mxu0  ;;  %v13200_v62 = vld [vmem:[#allocation24_spill] sm:$0xff] }
 0x3c9   :  { %v11391_v38 = vadd.f32 %v2500_v17, %v13192_v6  ;;  %v11394_v49 = vadd.f32 %v2371_v50, %v13193_v2  ;;  %v13202_v50 = vld [vmem:[#allocation68_spill] sm:$0xff] }
 0x3ca   :  { %v2415_v28 = vpop.f32.mrf.mxu1 }
 0x3cb   :  { %v11397_v36 = vadd.f32 %v2415_v28, %v13194_v1  ;;  %6684 = vmatmul.msk.bf16.gmra.mxu0 %vm254_vm0, %v13195_v13  ;;  %v13204_v1 = vld [vmem:[#allocation25_spill] sm:$0xff] }
 0x3cc   :  { %6698 = vmatmul.msk.bf16.gmra.mxu2 %vm254_vm0, %v13195_v13 }
 0x3cd   :  { %6691 = vmatmul.msk.bf16.gmra.mxu1 %vm254_vm0, %v13195_v13  ;;  %6705 = vmatmul.msk.bf16.gmra.mxu3 %vm254_vm0, %v13195_v13 }
 0x3cf   :  { %v2459_v46 = vpop.f32.mrf.mxu2 }
 0x3d0   :  { %v11408_v14 = vadd.f32 %v2459_v46, %v13196_v9  ;;  %v2503_v34 = vpop.f32.mrf.mxu3  ;;  %v2373_v18 = vpop.f32.mrf.mxu0  ;;  %v13206_v46 = vld [vmem:[#allocation69_spill] sm:$0xff] }
 0x3d1   :  { %v11411_v55 = vadd.f32 %v2503_v34, %v13197_v43  ;;  %v11414_v32 = vadd.f32 %v2373_v18, %v13198_v35  ;;  %v13208_v43 = vld [vmem:[#allocation26_spill] sm:$0xff] }
 0x3d2   :  { %v2417_v45 = vpop.f32.mrf.mxu1  ;;  %v13210_v35 = vld [vmem:[#allocation106_spill] sm:$0xff] }
 0x3d3   :  { %13199 = vst [vmem:[#allocation154_spill] sm:$0xff] %v11414_v32  ;;  %v11417_v8 = vadd.f32 %v2417_v45, %v13200_v62  ;;  %v13211_v62 = vld [vmem:[#allocation70_spill] sm:$0xff] }
 0x3d4   :  { %v8257_v32 = vld [vmem:[%s12633_s3 + $0x20] sm:$0xff] }
 0x3d5   :  { %13201 = vst [vmem:[#allocation120_spill] sm:$0xff] %v11417_v8  ;;  %v8259_v8 = vld [vmem:[%s12633_s3 + $0x30] sm:$0xff] }
 0x3d7   :  { %v2461_v17 = vpop.f32.mrf.mxu2 }
 0x3d8   :  { %v11420_v6 = vadd.f32 %v2461_v17, %v13202_v50  ;;  %v2505_v2 = vpop.f32.mrf.mxu3  ;;  %v2376_v28 = vpop.f32.mrf.mxu0 }
 0x3d9   :  { %v11423_v13 = vadd.f32 %v2505_v2, %v13204_v1  ;;  %v11426_v9 = vadd.f32 %v2376_v28, %v13206_v46  ;;  %v13213_v28 = vld [vmem:[#allocation27_spill] sm:$0xff] }
 0x3da   :  { %13203 = vst [vmem:[#allocation155_spill] sm:$0xff] %v11420_v6  ;;  %v2420_v34 = vpop.f32.mrf.mxu1  ;;  %v13215_v46 = vld [vmem:[#allocation71_spill] sm:$0xff] }
 0x3db   :  { %13205 = vst [vmem:[#allocation121_spill] sm:$0xff] %v11423_v13  ;;  %v11429_v18 = vadd.f32 %v2420_v34, %v13208_v43  ;;  %6685 = vmatmul.msk.bf16.gmra.mxu0 %vm254_vm0, %v13210_v35  ;;  %v13296_v13 = vld [vmem:[#allocation109_spill] sm:$0xff] }
 0x3dc   :  { %13207 = vst [vmem:[#allocation156_spill] sm:$0xff] %v11426_v9  ;;  %6699 = vmatmul.msk.bf16.gmra.mxu2 %vm254_vm0, %v13210_v35  ;;  %v13288_v9 = vld [vmem:[#allocation101_spill] sm:$0xff] }
 0x3dd   :  { %13209 = vst [vmem:[#allocation122_spill] sm:$0xff] %v11429_v18  ;;  %6692 = vmatmul.msk.bf16.gmra.mxu1 %vm254_vm0, %v13210_v35  ;;  %6706 = vmatmul.msk.bf16.gmra.mxu3 %vm254_vm0, %v13210_v35  ;;  %v13286_v18 = vld [vmem:[#allocation99_spill] sm:$0xff] }
 0x3df   :  { %v2464_v45 = vpop.f32.mrf.mxu2 }
 0x3e0   :  { %v11440_v17 = vadd.f32 %v2464_v45, %v13211_v62  ;;  %v2508_v50 = vpop.f32.mrf.mxu3  ;;  %v2378_v2 = vpop.f32.mrf.mxu0  ;;  %v13221_v45 = vld [vmem:[#allocation29_spill] sm:$0xff] }
 0x3e1   :  { %v11443_v1 = vadd.f32 %v2508_v50, %v13213_v28  ;;  %v11446_v34 = vadd.f32 %v2378_v2, %v13215_v46  ;;  %v13225_v28 = vld [vmem:[#allocation30_spill] sm:$0xff]  ;;  %v13229_v46 = vld [vmem:[#allocation31_spill] sm:$0xff] }
 0x3e2   :  { %13212 = vst [vmem:[#allocation157_spill] sm:$0xff] %v11440_v17  ;;  %v2422_v43 = vpop.f32.mrf.mxu1 }
 0x3e3   :  { %13214 = vst [vmem:[#allocation123_spill] sm:$0xff] %v11443_v1  ;;  %v11449_v56 = vadd.f32 %v2422_v43, %v13217_v57  ;;  %v13285_v1 = vld [vmem:[#allocation98_spill] sm:$0xff] }
 0x3e4   :  { %13216 = vst [vmem:[#allocation158_spill] sm:$0xff] %v11446_v34 }
 0x3e5   :  { %13218 = vst [vmem:[#allocation124_spill] sm:$0xff] %v11449_v56 }
 0x3e7   :  { %v2466_v26 = vpop.f32.mrf.mxu2 }
 0x3e8   :  { %v11452_v4 = vadd.f32 %v2466_v26, %v13219_v52  ;;  %v2510_v35 = vpop.f32.mrf.mxu3  ;;  %v2381_v33 = vpop.f32.mrf.mxu0  ;;  %v13227_v26 = vld [vmem:[#allocation74_spill] sm:$0xff] }
 0x3e9   :  { %v11455_v62 = vadd.f32 %v2510_v35, %v13221_v45  ;;  %v11458_v47 = vadd.f32 %v2381_v33, %v13223_v5  ;;  %v13231_v35 = vld [vmem:[#allocation75_spill] sm:$0xff] }
 0x3ea   :  { %13220 = vst [vmem:[#allocation159_spill] sm:$0xff] %v11452_v4  ;;  %v2425_v50 = vpop.f32.mrf.mxu1  ;;  %v13284_v4 = vld [vmem:[#allocation96_spill] sm:$0xff] }
 0x3eb   :  { %13222 = vst [vmem:[#allocation125_spill] sm:$0xff] %v11455_v62  ;;  %v11461_v2 = vadd.f32 %v2425_v50, %v13225_v28  ;;  %6686 = vmatmul.msk.bf16.gmra.mxu0 %vm254_vm0, %v11164_v20  ;;  %v13233_v28 = vld [vmem:[#allocation32_spill] sm:$0xff] }
 0x3ec   :  { %13224 = vst [vmem:[#allocation160_spill] sm:$0xff] %v11458_v47  ;;  %6700 = vmatmul.msk.bf16.gmra.mxu2 %vm254_vm0, %v11164_v20  ;;  %v13280_v62 = vld [vmem:[#allocation92_spill] sm:$0xff] }
 0x3ed   :  { %13226 = vst [vmem:[#allocation126_spill] sm:$0xff] %v11461_v2  ;;  %6693 = vmatmul.msk.bf16.gmra.mxu1 %vm254_vm0, %v11164_v20  ;;  %6707 = vmatmul.msk.bf16.gmra.mxu3 %vm254_vm0, %v11164_v20 }
 0x3ef   :  { %v2469_v52 = vpop.f32.mrf.mxu2 }
 0x3f0   :  { %v11472_v5 = vadd.f32 %v2469_v52, %v13227_v26  ;;  %v2513_v33 = vpop.f32.mrf.mxu3  ;;  %v2383_v57 = vpop.f32.mrf.mxu0  ;;  %v13237_v52 = vld [vmem:[#allocation33_spill] sm:$0xff] }
 0x3f1   :  { %v11475_v43 = vadd.f32 %v2513_v33, %v13229_v46  ;;  %v11478_v45 = vadd.f32 %v2383_v57, %v13231_v35  ;;  %v13241_v46 = vld [vmem:[#allocation34_spill] sm:$0xff] }
 0x3f2   :  { %13228 = vst [vmem:[#allocation161_spill] sm:$0xff] %v11472_v5  ;;  %v2427_v50 = vpop.f32.mrf.mxu1  ;;  %v13239_v5 = vld [vmem:[#allocation77_spill] sm:$0xff] }
 0x3f3   :  { %13230 = vst [vmem:[#allocation127_spill] sm:$0xff] %v11475_v43  ;;  %v11481_v24 = vadd.f32 %v2427_v50, %v13233_v28  ;;  %v13245_v50 = vld [vmem:[#allocation35_spill] sm:$0xff]  ;;  %v13278_v43 = vld [vmem:[#allocation90_spill] sm:$0xff] }
 0x3f4   :  { %13232 = vst [vmem:[#allocation162_spill] sm:$0xff] %v11478_v45 }
 0x3f5   :  { %13234 = vst [vmem:[#allocation128_spill] sm:$0xff] %v11481_v24  ;;  %v13277_v24 = vld [vmem:[#allocation89_spill] sm:$0xff] }
 0x3f7   :  { %v2471_v3 = vpop.f32.mrf.mxu2 }
 0x3f8   :  { %v11484_v61 = vadd.f32 %v2471_v3, %v13235_v51  ;;  %v2515_v20 = vpop.f32.mrf.mxu3  ;;  %v2386_v2 = vpop.f32.mrf.mxu0  ;;  %v13243_v3 = vld [vmem:[#allocation78_spill] sm:$0xff] }
 0x3f9   :  { %v11487_v26 = vadd.f32 %v2515_v20, %v13237_v52  ;;  %v11490_v47 = vadd.f32 %v2386_v2, %v13239_v5  ;;  %v13247_v20 = vld [vmem:[#allocation79_spill] sm:$0xff] }
 0x3fa   :  { %13236 = vst [vmem:[#allocation163_spill] sm:$0xff] %v11484_v61  ;;  %v2430_v33 = vpop.f32.mrf.mxu1  ;;  %v13253_v61 = vld [vmem:[#allocation37_spill] sm:$0xff] }
 0x3fb   :  { %13238 = vst [vmem:[#allocation129_spill] sm:$0xff] %v11487_v26  ;;  %v11493_v57 = vadd.f32 %v2430_v33, %v13241_v46  ;;  %6687 = vmatmul.msk.bf16.gmra.mxu0 %vm254_vm0, %v11244_v7  ;;  %v13249_v46 = vld [vmem:[#allocation36_spill] sm:$0xff] }
 0x3fc   :  { %13240 = vst [vmem:[#allocation164_spill] sm:$0xff] %v11490_v47  ;;  %6701 = vmatmul.msk.bf16.gmra.mxu2 %vm254_vm0, %v11244_v7  ;;  %v13251_v26 = vld [vmem:[#allocation80_spill] sm:$0xff] }
 0x3fd   :  { %13242 = vst [vmem:[#allocation130_spill] sm:$0xff] %v11493_v57  ;;  %6694 = vmatmul.msk.bf16.gmra.mxu1 %vm254_vm0, %v11244_v7  ;;  %6708 = vmatmul.msk.bf16.gmra.mxu3 %vm254_vm0, %v11244_v7  ;;  %v8246_v7 = vld [vmem:[%s12632_s0 + $0x48] sm:$0xff] }
 0x3ff   :  { %v2474_v51 = vpop.f32.mrf.mxu2 }
 0x400   :  { %v11504_v2 = vadd.f32 %v2474_v51, %v13243_v3  ;;  %v2518_v5 = vpop.f32.mrf.mxu3  ;;  %v2388_v35 = vpop.f32.mrf.mxu0 }
 0x401   :  { %v11507_v28 = vadd.f32 %v2518_v5, %v13245_v50  ;;  %v11510_v52 = vadd.f32 %v2388_v35, %v13247_v20  ;;  %v13255_v50 = vld [vmem:[#allocation81_spill] sm:$0xff] }
 0x402   :  { %13244 = vst [vmem:[#allocation165_spill] sm:$0xff] %v11504_v2  ;;  %v2432_v33 = vpop.f32.mrf.mxu1 }
 0x403   :  { %13246 = vst [vmem:[#allocation131_spill] sm:$0xff] %v11507_v28  ;;  %v11513_v57 = vadd.f32 %v2432_v33, %v13249_v46  ;;  %v13269_v28 = vld [vmem:[#allocation85_spill] sm:$0xff] }
 0x404   :  { %13248 = vst [vmem:[#allocation166_spill] sm:$0xff] %v11510_v52  ;;  %v13257_v52 = vld [vmem:[#allocation38_spill] sm:$0xff] }
 0x405   :  { %13250 = vst [vmem:[#allocation132_spill] sm:$0xff] %v11513_v57  ;;  %v13267_v57 = vld [vmem:[#allocation41_spill] sm:$0xff] }
 0x407   :  { %v2476_v47 = vpop.f32.mrf.mxu2 }
 0x408   :  { %v11519_v51 = vadd.f32 %v2476_v47, %v13251_v26  ;;  %v2520_v3 = vpop.f32.mrf.mxu3  ;;  %v2391_v2 = vpop.f32.mrf.mxu0  ;;  %v13259_v26 = vld [vmem:[#allocation82_spill] sm:$0xff] }
 0x409   :  { %v11522_v5 = vadd.f32 %v2520_v3, %v13253_v61  ;;  %v11525_v35 = vadd.f32 %v2391_v2, %v13255_v50  ;;  %v13261_v2 = vld [vmem:[#allocation39_spill] sm:$0xff] }
 0x40a   :  { %13252 = vst [vmem:[#allocation167_spill] sm:$0xff] %v11519_v51  ;;  %v2435_v20 = vpop.f32.mrf.mxu1 }
 0x40b   :  { %13254 = vst [vmem:[#allocation133_spill] sm:$0xff] %v11522_v5  ;;  %v11528_v33 = vadd.f32 %v2435_v20, %v13257_v52  ;;  %6751 = vmatmul.msk.bf16.vlgmr.msrb.gmra.mxu0 %vm254_vm0, %v8246_v7 }
 0x40c   :  { %13256 = vst [vmem:[#allocation168_spill] sm:$0xff] %v11525_v35  ;;  %6765 = vmatmul.msk.bf16.vlgmr.msrb.gmra.mxu2 %vm254_vm0, %v8246_v7  ;;  %v13263_v35 = vld [vmem:[#allocation83_spill] sm:$0xff] }
 0x40d   :  { %13258 = vst [vmem:[#allocation134_spill] sm:$0xff] %v11528_v33  ;;  %6758 = vmatmul.msk.bf16.vlgmr.msrb.gmra.mxu1 %vm254_vm0, %v8246_v7  ;;  %6772 = vmatmul.msk.bf16.vlgmr.msrb.gmra.mxu3 %vm254_vm0, %v8246_v7  ;;  %v13265_v33 = vld [vmem:[#allocation40_spill] sm:$0xff] }
 0x40e   :  { %v8247_v7 = vld [vmem:[%s12632_s0 + $0x50] sm:$0xff] }
 0x40f   :  { %v2479_v47 = vpop.f32.mrf.mxu2 }
 0x410   :  { %v11535_v46 = vadd.f32 %v2479_v47, %v13259_v26  ;;  %v2523_v61 = vpop.f32.mrf.mxu3  ;;  %v2393_v3 = vpop.f32.mrf.mxu0 }
 0x411   :  { %v11538_v50 = vadd.f32 %v2523_v61, %v13261_v2  ;;  %v11541_v52 = vadd.f32 %v2393_v3, %v13263_v35  ;;  %v13271_v2 = vld [vmem:[#allocation42_spill] sm:$0xff] }
 0x412   :  { %13260 = vst [vmem:[#allocation169_spill] sm:$0xff] %v11535_v46  ;;  %v2437_v20 = vpop.f32.mrf.mxu1 }
 0x413   :  { %13262 = vst [vmem:[#allocation135_spill] sm:$0xff] %v11538_v50  ;;  %v11544_v5 = vadd.f32 %v2437_v20, %v13265_v33 }
 0x414   :  { %13264 = vst [vmem:[#allocation170_spill] sm:$0xff] %v11541_v52  ;;  %v13272_v52 = vld [vmem:[#allocation86_spill] sm:$0xff] }
 0x415   :  { %13266 = vst [vmem:[#allocation136_spill] sm:$0xff] %v11544_v5 }
 0x417   :  { %v2481_v51 = vpop.f32.mrf.mxu2 }
 0x418   :  { %v11550_v47 = vadd.f32 %v2481_v51, %v13267_v57  ;;  %v2525_v26 = vpop.f32.mrf.mxu3  ;;  %v2738_v46 = vpop.f32.mrf.mxu0  ;;  %v13273_v51 = vld [vmem:[#allocation43_spill] sm:$0xff] }
 0x419   :  { %v11553_v61 = vadd.f32 %v2525_v26, %v13269_v28  ;;  %v11556_v35 = vadd.f32 %v2738_v46, %v13271_v2  ;;  %v13274_v46 = vld [vmem:[#allocation87_spill] sm:$0xff] }
 0x41a   :  { %13268 = vst [vmem:[#allocation171_spill] sm:$0xff] %v11550_v47  ;;  %v2782_v3 = vpop.f32.mrf.mxu1  ;;  %v13276_v47 = vld [vmem:[#allocation88_spill] sm:$0xff] }
 0x41b   :  { %13270 = vst [vmem:[#allocation137_spill] sm:$0xff] %v11553_v61  ;;  %v11559_v33 = vadd.f32 %v2782_v3, %v13272_v52  ;;  %6752 = vmatmul.msk.bf16.gmra.mxu0 %vm254_vm0, %v8247_v7  ;;  %v13275_v61 = vld [vmem:[#allocation44_spill] sm:$0xff] }
 0x41c   :  { %6766 = vmatmul.msk.bf16.gmra.mxu2 %vm254_vm0, %v8247_v7 }
 0x41d   :  { %6759 = vmatmul.msk.bf16.gmra.mxu1 %vm254_vm0, %v8247_v7  ;;  %6773 = vmatmul.msk.bf16.gmra.mxu3 %vm254_vm0, %v8247_v7  ;;  %v8248_v7 = vld [vmem:[%s12632_s0 + $0x58] sm:$0xff] }
 0x41f   :  { %v2826_v57 = vpop.f32.mrf.mxu2 }
 0x420   :  { %v11566_v20 = vadd.f32 %v2826_v57, %v13273_v51  ;;  %v2870_v28 = vpop.f32.mrf.mxu3  ;;  %v2740_v26 = vpop.f32.mrf.mxu0 }
 0x421   :  { %v11569_v2 = vadd.f32 %v2870_v28, %v13274_v46  ;;  %v11572_v52 = vadd.f32 %v2740_v26, %v13275_v61  ;;  %v13279_v46 = vld [vmem:[#allocation91_spill] sm:$0xff] }
 0x422   :  { %v2784_v3 = vpop.f32.mrf.mxu1 }
 0x423   :  { %v11575_v5 = vadd.f32 %v2784_v3, %v13276_v47 }
 0x427   :  { %v2828_v50 = vpop.f32.mrf.mxu2 }
 0x428   :  { %v11581_v57 = vadd.f32 %v2828_v50, %v13277_v24  ;;  %v2872_v51 = vpop.f32.mrf.mxu3  ;;  %v2743_v45 = vpop.f32.mrf.mxu0  ;;  %v13281_v50 = vld [vmem:[#allocation93_spill] sm:$0xff] }
 0x429   :  { %v11584_v28 = vadd.f32 %v2872_v51, %v13278_v43  ;;  %v11587_v61 = vadd.f32 %v2743_v45, %v13279_v46  ;;  %v13282_v45 = vld [vmem:[#allocation94_spill] sm:$0xff] }
 0x42a   :  { %v2787_v26 = vpop.f32.mrf.mxu1 }
 0x42b   :  { %v11590_v47 = vadd.f32 %v2787_v26, %v13280_v62  ;;  %6753 = vmatmul.msk.bf16.gmra.mxu0 %vm254_vm0, %v8248_v7 }
 0x42c   :  { %6767 = vmatmul.msk.bf16.gmra.mxu2 %vm254_vm0, %v8248_v7 }
 0x42d   :  { %6760 = vmatmul.msk.bf16.gmra.mxu1 %vm254_vm0, %v8248_v7  ;;  %6774 = vmatmul.msk.bf16.gmra.mxu3 %vm254_vm0, %v8248_v7  ;;  %v8249_v7 = vld [vmem:[%s12632_s0 + $0x60] sm:$0xff] }
 0x42f   :  { %v2831_v24 = vpop.f32.mrf.mxu2 }
 0x430   :  { %v11597_v3 = vadd.f32 %v2831_v24, %v13281_v50  ;;  %v2875_v43 = vpop.f32.mrf.mxu3  ;;  %v2745_v51 = vpop.f32.mrf.mxu0 }
 0x431   :  { %v11600_v46 = vadd.f32 %v2875_v43, %v13282_v45  ;;  %v11603_v62 = vadd.f32 %v2745_v51, %v13283_v11  ;;  %v13287_v45 = vld [vmem:[#allocation100_spill] sm:$0xff] }
 0x432   :  { %v2789_v26 = vpop.f32.mrf.mxu1 }
 0x433   :  { %v11606_v56 = vadd.f32 %v2789_v26, %v13284_v4 }
 0x437   :  { %v2833_v34 = vpop.f32.mrf.mxu2 }
 0x438   :  { %v11612_v24 = vadd.f32 %v2833_v34, %v13285_v1  ;;  %v2877_v50 = vpop.f32.mrf.mxu3  ;;  %v2748_v17 = vpop.f32.mrf.mxu0  ;;  %v13289_v34 = vld [vmem:[#allocation102_spill] sm:$0xff] }
 0x439   :  { %v11615_v43 = vadd.f32 %v2877_v50, %v13286_v18  ;;  %v11618_v11 = vadd.f32 %v2748_v17, %v13287_v45  ;;  %v13291_v17 = vld [vmem:[#allocation103_spill] sm:$0xff] }
 0x43a   :  { %v2792_v51 = vpop.f32.mrf.mxu1 }
 0x43b   :  { %v11621_v4 = vadd.f32 %v2792_v51, %v13288_v9  ;;  %6754 = vmatmul.msk.bf16.gmra.mxu0 %vm254_vm0, %v8249_v7  ;;  %v8260_v51 = vld [vmem:[%s12633_s3 + $0x38] sm:$0xff] }
 0x43c   :  { %6768 = vmatmul.msk.bf16.gmra.mxu2 %vm254_vm0, %v8249_v7  ;;  %3559 = vmatpush.bf16.msra.mxu0 %v8260_v51  ;;  %v8267_v51 = vld [vmem:[%s12633_s3 + $0x70] sm:$0xff] }
 0x43d   :  { %6761 = vmatmul.msk.bf16.gmra.mxu1 %vm254_vm0, %v8249_v7  ;;  %6775 = vmatmul.msk.bf16.gmra.mxu3 %vm254_vm0, %v8249_v7  ;;  %v8268_v7 = vld [vmem:[%s12633_s3 + $0x78] sm:$0xff] }
 0x43e   :  { %3572 = vmatpush.bf16.msra.mxu1 %v8268_v7  ;;  %v13298_v7 = vld [vmem:[#allocation110_spill] sm:$0xff] }
 0x43f   :  { %v2836_v1 = vpop.f32.mrf.mxu2 }
 0x440   :  { %v11628_v26 = vadd.f32 %v2836_v1, %v13289_v34  ;;  %v2880_v18 = vpop.f32.mrf.mxu3  ;;  %v11630_v50 = vpop.f32.mrf.mxu0  ;;  %v8250_v34 = vld [vmem:[%s12632_s0 + $0x68] sm:$0xff]  ;;  %3560 = vmatpush.bf16.msra.mxu0 %v8259_v8 }
 0x441   :  { %v11633_v45 = vadd.f32 %v2880_v18, %v13291_v17 }
 0x442   :  { %13290 = vst [vmem:[#allocation172_spill] sm:$0xff] %v11628_v26  ;;  %v11635_v9 = vpop.f32.mrf.mxu1  ;;  %3573 = vmatpush.bf16.msra.mxu1 %v8267_v51  ;;  %v13300_v51 = vld [vmem:[#allocation111_spill] sm:$0xff] }
 0x443   :  { %13292 = vst [vmem:[#allocation138_spill] sm:$0xff] %v11633_v45 }
 0x444   :  { %13293 = vst [vmem:[#allocation173_spill] sm:$0xff] %v11635_v9 }
 0x447   :  { %v11643_v1 = vpop.f32.mrf.mxu2 }
 0x448   :  { %13294 = vst [vmem:[#allocation139_spill] sm:$0xff] %v11643_v1  ;;  %v11648_v18 = vpop.f32.mrf.mxu3  ;;  %v2753_v17 = vpop.f32.mrf.mxu0 }
 0x449   :  { %13295 = vst [vmem:[#allocation174_spill] sm:$0xff] %v11648_v18  ;;  %v11651_v6 = vadd.f32 %v2753_v17, %v13296_v13  ;;  %v8276_v18 = vld [vmem:[%s12633_s3 + $0xb8] sm:$0xff]  ;;  %v8266_v17 = vld [vmem:[%s12633_s3 + $0x68] sm:$0xff] }
 0x44a   :  { %v2797_v45 = vpop.f32.mrf.mxu1  ;;  %v8284_v13 = vld [vmem:[%s12633_s3 + $0xf8] sm:$0xff]  ;;  %3725 = vmatpush.bf16.msra.mxu2 %v8276_v18  ;;  %3574 = vmatpush.bf16.msra.mxu1 %v8266_v17  ;;  %v8265_v18 = vld [vmem:[%s12633_s3 + $0x60] sm:$0xff]  ;;  %v8274_v17 = vld [vmem:[%s12633_s3 + $0xa8] sm:$0xff] }
 0x44b   :  { %13297 = vst [vmem:[#allocation140_spill] sm:$0xff] %v11651_v6  ;;  %v11660_v1 = vadd.f32 %v2797_v45, %v13298_v7  ;;  %6755 = vmatmul.msk.bf16.gmra.mxu0 %vm254_vm0, %v8250_v34  ;;  %v8258_v45 = vld [vmem:[%s12633_s3 + $0x28] sm:$0xff]  ;;  %3738 = vmatpush.bf16.msra.mxu3 %v8284_v13  ;;  %v8275_v13 = vld [vmem:[%s12633_s3 + $0xb0] sm:$0xff] }
 0x44c   :  { %6769 = vmatmul.msk.bf16.gmra.mxu2 %vm254_vm0, %v8250_v34  ;;  %3561 = vmatpush.bf16.msra.mxu0 %v8258_v45  ;;  %v8264_v45 = vld [vmem:[%s12633_s3 + $0x58] sm:$0xff] }
 0x44d   :  { %13299 = vst [vmem:[#allocation175_spill] sm:$0xff] %v11660_v1  ;;  %6762 = vmatmul.msk.bf16.gmra.mxu1 %vm254_vm0, %v8250_v34  ;;  %6776 = vmatmul.msk.bf16.gmra.mxu3 %vm254_vm0, %v8250_v34  ;;  %v13302_v34 = vld [vmem:[#allocation146_spill] sm:$0xff] }
 0x44e   :  { %3575 = vmatpush.bf16.msra.mxu1 %v8265_v18  ;;  %3726 = vmatpush.bf16.msra.mxu2 %v8275_v13  ;;  %v8251_v18 = vld [vmem:[%s12632_s0 + $0x70] sm:$0xff] }
 0x44f   :  { %v2841_v7 = vpop.f32.mrf.mxu2 }
 0x450   :  { %v11679_v1 = vadd.f32 %v2841_v7, %v13300_v51  ;;  %v2885_v6 = vpop.f32.mrf.mxu3  ;;  %v11681_v26 = vpop.f32.mrf.mxu0  ;;  %v8282_v7 = vld [vmem:[%s12633_s3 + $0xe8] sm:$0xff]  ;;  %3562 = vmatpush.bf16.msra.mxu0 %v8257_v32  ;;  %v8256_v51 = vld [vmem:[%s12633_s3 + $0x18] sm:$0xff] }
 0x451   :  { %v11684_v8 = vadd.f32 %v2885_v6, %v13302_v34  ;;  %v8283_v6 = vld [vmem:[%s12633_s3 + $0xf0] sm:$0xff] }
 0x452   :  { %13301 = vst [vmem:[#allocation141_spill] sm:$0xff] %v11679_v1  ;;  %v11686_v9 = vpop.f32.mrf.mxu1  ;;  %3739 = vmatpush.bf16.msra.mxu3 %v8283_v6  ;;  %3576 = vmatpush.bf16.msra.mxu1 %v8264_v45  ;;  %v8255_v1 = vld [vmem:[%s12633_s3 + $0x10] sm:$0xff] }
 0x453   :  { %13303 = vst [vmem:[#allocation176_spill] sm:$0xff] %v11684_v8  ;;  %3727 = vmatpush.bf16.msra.mxu2 %v8274_v17  ;;  %v8273_v17 = vld [vmem:[%s12633_s3 + $0xa0] sm:$0xff] }
 0x454   :  { %3563 = vmatpush.bf16.msra.mxu0 %v8256_v51  ;;  %v8272_v51 = vld [vmem:[%s12633_s3 + $0x98] sm:$0xff] }
 0x456   :  { %3740 = vmatpush.bf16.msra.mxu3 %v8282_v7  ;;  %v8262_v7 = vld [vmem:[%s12633_s3 + $0x48] sm:$0xff] }
 0x457   :  { %v11712_v34 = vpop.f32.mrf.mxu2  ;;  %3728 = vmatpush.bf16.msra.mxu2 %v8273_v17 }
 0x458   :  { %13304 = vst [vmem:[#allocation142_spill] sm:$0xff] %v11712_v34  ;;  %v11717_v13 = vpop.f32.mrf.mxu3  ;;  %v2758_v6 = vpop.f32.mrf.mxu0  ;;  %v8263_v34 = vld [vmem:[%s12633_s3 + $0x50] sm:$0xff]  ;;  %3564 = vmatpush.bf16.msra.mxu0 %v8255_v1 }
 0x459   :  { %v11720_v8 = vadd.f32 %v2758_v6, %v11197_v63  ;;  %v8281_v63 = vld [vmem:[%s12633_s3 + $0xe0] sm:$0xff]  ;;  %3577 = vmatpush.bf16.msra.mxu1 %v8263_v34  ;;  %v8280_v34 = vld [vmem:[%s12633_s3 + $0xd8] sm:$0xff] }
 0x45a   :  { %v2802_v32 = vpop.f32.mrf.mxu1  ;;  %3741 = vmatpush.bf16.msra.mxu3 %v8281_v63  ;;  %v8253_v63 = vld [vmem:[%s12633_s3] sm:$0xff] }
 0x45b   :  { %v11729_v45 = vadd.f32 %v2802_v32, %v11208_v30  ;;  %6756 = vmatmul.msk.bf16.gmra.mxu0 %vm254_vm0, %v8251_v18  ;;  %v8254_v30 = vld [vmem:[%s12633_s3 + $0x8] sm:$0xff]  ;;  %3729 = vmatpush.bf16.msra.mxu2 %v8272_v51 }
 0x45c   :  { %6770 = vmatmul.msk.bf16.gmra.mxu2 %vm254_vm0, %v8251_v18  ;;  %3565 = vmatpush.bf16.msra.mxu0 %v8254_v30  ;;  %v8300_v30 = vld [vmem:[%s12633_s3 + $0x178] sm:$0xff]  ;;  %v8270_v51 = vld [vmem:[%s12633_s3 + $0x88] sm:$0xff] }
 0x45d   :  { %13305 = vst [vmem:[#allocation177_spill] sm:$0xff] %v11729_v45  ;;  %6763 = vmatmul.msk.bf16.gmra.mxu1 %vm254_vm0, %v8251_v18  ;;  %6777 = vmatmul.msk.bf16.gmra.mxu3 %vm254_vm0, %v8251_v18 }
 0x45e   :  { %3578 = vmatpush.bf16.msra.mxu1 %v8262_v7  ;;  %v8261_v7 = vld [vmem:[%s12633_s3 + $0x40] sm:$0xff]  ;;  %3742 = vmatpush.bf16.msra.mxu3 %v8280_v34  ;;  %v8278_v34 = vld [vmem:[%s12633_s3 + $0xc8] sm:$0xff] }
 0x45f   :  { %v2846_v6 = vpop.f32.mrf.mxu2 }
 0x460   :  { %v11754_v32 = vadd.f32 %v2846_v6, %v11224_v39  ;;  %v2890_v1 = vpop.f32.mrf.mxu3  ;;  %v11756_v18 = vpop.f32.mrf.mxu0  ;;  %v8271_v39 = vld [vmem:[%s12633_s3 + $0x90] sm:$0xff]  ;;  %v8292_v6 = vld [vmem:[%s12633_s3 + $0x138] sm:$0xff]  ;;  %3566 = vmatpush.bf16.msra.mxu0 %v8253_v63 }
 0x461   :  { %v11759_v45 = vadd.f32 %v2890_v1, %v11228_v10  ;;  %v8279_v10 = vld [vmem:[%s12633_s3 + $0xd0] sm:$0xff]  ;;  %3730 = vmatpush.bf16.msra.mxu2 %v8271_v39  ;;  %v8252_v63 = vld [vmem:[%s12632_s0 + $0x78] sm:$0xff] }
 0x462   :  { %13306 = vst [vmem:[#allocation143_spill] sm:$0xff] %v11754_v32  ;;  %v11761_v17 = vpop.f32.mrf.mxu1  ;;  %3579 = vmatpush.bf16.msra.mxu1 %v8261_v7  ;;  %3743 = vmatpush.bf16.msra.mxu3 %v8279_v10  ;;  %v8299_v1 = vld [vmem:[%s12633_s3 + $0x170] sm:$0xff] }
 0x463   :  { %13307 = vst [vmem:[#allocation178_spill] sm:$0xff] %v11759_v45  ;;  %v8291_v32 = vld [vmem:[%s12633_s3 + $0x130] sm:$0xff] }
 0x464   :  { %13308 = vst [vmem:[#allocation144_spill] sm:$0xff] %v11761_v17  ;;  %3888 = vmatpush.bf16.msrb.mxu0 %v8292_v6  ;;  %v8269_v6 = vld [vmem:[%s12633_s3 + $0x80] sm:$0xff] }
 0x465   :  { %3731 = vmatpush.bf16.msra.mxu2 %v8270_v51  ;;  %v8290_v51 = vld [vmem:[%s12633_s3 + $0x128] sm:$0xff] }
 0x466   :  { %3901 = vmatpush.bf16.msrb.mxu1 %v8300_v30  ;;  %3744 = vmatpush.bf16.msra.mxu3 %v8278_v34 }
 0x467   :  { %v11790_v7 = vpop.f32.mrf.mxu2 }
 0x468   :  { %v11795_v39 = vpop.f32.mrf.mxu3  ;;  %v2763_v10 = vpop.f32.mrf.mxu0  ;;  %3889 = vmatpush.bf16.msrb.mxu0 %v8291_v32 }
 0x469   :  { %v11798_v30 = vadd.f32 %v2763_v10, %v11256_v54  ;;  %v8298_v54 = vld [vmem:[%s12633_s3 + $0x168] sm:$0xff]  ;;  %3732 = vmatpush.bf16.msra.mxu2 %v8269_v6  ;;  %v8297_v10 = vld [vmem:[%s12633_s3 + $0x160] sm:$0xff]  ;;  %v8315_v6 = vld [vmem:[%s12633_s3 + $0x1f0] sm:$0xff] }
 0x46a   :  { %3902 = vmatpush.bf16.msrb.mxu1 %v8299_v1  ;;  %v2807_v45 = vpop.f32.mrf.mxu1  ;;  %v8277_v1 = vld [vmem:[%s12633_s3 + $0xc0] sm:$0xff] }
 0x46b   :  { %13309 = vst [vmem:[#allocation179_spill] sm:$0xff] %v11798_v30  ;;  %v11804_v17 = vadd.f32 %v2807_v45, %v11259_v0  ;;  %6757 = vmatmul.msk.bf16.gmra.mxu0 %vm254_vm0, %v8252_v63  ;;  %v8308_v0 = vld [vmem:[%s12633_s3 + $0x1b8] sm:$0xff]  ;;  %3745 = vmatpush.bf16.msra.mxu3 %v8277_v1 }
 0x46c   :  { %6771 = vmatmul.msk.bf16.gmra.mxu2 %vm254_vm0, %v8252_v63  ;;  %v8316_v45 = vld [vmem:[%s12633_s3 + $0x1f8] sm:$0xff]  ;;  %3890 = vmatpush.bf16.msrb.mxu0 %v8290_v51 }
 0x46d   :  { %13310 = vst [vmem:[#allocation145_spill] sm:$0xff] %v11804_v17  ;;  %6764 = vmatmul.msk.bf16.gmra.mxu1 %vm254_vm0, %v8252_v63  ;;  %6778 = vmatmul.msk.bf16.gmra.mxu3 %vm254_vm0, %v8252_v63  ;;  %v8307_v17 = vld [vmem:[%s12633_s3 + $0x1b0] sm:$0xff]  ;;  %v8288_v51 = vld [vmem:[%s12633_s3 + $0x118] sm:$0xff] }
 0x46e   :  { %3903 = vmatpush.bf16.msrb.mxu1 %v8298_v54  ;;  %4051 = vmatpush.bf16.msrb.mxu2 %v8308_v0  ;;  %v8289_v0 = vld [vmem:[%s12633_s3 + $0x120] sm:$0xff] }
 0x46f   :  { %v2851_v34 = vpop.f32.mrf.mxu2  ;;  %4064 = vmatpush.bf16.msrb.mxu3 %v8316_v45  ;;  %v8306_v45 = vld [vmem:[%s12633_s3 + $0x1a8] sm:$0xff] }
 0x470   :  { %v11835_v63 = vadd.f32 %v2851_v34, %v11276_v41  ;;  %v2895_v32 = vpop.f32.mrf.mxu3  ;;  %v11837_v30 = vpop.f32.mrf.mxu0  ;;  %v8296_v41 = vld [vmem:[%s12633_s3 + $0x158] sm:$0xff]  ;;  %3891 = vmatpush.bf16.msrb.mxu0 %v8289_v0  ;;  %v8313_v0 = vld [vmem:[%s12633_s3 + $0x1e0] sm:$0xff] }
 0x471   :  { %v11843_v1 = vadd.f32 %v2895_v32, %v11279_v60  ;;  %v8314_v60 = vld [vmem:[%s12633_s3 + $0x1e8] sm:$0xff] }
 0x472   :  { %v11845_v54 = vpop.f32.mrf.mxu1  ;;  %3904 = vmatpush.bf16.msrb.mxu1 %v8297_v10  ;;  %4052 = vmatpush.bf16.msrb.mxu2 %v8307_v17  ;;  %v8295_v17 = vld [vmem:[%s12633_s3 + $0x150] sm:$0xff]  ;;  %v8305_v10 = vld [vmem:[%s12633_s3 + $0x1a0] sm:$0xff] }
 0x473   :  { %13311 = vst [vmem:[#allocation180_spill] sm:$0xff] %v11843_v1  ;;  %4065 = vmatpush.bf16.msrb.mxu3 %v8315_v6 }
 0x474   :  { %3892 = vmatpush.bf16.msrb.mxu0 %v8288_v51  ;;  %v8312_v51 = vld [vmem:[%s12633_s3 + $0x1d8] sm:$0xff] }
 0x476   :  { %3905 = vmatpush.bf16.msrb.mxu1 %v8296_v41  ;;  %4053 = vmatpush.bf16.msrb.mxu2 %v8306_v45  ;;  %v8287_v45 = vld [vmem:[%s12633_s3 + $0x110] sm:$0xff] }
 0x477   :  { %v11862_v34 = vpop.f32.mrf.mxu2  ;;  %4066 = vmatpush.bf16.msrb.mxu3 %v8314_v60  ;;  %v8294_v60 = vld [vmem:[%s12633_s3 + $0x148] sm:$0xff] }
 0x478   :  { %13312 = vst [vmem:[#allocation181_spill] sm:$0xff] %v11862_v34  ;;  %v11870_v32 = vpop.f32.mrf.mxu3  ;;  %v2768_v6 = vpop.f32.mrf.mxu0  ;;  %3893 = vmatpush.bf16.msrb.mxu0 %v8287_v45 }
 0x479   :  { %v11876_v34 = vadd.f32 %v2768_v6, %v11298_v29  ;;  %v8304_v29 = vld [vmem:[%s12633_s3 + $0x198] sm:$0xff]  ;;  %v8303_v6 = vld [vmem:[%s12633_s3 + $0x190] sm:$0xff] }
 0x47a   :  { %v2812_v41 = vpop.f32.mrf.mxu1  ;;  %3906 = vmatpush.bf16.msrb.mxu1 %v8295_v17  ;;  %4054 = vmatpush.bf16.msrb.mxu2 %v8305_v10  ;;  %v8293_v10 = vld [vmem:[%s12633_s3 + $0x140] sm:$0xff] }
 0x47b   :  { %13313 = vst [vmem:[#allocation182_spill] sm:$0xff] %v11876_v34  ;;  %v11882_v1 = vadd.f32 %v2812_v41, %v11301_v48  ;;  %4067 = vmatpush.bf16.msrb.mxu3 %v8313_v0  ;;  %v8286_v48 = vld [vmem:[%s12633_s3 + $0x108] sm:$0xff]  ;;  %v8285_v34 = vld [vmem:[%s12633_s3 + $0x100] sm:$0xff] }
 0x47c   :  { %3894 = vmatpush.bf16.msrb.mxu0 %v8286_v48  ;;  %v8301_v48 = vld [vmem:[%s12633_s3 + $0x180] sm:$0xff] }
 0x47d   :  { %13314 = vst [vmem:[#allocation183_spill] sm:$0xff] %v11882_v1 }
 0x47e   :  { %3907 = vmatpush.bf16.msrb.mxu1 %v8294_v60  ;;  %4055 = vmatpush.bf16.msrb.mxu2 %v8304_v29  ;;  %v8311_v60 = vld [vmem:[%s12633_s3 + $0x1d0] sm:$0xff] }
 0x47f   :  { %v2856_v17 = vpop.f32.mrf.mxu2  ;;  %4068 = vmatpush.bf16.msrb.mxu3 %v8312_v51  ;;  %v8310_v51 = vld [vmem:[%s12633_s3 + $0x1c8] sm:$0xff] }
 0x480   :  { %v11903_v0 = vadd.f32 %v2856_v17, %v11312_v19  ;;  %v2900_v41 = vpop.f32.mrf.mxu3  ;;  %v11905_v45 = vpop.f32.mrf.mxu0  ;;  %v8302_v19 = vld [vmem:[%s12633_s3 + $0x188] sm:$0xff]  ;;  %3895 = vmatpush.bf16.msrb.mxu0 %v8285_v34 }
 0x481   :  { %v11911_v29 = vadd.f32 %v2900_v41, %v11315_v22 }
 0x482   :  { %13315 = vst [vmem:[#allocation184_spill] sm:$0xff] %v11903_v0  ;;  %v11913_v1 = vpop.f32.mrf.mxu1  ;;  %3908 = vmatpush.bf16.msrb.mxu1 %v8293_v10  ;;  %4056 = vmatpush.bf16.msrb.mxu2 %v8303_v6  ;;  %v8309_v6 = vld [vmem:[%s12633_s3 + $0x1c0] sm:$0xff] }
 0x483   :  { %13316 = vst [vmem:[#allocation185_spill] sm:$0xff] %v11911_v29  ;;  %4069 = vmatpush.bf16.msrb.mxu3 %v8311_v60 }
 0x484   :  { %13317 = vst [vmem:[#allocation186_spill] sm:$0xff] %v11913_v1 }
 0x486   :  { %4057 = vmatpush.bf16.msrb.mxu2 %v8302_v19 }
 0x487   :  { %v11924_v22 = vpop.f32.mrf.mxu2  ;;  %4070 = vmatpush.bf16.msrb.mxu3 %v8310_v51  ;;  %v3347_v51 = vld [vmem:[%s12634_s2] sm:$0x3] }
 0x488   :  { %13318 = vst [vmem:[#allocation187_spill] sm:$0xff] %v11924_v22  ;;  %v11929_v17 = vpop.f32.mrf.mxu3  ;;  %v3040_v10 = vpop.f32.mrf.mxu0 }
 0x489   :  { %13319 = vst [vmem:[#allocation188_spill] sm:$0xff] %v11929_v17  ;;  %v3207_v41 = vadd.f32 %v3040_v10, %v11330_v59 }
 0x48a   :  { %v3084_v60 = vpop.f32.mrf.mxu1  ;;  %4058 = vmatpush.bf16.msrb.mxu2 %v8301_v48  ;;  %v11945_v48 = vperm.slane %v3347_v51, 0 }
 0x48b   :  { %v3208_v34 = vadd.f32 %v3084_v60, %v11333_v27  ;;  %v3263_v22 = vmax.f32 %v11556_v35, %v3207_v41  ;;  %4071 = vmatpush.bf16.msrb.mxu3 %v8309_v6  ;;  %v11949_v41 = vperm.slane %v3347_v51, 1 }
 0x48d   :  { %v3264_v19 = vmax.f32 %v11559_v33, %v3208_v34 }
 0x48f   :  { %v3128_v29 = vpop.f32.mrf.mxu2 }
 0x490   :  { %v3209_v17 = vadd.f32 %v3128_v29, %v11344_v16  ;;  %v3172_v0 = vpop.f32.mrf.mxu3  ;;  %v3042_v1 = vpop.f32.mrf.mxu0 }
 0x491   :  { %v3210_v59 = vadd.f32 %v3172_v0, %v11347_v44  ;;  %v3211_v10 = vadd.f32 %v3042_v1, %v11350_v21 }
 0x492   :  { %v3086_v27 = vpop.f32.mrf.mxu1  ;;  %v3265_v35 = vmax.f32 %v11566_v20, %v3209_v17 }
 0x493   :  { %v3212_v33 = vadd.f32 %v3086_v27, %v11353_v23  ;;  %v3266_v6 = vmax.f32 %v11569_v2, %v3210_v59  ;;  %v3267_v60 = vmax.f32 %v11572_v52, %v3211_v10 }
 0x494   :  { %v3319_v16 = vmax.f32 %v3263_v22, %v3265_v35 }
 0x495   :  { %v3268_v29 = vmax.f32 %v11575_v5, %v3212_v33  ;;  %v3320_v34 = vmax.f32 %v3264_v19, %v3266_v6 }
 0x496   :  { %v3353_v44 = vadd.f32 %v11945_v48, %v3319_v16 }
 0x497   :  { %v3354_v21 = vadd.f32 %v11949_v41, %v3320_v34  ;;  %v3130_v1 = vpop.f32.mrf.mxu2 }
 0x498   :  { %v3381_v20 = vmax.f32 %v3353_v44, 0.0  ;;  %v3213_v0 = vadd.f32 %v3130_v1, %v11356_v15  ;;  %v3174_v17 = vpop.f32.mrf.mxu3  ;;  %v3045_v23 = vpop.f32.mrf.mxu0 }
 0x499   :  { %v3382_v27 = vmax.f32 %v3354_v21, 0.0  ;;  %v3214_v2 = vadd.f32 %v3174_v17, %v11359_v25  ;;  %v3215_v51 = vadd.f32 %v3045_v23, %v11362_v12  ;;  %v8324_v12 = vld [vmem:[%s12633_s3 + $0x238] sm:$0xff] }
 0x49a   :  { %v3089_v52 = vpop.f32.mrf.mxu1  ;;  %v3269_v22 = vmax.f32 %v11581_v57, %v3213_v0 }
 0x49b   :  { %v3216_v5 = vadd.f32 %v3089_v52, %v11365_v37  ;;  %v3409_v19 = vpack.c.bf16 %v3382_v27, %v3381_v20  ;;  %v3270_v59 = vmax.f32 %v11584_v28, %v3214_v2  ;;  %v3271_v10 = vmax.f32 %v11587_v61, %v3215_v51  ;;  %v8332_v37 = vld [vmem:[%s12633_s3 + $0x278] sm:$0xff]  ;;  %v8331_v27 = vld [vmem:[%s12633_s3 + $0x270] sm:$0xff] }
 0x49c   :  { %v3321_v35 = vmax.f32 %v3267_v60, %v3269_v22 }
 0x49d   :  { %v3272_v15 = vmax.f32 %v11590_v47, %v3216_v5  ;;  %v3457_v33 = vunpack.c.l.b16 %v3409_v19  ;;  %v3458_v6 = vunpack.c.h.b16 %v3409_v19  ;;  %v3322_v16 = vmax.f32 %v3268_v29, %v3270_v59  ;;  %v8322_v19 = vld [vmem:[%s12633_s3 + $0x228] sm:$0xff] }
 0x49e   :  { %v3355_v25 = vadd.f32 %v11945_v48, %v3321_v35  ;;  %v8340_v35 = vld [vmem:[%s12633_s3 + $0x2b8] sm:$0xff] }
 0x49f   :  { %v3459_v57 = vpack.c.b16 %v3457_v33, %v3457_v33  ;;  %v3460_v28 = vpack.c.b16 %v3458_v6, %v3458_v6  ;;  %v3356_v61 = vadd.f32 %v11949_v41, %v3322_v16  ;;  %v3133_v60 = vpop.f32.mrf.mxu2 }
 0x4a0   :  { %v3383_v34 = vmax.f32 %v3355_v25, 0.0  ;;  %v3217_v47 = vadd.f32 %v3133_v60, %v11376_v40  ;;  %v3177_v44 = vpop.f32.mrf.mxu3  ;;  %v3047_v29 = vpop.f32.mrf.mxu0  ;;  %v8323_v40 = vld [vmem:[%s12633_s3 + $0x230] sm:$0xff] }
 0x4a1   :  { %v3384_v21 = vmax.f32 %v3356_v61, 0.0  ;;  %v3218_v1 = vadd.f32 %v3177_v44, %v11379_v31  ;;  %3567 = vmatmul.bf16.vlgmr.msra.gmra.mxu0 %v3459_v57  ;;  %3580 = vmatmul.bf16.vlgmr.msra.gmra.mxu1 %v3460_v28  ;;  %v3219_v20 = vadd.f32 %v3047_v29, %v11382_v42 }
 0x4a2   :  { %v3091_v0 = vpop.f32.mrf.mxu1  ;;  %v3273_v17 = vmax.f32 %v11597_v3, %v3217_v47  ;;  %4214 = vmatpush.bf16.msra.mxu0 %v8324_v12  ;;  %4227 = vmatpush.bf16.msra.mxu1 %v8332_v37 }
 0x4a3   :  { %v3220_v23 = vadd.f32 %v3091_v0, %v11385_v58  ;;  %v3410_v31 = vpack.c.bf16 %v3384_v21, %v3383_v34  ;;  %v3274_v2 = vmax.f32 %v11600_v46, %v3218_v1  ;;  %v3275_v42 = vmax.f32 %v11603_v62, %v3219_v20  ;;  %v8330_v46 = vld [vmem:[%s12633_s3 + $0x268] sm:$0xff]  ;;  %v8329_v34 = vld [vmem:[%s12633_s3 + $0x260] sm:$0xff]  ;;  %v8328_v0 = vld [vmem:[%s12633_s3 + $0x258] sm:$0xff] }
 0x4a4   :  { %v3323_v51 = vmax.f32 %v3271_v10, %v3273_v17 }
 0x4a5   :  { %v3276_v3 = vmax.f32 %v11606_v56, %v3220_v23  ;;  %v3623_v52 = vunpack.c.l.b16 %v3410_v31  ;;  %v3624_v22 = vunpack.c.h.b16 %v3410_v31  ;;  %v3324_v5 = vmax.f32 %v3272_v15, %v3274_v2  ;;  %v8348_v15 = vld [vmem:[%s12633_s3 + $0x2f8] sm:$0xff]  ;;  %v8346_v31 = vld [vmem:[%s12633_s3 + $0x2e8] sm:$0xff] }
 0x4a6   :  { %v3357_v58 = vadd.f32 %v11945_v48, %v3323_v51  ;;  %4215 = vmatpush.bf16.msra.mxu0 %v8323_v40  ;;  %4228 = vmatpush.bf16.msra.mxu1 %v8331_v27  ;;  %v8338_v27 = vld [vmem:[%s12633_s3 + $0x2a8] sm:$0xff] }
 0x4a7   :  { %v3358_v62 = vadd.f32 %v11949_v41, %v3324_v5  ;;  %v3135_v59 = vpop.f32.mrf.mxu2  ;;  %v3625_v10 = vpack.c.b16 %v3623_v52, %v3623_v52  ;;  %v3626_v56 = vpack.c.b16 %v3624_v22, %v3624_v22  ;;  %v13320_v52 = vld [vmem:[#allocation104_spill] sm:$0xff] }
 0x4a8   :  { %v3385_v33 = vmax.f32 %v3357_v58, 0.0  ;;  %v3221_v6 = vadd.f32 %v3135_v59, %v11388_v53  ;;  %v3179_v16 = vpop.f32.mrf.mxu3  ;;  %v3050_v25 = vpop.f32.mrf.mxu0  ;;  %v8321_v53 = vld [vmem:[%s12633_s3 + $0x220] sm:$0xff]  ;;  %v12036_v22 = vadd.f32 %v11630_v50, %v13320_v52  ;;  %v13322_v59 = vld [vmem:[#allocation105_spill] sm:$0xff]  ;;  %v8319_v50 = vld [vmem:[%s12633_s3 + $0x210] sm:$0xff] }
 0x4a9   :  { %v3386_v12 = vmax.f32 %v3358_v62, 0.0  ;;  %v3222_v37 = vadd.f32 %v3179_v16, %v11391_v38  ;;  %3733 = vmatmul.bf16.vlgmr.msra.gmra.mxu2 %v3625_v10  ;;  %3746 = vmatmul.bf16.vlgmr.msra.gmra.mxu3 %v3626_v56  ;;  %v3223_v57 = vadd.f32 %v3050_v25, %v11394_v49  ;;  %v13323_v10 = vld [vmem:[#allocation173_spill] sm:$0xff]  ;;  %v13326_v16 = vld [vmem:[#allocation138_spill] sm:$0xff]  ;;  %v13333_v52 = vld [vmem:[#allocation156_spill] sm:$0xff] }
 0x4aa   :  { %v3094_v28 = vpop.f32.mrf.mxu1  ;;  %v3277_v61 = vmax.f32 %v11612_v24, %v3221_v6  ;;  %4216 = vmatpush.bf16.msra.mxu0 %v8322_v19  ;;  %4229 = vmatpush.bf16.msra.mxu1 %v8330_v46  ;;  %v8339_v24 = vld [vmem:[%s12633_s3 + $0x2b0] sm:$0xff]  ;;  %v13321_v19 = vld [vmem:[#allocation154_spill] sm:$0xff]  ;;  %v12042_v56 = vadd.f32 %v13323_v10, %v13322_v59 }
 0x4ab   :  { %v3224_v60 = vadd.f32 %v3094_v28, %v11397_v36  ;;  %v3411_v38 = vpack.c.bf16 %v3386_v12, %v3385_v33  ;;  %v3278_v47 = vmax.f32 %v11615_v43, %v3222_v37  ;;  %4377 = vmatpush.bf16.msra.mxu2 %v8340_v35  ;;  %4390 = vmatpush.bf16.msra.mxu3 %v8348_v15  ;;  %v8347_v36 = vld [vmem:[%s12633_s3 + $0x2f0] sm:$0xff]  ;;  %v8337_v37 = vld [vmem:[%s12633_s3 + $0x2a0] sm:$0xff] }
 0x4ac   :  { %v3279_v49 = vmax.f32 %v11618_v11, %v3223_v57  ;;  %v3325_v44 = vmax.f32 %v3275_v42, %v3277_v61  ;;  %v8320_v11 = vld [vmem:[%s12633_s3 + $0x218] sm:$0xff]  ;;  %v13324_v35 = vld [vmem:[#allocation172_spill] sm:$0xff]  ;;  %v8345_v57 = vld [vmem:[%s12633_s3 + $0x2e0] sm:$0xff] }
 0x4ad   :  { %v3280_v29 = vmax.f32 %v11621_v4, %v3224_v60  ;;  %v3786_v21 = vunpack.c.l.b16 %v3411_v38  ;;  %v3787_v1 = vunpack.c.h.b16 %v3411_v38  ;;  %v3326_v20 = vmax.f32 %v3276_v3, %v3278_v47  ;;  %v13325_v15 = vld [vmem:[#allocation120_spill] sm:$0xff]  ;;  %v8318_v47 = vld [vmem:[%s12633_s3 + $0x208] sm:$0xff]  ;;  %v8325_v59 = vld [vmem:[%s12633_s3 + $0x240] sm:$0xff] }
 0x4ae   :  { %v3359_v43 = vadd.f32 %v11945_v48, %v3325_v44  ;;  %4217 = vmatpush.bf16.msra.mxu0 %v8321_v53  ;;  %4230 = vmatpush.bf16.msra.mxu1 %v8329_v34 }
 0x4af   :  { %v3788_v17 = vpack.c.b16 %v3786_v21, %v3786_v21  ;;  %v3789_v23 = vpack.c.b16 %v3787_v1, %v3787_v1  ;;  %v3360_v40 = vadd.f32 %v11949_v41, %v3326_v20  ;;  %4378 = vmatpush.bf16.msra.mxu2 %v8339_v24  ;;  %4391 = vmatpush.bf16.msra.mxu3 %v8347_v36  ;;  %v3138_v4 = vpop.f32.mrf.mxu2  ;;  %v8326_v24 = vld [vmem:[%s12633_s3 + $0x248] sm:$0xff]  ;;  %v8344_v1 = vld [vmem:[%s12633_s3 + $0x2d8] sm:$0xff] }
 0x4b0   :  { %v3387_v2 = vmax.f32 %v3359_v43, 0.0  ;;  %v3225_v42 = vadd.f32 %v3138_v4, %v11408_v14  ;;  %v3182_v51 = vpop.f32.mrf.mxu3  ;;  %v3052_v3 = vpop.f32.mrf.mxu0  ;;  %v13327_v20 = vld [vmem:[#allocation107_spill] sm:$0xff] }
 0x4b1   :  { %v3388_v5 = vmax.f32 %v3360_v40, 0.0  ;;  %v3226_v58 = vadd.f32 %v3182_v51, %v11411_v55  ;;  %3896 = vmatmul.bf16.vlgmr.msrb.gmra.mxu0 %v3788_v17  ;;  %3909 = vmatmul.bf16.vlgmr.msrb.gmra.mxu1 %v3789_v23  ;;  %v3227_v46 = vadd.f32 %v3052_v3, %v13321_v19  ;;  %v8327_v55 = vld [vmem:[%s12633_s3 + $0x250] sm:$0xff]  ;;  %v13328_v43 = vld [vmem:[#allocation139_spill] sm:$0xff]  ;;  %v13332_v51 = vld [vmem:[#allocation121_spill] sm:$0xff] }
 0x4b2   :  { %v3096_v62 = vpop.f32.mrf.mxu1  ;;  %v3281_v14 = vmax.f32 %v13324_v35, %v3225_v42  ;;  %4218 = vmatpush.bf16.msra.mxu0 %v8320_v11  ;;  %4231 = vmatpush.bf16.msra.mxu1 %v8328_v0  ;;  %v2927_v11 = vadd.f32 %v13328_v43, %v13327_v20  ;;  %v13329_v17 = vld [vmem:[#allocation155_spill] sm:$0xff]  ;;  %v13334_v19 = vld [vmem:[#allocation122_spill] sm:$0xff]  ;;  %v13335_v35 = vld [vmem:[#allocation140_spill] sm:$0xff] }
 0x4b3   :  { %v3228_v33 = vadd.f32 %v3096_v62, %v13325_v15  ;;  %v3412_v6 = vpack.c.bf16 %v3388_v5, %v3387_v2  ;;  %v3282_v25 = vmax.f32 %v13326_v16, %v3226_v58  ;;  %4379 = vmatpush.bf16.msra.mxu2 %v8338_v27  ;;  %4392 = vmatpush.bf16.msra.mxu3 %v8346_v31  ;;  %v13330_v27 = vld [vmem:[#allocation108_spill] sm:$0xff]  ;;  %v13331_v31 = vld [vmem:[#allocation174_spill] sm:$0xff]  ;;  %v8356_v16 = vld [vmem:[%s12633_s3 + $0x338] sm:$0xff] }
 0x4b4   :  { %v3283_v12 = vmax.f32 %v12036_v22, %v3227_v46  ;;  %v3327_v28 = vmax.f32 %v3279_v49, %v3281_v14  ;;  %v2928_v2 = vadd.f32 %v13331_v31, %v13330_v27  ;;  %v8317_v62 = vld [vmem:[%s12633_s3 + $0x200] sm:$0xff]  ;;  %v8335_v15 = vld [vmem:[%s12633_s3 + $0x290] sm:$0xff]  ;;  %v13341_v27 = vld [vmem:[#allocation147_spill] sm:$0xff] }
 0x4b5   :  { %v3284_v61 = vmax.f32 %v12042_v56, %v3228_v33  ;;  %v3949_v60 = vunpack.c.l.b16 %v3412_v6  ;;  %v3950_v53 = vunpack.c.h.b16 %v3412_v6  ;;  %v3328_v34 = vmax.f32 %v3280_v29, %v3282_v25  ;;  %v8336_v29 = vld [vmem:[%s12633_s3 + $0x298] sm:$0xff]  ;;  %v8343_v33 = vld [vmem:[%s12633_s3 + $0x2d0] sm:$0xff] }
 0x4b6   :  { %v3361_v38 = vadd.f32 %v11945_v48, %v3327_v28  ;;  %4219 = vmatpush.bf16.msra.mxu0 %v8319_v50  ;;  %4232 = vmatpush.bf16.msra.mxu1 %v8327_v55  ;;  %v13336_v55 = vld [vmem:[#allocation175_spill] sm:$0xff]  ;;  %v8364_v25 = vld [vmem:[%s12633_s3 + $0x378] sm:$0xff]  ;;  %v13338_v20 = vld [vmem:[#allocation112_spill] sm:$0xff]  ;;  %v2934_v31 = vadd.f32 %v11686_v9, %v13341_v27 }
 0x4b7   :  { %v3362_v36 = vadd.f32 %v11949_v41, %v3328_v34  ;;  %4380 = vmatpush.bf16.msra.mxu2 %v8337_v37  ;;  %4393 = vmatpush.bf16.msra.mxu3 %v8345_v57  ;;  %v3140_v49 = vpop.f32.mrf.mxu2  ;;  %v3951_v44 = vpack.c.b16 %v3949_v60, %v3949_v60  ;;  %v3952_v21 = vpack.c.b16 %v3950_v53, %v3950_v53  ;;  %v13352_v27 = vld [vmem:[#allocation177_spill] sm:$0xff] }
 0x4b8   :  { %v3389_v0 = vmax.f32 %v3361_v38, 0.0  ;;  %v3229_v23 = vadd.f32 %v3140_v49, %v13329_v17  ;;  %v3184_v40 = vpop.f32.mrf.mxu3  ;;  %v3055_v4 = vpop.f32.mrf.mxu0  ;;  %v2933_v43 = vadd.f32 %v11681_v26, %v13338_v20  ;;  %v8371_v20 = vld [vmem:[%s12633_s3 + $0x3b0] sm:$0xff] }
 0x4b9   :  { %v3390_v42 = vmax.f32 %v3362_v36, 0.0  ;;  %v3230_v3 = vadd.f32 %v3184_v40, %v13332_v51  ;;  %4059 = vmatmul.bf16.vlgmr.msrb.gmra.mxu2 %v3951_v44  ;;  %4072 = vmatmul.bf16.vlgmr.msrb.gmra.mxu3 %v3952_v21  ;;  %v3231_v22 = vadd.f32 %v3055_v4, %v13333_v52  ;;  %v13337_v36 = vld [vmem:[#allocation157_spill] sm:$0xff]  ;;  %v13343_v51 = vld [vmem:[#allocation124_spill] sm:$0xff] }
 0x4ba   :  { %v3099_v5 = vpop.f32.mrf.mxu1  ;;  %v3285_v58 = vmax.f32 %v2927_v11, %v3229_v23  ;;  %4220 = vmatpush.bf16.msra.mxu0 %v8318_v47  ;;  %4233 = vmatpush.bf16.msra.mxu1 %v8326_v24  ;;  %v8334_v47 = vld [vmem:[%s12633_s3 + $0x288] sm:$0xff]  ;;  %v13340_v23 = vld [vmem:[#allocation158_spill] sm:$0xff] }
 0x4bb   :  { %v3232_v46 = vadd.f32 %v3099_v5, %v13334_v19  ;;  %v3413_v10 = vpack.c.bf16 %v3390_v42, %v3389_v0  ;;  %v3286_v56 = vmax.f32 %v2928_v2, %v3230_v3  ;;  %4381 = vmatpush.bf16.msra.mxu2 %v8336_v29  ;;  %4394 = vmatpush.bf16.msra.mxu3 %v8344_v1  ;;  %v8342_v24 = vld [vmem:[%s12633_s3 + $0x2c8] sm:$0xff]  ;;  %v8355_v29 = vld [vmem:[%s12633_s3 + $0x330] sm:$0xff]  ;;  %v13342_v2 = vld [vmem:[#allocation141_spill] sm:$0xff] }
 0x4bc   :  { %v3287_v14 = vmax.f32 %v13335_v35, %v3231_v22  ;;  %v3329_v50 = vmax.f32 %v3283_v12, %v3285_v58  ;;  %v8363_v1 = vld [vmem:[%s12633_s3 + $0x370] sm:$0xff]  ;;  %v13339_v0 = vld [vmem:[#allocation123_spill] sm:$0xff]  ;;  %v8333_v58 = vld [vmem:[%s12633_s3 + $0x280] sm:$0xff] }
 0x4bd   :  { %v3288_v6 = vmax.f32 %v13336_v55, %v3232_v46  ;;  %v4112_v37 = vunpack.c.l.b16 %v3413_v10  ;;  %v4113_v57 = vunpack.c.h.b16 %v3413_v10  ;;  %v3330_v28 = vmax.f32 %v3284_v61, %v3286_v56  ;;  %v13344_v22 = vld [vmem:[#allocation176_spill] sm:$0xff]  ;;  %v8341_v19 = vld [vmem:[%s12633_s3 + $0x2c0] sm:$0xff] }
 0x4be   :  { %v3363_v60 = vadd.f32 %v11945_v48, %v3329_v50  ;;  %4221 = vmatpush.bf16.msra.mxu0 %v8317_v62  ;;  %4234 = vmatpush.bf16.msra.mxu1 %v8325_v59  ;;  %v8354_v62 = vld [vmem:[%s12633_s3 + $0x328] sm:$0xff] }
 0x4bf   :  { %v4114_v53 = vpack.c.b16 %v4112_v37, %v4112_v37  ;;  %v4115_v34 = vpack.c.b16 %v4113_v57, %v4113_v57  ;;  %v3364_v12 = vadd.f32 %v11949_v41, %v3330_v28  ;;  %4382 = vmatpush.bf16.msra.mxu2 %v8335_v15  ;;  %4395 = vmatpush.bf16.msra.mxu3 %v8343_v33  ;;  %v3143_v38 = vpop.f32.mrf.mxu2  ;;  %v8362_v59 = vld [vmem:[%s12633_s3 + $0x368] sm:$0xff]  ;;  %v8372_v15 = vld [vmem:[%s12633_s3 + $0x3b8] sm:$0xff]  ;;  %v13346_v57 = vld [vmem:[#allocation142_spill] sm:$0xff] }
 0x4c0   :  { %v3391_v61 = vmax.f32 %v3363_v60, 0.0  ;;  %v3233_v49 = vadd.f32 %v3143_v38, %v13337_v36  ;;  %v3187_v44 = vpop.f32.mrf.mxu3  ;;  %v3057_v21 = vpop.f32.mrf.mxu0  ;;  %v13345_v37 = vld [vmem:[#allocation113_spill] sm:$0xff]  ;;  %v13347_v60 = vld [vmem:[#allocation159_spill] sm:$0xff]  ;;  %v8353_v38 = vld [vmem:[%s12633_s3 + $0x320] sm:$0xff] }
 0x4c1   :  { %v3392_v11 = vmax.f32 %v3364_v12, 0.0  ;;  %v3234_v17 = vadd.f32 %v3187_v44, %v13339_v0  ;;  %4222 = vmatmul.bf16.vlgmr.msra.gmra.mxu0 %v4114_v53  ;;  %4235 = vmatmul.bf16.vlgmr.msra.gmra.mxu1 %v4115_v34  ;;  %v3235_v40 = vadd.f32 %v3057_v21, %v13340_v23  ;;  %v13350_v21 = vld [vmem:[#allocation160_spill] sm:$0xff] }
 0x4c2   :  { %4540 = vmatpush.bf16.msrb.mxu0 %v8356_v16  ;;  %4553 = vmatpush.bf16.msrb.mxu1 %v8364_v25  ;;  %v3101_v4 = vpop.f32.mrf.mxu1  ;;  %v3289_v42 = vmax.f32 %v13342_v2, %v3233_v49  ;;  %v13349_v49 = vld [vmem:[#allocation125_spill] sm:$0xff] }
 0x4c3   :  { %v3236_v3 = vadd.f32 %v3101_v4, %v13343_v51  ;;  %v3414_v52 = vpack.c.bf16 %v3392_v11, %v3391_v61  ;;  %v3290_v5 = vmax.f32 %v13344_v22, %v3234_v17  ;;  %4383 = vmatpush.bf16.msra.mxu2 %v8334_v47  ;;  %4396 = vmatpush.bf16.msra.mxu3 %v8342_v24  ;;  %v8361_v47 = vld [vmem:[%s12633_s3 + $0x360] sm:$0xff]  ;;  %v13348_v24 = vld [vmem:[#allocation148_spill] sm:$0xff]  ;;  %v8352_v2 = vld [vmem:[%s12633_s3 + $0x318] sm:$0xff] }
 0x4c4   :  { %v3291_v26 = vmax.f32 %v2933_v43, %v3235_v40  ;;  %v3331_v46 = vmax.f32 %v3287_v14, %v3289_v42  ;;  %v8380_v14 = vld [vmem:[%s12633_s3 + $0x3f8] sm:$0xff]  ;;  %v2936_v61 = vadd.f32 %v11717_v13, %v13348_v24  ;;  %v8379_v43 = vld [vmem:[%s12633_s3 + $0x3f0] sm:$0xff]  ;;  %v13351_v13 = vld [vmem:[#allocation126_spill] sm:$0xff] }
 0x4c5   :  { %v3292_v9 = vmax.f32 %v2934_v31, %v3236_v3  ;;  %v4275_v10 = vunpack.c.l.b16 %v3414_v52  ;;  %v4276_v56 = vunpack.c.h.b16 %v3414_v52  ;;  %v3332_v35 = vmax.f32 %v3288_v6, %v3290_v5  ;;  %v8360_v42 = vld [vmem:[%s12633_s3 + $0x358] sm:$0xff]  ;;  %v8378_v3 = vld [vmem:[%s12633_s3 + $0x3e8] sm:$0xff] }
 0x4c6   :  { %4541 = vmatpush.bf16.msrb.mxu0 %v8355_v29  ;;  %4554 = vmatpush.bf16.msrb.mxu1 %v8363_v1  ;;  %v3365_v33 = vadd.f32 %v11945_v48, %v3331_v46  ;;  %v2935_v6 = vadd.f32 %v13346_v57, %v13345_v37  ;;  %v13357_v37 = vld [vmem:[#allocation149_spill] sm:$0xff]  ;;  %v13358_v57 = vld [vmem:[#allocation144_spill] sm:$0xff] }
 0x4c7   :  { %v4277_v50 = vpack.c.b16 %v4275_v10, %v4275_v10  ;;  %v4278_v55 = vpack.c.b16 %v4276_v56, %v4276_v56  ;;  %v3366_v16 = vadd.f32 %v11949_v41, %v3332_v35  ;;  %4384 = vmatpush.bf16.msra.mxu2 %v8333_v58  ;;  %4397 = vmatpush.bf16.msra.mxu3 %v8341_v19  ;;  %v3145_v25 = vpop.f32.mrf.mxu2  ;;  %v13353_v58 = vld [vmem:[#allocation161_spill] sm:$0xff]  ;;  %v13354_v10 = vld [vmem:[#allocation114_spill] sm:$0xff] }
 0x4c8   :  { %v3393_v28 = vmax.f32 %v3365_v33, 0.0  ;;  %v3237_v53 = vadd.f32 %v3145_v25, %v13347_v60  ;;  %v3189_v34 = vpop.f32.mrf.mxu3  ;;  %v3060_v12 = vpop.f32.mrf.mxu0  ;;  %v2941_v56 = vadd.f32 %v11756_v18, %v13354_v10  ;;  %v13356_v33 = vld [vmem:[#allocation162_spill] sm:$0xff]  ;;  %v13359_v18 = vld [vmem:[#allocation143_spill] sm:$0xff]  ;;  %v13360_v60 = vld [vmem:[#allocation128_spill] sm:$0xff] }
 0x4c9   :  { %v3394_v36 = vmax.f32 %v3366_v16, 0.0  ;;  %v3238_v44 = vadd.f32 %v3189_v34, %v13349_v49  ;;  %v3239_v29 = vadd.f32 %v3060_v12, %v13350_v21  ;;  %v8369_v16 = vld [vmem:[%s12633_s3 + $0x3a0] sm:$0xff]  ;;  %v8358_v49 = vld [vmem:[%s12633_s3 + $0x348] sm:$0xff]  ;;  %v8368_v21 = vld [vmem:[%s12633_s3 + $0x398] sm:$0xff] }
 0x4ca   :  { %4542 = vmatpush.bf16.msrb.mxu0 %v8354_v62  ;;  %4555 = vmatpush.bf16.msrb.mxu1 %v8362_v59  ;;  %v3104_v1 = vpop.f32.mrf.mxu1  ;;  %v3293_v11 = vmax.f32 %v2935_v6, %v3237_v53  ;;  %v8351_v62 = vld [vmem:[%s12633_s3 + $0x310] sm:$0xff]  ;;  %v8377_v25 = vld [vmem:[%s12633_s3 + $0x3e0] sm:$0xff]  ;;  %v2942_v6 = vadd.f32 %v13358_v57, %v13357_v37  ;;  %v8366_v37 = vld [vmem:[%s12633_s3 + $0x388] sm:$0xff] }
 0x4cb   :  { %4703 = vmatpush.bf16.msrb.mxu2 %v8372_v15  ;;  %4716 = vmatpush.bf16.msrb.mxu3 %v8380_v14  ;;  %v3240_v0 = vadd.f32 %v3104_v1, %v13351_v13  ;;  %v12167_v17 = vpack.c.bf16 %v3394_v36, %v3393_v28  ;;  %v3294_v23 = vmax.f32 %v2936_v61, %v3238_v44  ;;  %v8359_v59 = vld [vmem:[%s12633_s3 + $0x350] sm:$0xff]  ;;  %v13355_v15 = vld [vmem:[#allocation127_spill] sm:$0xff]  ;;  %v13361_v12 = vld [vmem:[#allocation178_spill] sm:$0xff] }
 0x4cc   :  { %4385 = vmatmul.bf16.vlgmr.msra.gmra.mxu2 %v4277_v50  ;;  %4398 = vmatmul.bf16.vlgmr.msra.gmra.mxu3 %v4278_v55  ;;  %v3295_v40 = vmax.f32 %v11720_v8, %v3239_v29  ;;  %v3333_v4 = vmax.f32 %v3291_v26, %v3293_v11  ;;  %v8370_v8 = vld [vmem:[%s12633_s3 + $0x3a8] sm:$0xff]  ;;  %v8376_v29 = vld [vmem:[%s12633_s3 + $0x3d8] sm:$0xff] }
 0x4cd   :  { %v3296_v31 = vmax.f32 %v13352_v27, %v3240_v0  ;;  %v3334_v51 = vmax.f32 %v3292_v9, %v3294_v23  ;;  %v8350_v36 = vld [vmem:[%s12633_s3 + $0x308] sm:$0xff]  ;;  %v13363_v0 = vld [vmem:[#allocation150_spill] sm:$0xff] }
 0x4ce   :  { %4543 = vmatpush.bf16.msrb.mxu0 %v8353_v38  ;;  %4556 = vmatpush.bf16.msrb.mxu1 %v8361_v47  ;;  %v3367_v52 = vadd.f32 %v11945_v48, %v3333_v4  ;;  %v2944_v23 = vadd.f32 %v11795_v39, %v13363_v0  ;;  %v13364_v27 = vld [vmem:[#allocation163_spill] sm:$0xff]  ;;  %v8373_v0 = vld [vmem:[%s12633_s3 + $0x3c0] sm:$0xff] }
 0x4cf   :  { %4704 = vmatpush.bf16.msrb.mxu2 %v8371_v20  ;;  %4717 = vmatpush.bf16.msrb.mxu3 %v8379_v43  ;;  %v3368_v22 = vadd.f32 %v11949_v41, %v3334_v51  ;;  %v3148_v5 = vpop.f32.mrf.mxu2  ;;  %v13362_v20 = vld [vmem:[#allocation115_spill] sm:$0xff]  ;;  %v8349_v51 = vld [vmem:[%s12633_s3 + $0x300] sm:$0xff] }
 0x4d0   :  { %v3395_v26 = vmax.f32 %v3367_v52, 0.0  ;;  %v3241_v19 = vadd.f32 %v3148_v5, %v13353_v58  ;;  %v3192_v46 = vpop.f32.mrf.mxu3  ;;  %v3062_v9 = vpop.f32.mrf.mxu0  ;;  %v2943_v43 = vadd.f32 %v11790_v7, %v13362_v20  ;;  %v8357_v7 = vld [vmem:[%s12633_s3 + $0x340] sm:$0xff]  ;;  %v8367_v58 = vld [vmem:[%s12633_s3 + $0x390] sm:$0xff]  ;;  %v8374_v57 = vld [vmem:[%s12633_s3 + $0x3c8] sm:$0xff] }
 0x4d1   :  { %v3396_v35 = vmax.f32 %v3368_v22, 0.0  ;;  %v3242_v14 = vadd.f32 %v3192_v46, %v13355_v15  ;;  %v3243_v50 = vadd.f32 %v3062_v9, %v13356_v33  ;;  %v13366_v22 = vld [vmem:[#allocation164_spill] sm:$0xff]  ;;  %v13367_v9 = vld [vmem:[#allocation130_spill] sm:$0xff]  ;;  %v13369_v33 = vld [vmem:[#allocation145_spill] sm:$0xff] }
 0x4d2   :  { %4544 = vmatpush.bf16.msrb.mxu0 %v8352_v2  ;;  %4557 = vmatpush.bf16.msrb.mxu1 %v8360_v42  ;;  %v3106_v55 = vpop.f32.mrf.mxu1  ;;  %v3297_v28 = vmax.f32 %v13359_v18, %v3241_v19  ;;  %v8375_v19 = vld [vmem:[%s12633_s3 + $0x3d0] sm:$0xff] }
 0x4d3   :  { %4705 = vmatpush.bf16.msrb.mxu2 %v8370_v8  ;;  %4718 = vmatpush.bf16.msrb.mxu3 %v8378_v3  ;;  %v3244_v53 = vadd.f32 %v3106_v55, %v13360_v60  ;;  %v12206_v34 = vpack.c.bf16 %v3396_v35, %v3395_v26  ;;  %v3298_v38 = vmax.f32 %v13361_v12, %v3242_v14  ;;  %v4439_v8 = vunpack.c.h.b16 %v12167_v17  ;;  %v13365_v3 = vld [vmem:[#allocation129_spill] sm:$0xff]  ;;  %v13368_v35 = vld [vmem:[#allocation179_spill] sm:$0xff]  ;;  %v8387_v18 = vld [vmem:[%s12633_s3 + $0x430] sm:$0xff] }
 0x4d4   :  { %v3299_v47 = vmax.f32 %v2941_v56, %v3243_v50  ;;  %v3335_v24 = vmax.f32 %v3295_v40, %v3297_v28  ;;  %v4438_v40 = vunpack.c.l.b16 %v12167_v17  ;;  %v8388_v17 = vld [vmem:[%s12633_s3 + $0x438] sm:$0xff]  ;;  %v8395_v28 = vld [vmem:[%s12633_s3 + $0x470] sm:$0xff] }
 0x4d5   :  { %v3300_v61 = vmax.f32 %v2942_v6, %v3244_v53  ;;  %v3336_v44 = vmax.f32 %v3296_v31, %v3298_v38  ;;  %v13370_v12 = vld [vmem:[#allocation8_spill] sm:$0xff] }
 0x4d6   :  { %4545 = vmatpush.bf16.msrb.mxu0 %v8351_v62  ;;  %4558 = vmatpush.bf16.msrb.mxu1 %v8359_v59  ;;  %v3369_v1 = vadd.f32 %v11945_v48, %v3335_v24  ;;  %v8396_v59 = vld [vmem:[%s12633_s3 + $0x478] sm:$0xff]  ;;  %v4440_v55 = vpack.c.b16 %v4438_v40, %v4438_v40  ;;  %v12271_v38 = vadd.f32 %v11837_v30, %v13370_v12  ;;  %v8365_v30 = vld [vmem:[%s12633_s3 + $0x380] sm:$0xff] }
 0x4d7   :  { %4706 = vmatpush.bf16.msrb.mxu2 %v8369_v16  ;;  %4719 = vmatpush.bf16.msrb.mxu3 %v8377_v25  ;;  %v3370_v11 = vadd.f32 %v11949_v41, %v3336_v44  ;;  %v3150_v13 = vpop.f32.mrf.mxu2  ;;  %v4441_v16 = vpack.c.b16 %v4439_v8, %v4439_v8  ;;  %v13371_v24 = vld [vmem:[#allocation165_spill] sm:$0xff]  ;;  %v13372_v44 = vld [vmem:[#allocation116_spill] sm:$0xff]  ;;  %v13383_v12 = vld [vmem:[#allocation134_spill] sm:$0xff] }
 0x4d8   :  { %v3397_v4 = vmax.f32 %v3369_v1, 0.0  ;;  %v3245_v31 = vadd.f32 %v3150_v13, %v13364_v27  ;;  %v3194_v2 = vpop.f32.mrf.mxu3  ;;  %v3065_v42 = vpop.f32.mrf.mxu0  ;;  %v13373_v1 = vld [vmem:[#allocation131_spill] sm:$0xff]  ;;  %v8412_v8 = vld [vmem:[%s12633_s3 + $0x4f8] sm:$0xff] }
 0x4d9   :  { %v3398_v39 = vmax.f32 %v3370_v11, 0.0  ;;  %v3246_v52 = vadd.f32 %v3194_v2, %v13365_v3  ;;  %v3247_v5 = vadd.f32 %v3065_v42, %v13366_v22  ;;  %v8394_v2 = vld [vmem:[%s12633_s3 + $0x468] sm:$0xff] }
 0x4da   :  { %4546 = vmatpush.bf16.msrb.mxu0 %v8350_v36  ;;  %4559 = vmatpush.bf16.msrb.mxu1 %v8358_v49  ;;  %v3109_v26 = vpop.f32.mrf.mxu1  ;;  %v3301_v46 = vmax.f32 %v2943_v43, %v3245_v31  ;;  %v13374_v43 = vld [vmem:[#allocation166_spill] sm:$0xff]  ;;  %v8386_v31 = vld [vmem:[%s12633_s3 + $0x428] sm:$0xff] }
 0x4db   :  { %4707 = vmatpush.bf16.msrb.mxu2 %v8368_v21  ;;  %4720 = vmatpush.bf16.msrb.mxu3 %v8376_v29  ;;  %v3248_v62 = vadd.f32 %v3109_v26, %v13367_v9  ;;  %v12251_v10 = vpack.c.bf16 %v3398_v39, %v3397_v4  ;;  %v3302_v56 = vmax.f32 %v2944_v23, %v3246_v52  ;;  %v4601_v23 = vunpack.c.l.b16 %v12206_v34  ;;  %v13375_v4 = vld [vmem:[#allocation132_spill] sm:$0xff] }
 0x4dc   :  { %v3303_v15 = vmax.f32 %v13368_v35, %v3247_v5  ;;  %v3337_v14 = vmax.f32 %v3299_v47, %v3301_v46  ;;  %v12276_v21 = vadd.f32 %v11845_v54, %v13372_v44  ;;  %v4602_v54 = vunpack.c.h.b16 %v12206_v34  ;;  %v8403_v9 = vld [vmem:[%s12633_s3 + $0x4b0] sm:$0xff]  ;;  %v8402_v44 = vld [vmem:[%s12633_s3 + $0x4a8] sm:$0xff] }
 0x4dd   :  { %v3304_v50 = vmax.f32 %v13369_v33, %v3248_v62  ;;  %v3338_v25 = vmax.f32 %v3300_v61, %v3302_v56  ;;  %v4603_v22 = vpack.c.b16 %v4601_v23, %v4601_v23  ;;  %v8411_v62 = vld [vmem:[%s12633_s3 + $0x4f0] sm:$0xff]  ;;  %v13378_v56 = vld [vmem:[#allocation181_spill] sm:$0xff]  ;;  %v8401_v23 = vld [vmem:[%s12633_s3 + $0x4a0] sm:$0xff] }
 0x4de   :  { %4547 = vmatpush.bf16.msrb.mxu0 %v8349_v51  ;;  %4560 = vmatpush.bf16.msrb.mxu1 %v8357_v7  ;;  %v3371_v6 = vadd.f32 %v11945_v48, %v3337_v14  ;;  %v13376_v51 = vld [vmem:[#allocation180_spill] sm:$0xff]  ;;  %v4604_v5 = vpack.c.b16 %v4602_v54, %v4602_v54  ;;  %v13379_v14 = vld [vmem:[#allocation167_spill] sm:$0xff]  ;;  %v8409_v54 = vld [vmem:[%s12633_s3 + $0x4e0] sm:$0xff] }
 0x4df   :  { %4708 = vmatpush.bf16.msrb.mxu2 %v8367_v58  ;;  %4721 = vmatpush.bf16.msrb.mxu3 %v8375_v19  ;;  %v3372_v60 = vadd.f32 %v11949_v41, %v3338_v25  ;;  %v3153_v53 = vpop.f32.mrf.mxu2  ;;  %v8385_v58 = vld [vmem:[%s12633_s3 + $0x420] sm:$0xff] }
 0x4e0   :  { %v3399_v47 = vmax.f32 %v3371_v6, 0.0  ;;  %v3249_v61 = vadd.f32 %v3153_v53, %v13371_v24  ;;  %v3197_v36 = vpop.f32.mrf.mxu3  ;;  %v3067_v49 = vpop.f32.mrf.mxu0  ;;  %v8393_v19 = vld [vmem:[%s12633_s3 + $0x460] sm:$0xff]  ;;  %v8392_v24 = vld [vmem:[%s12633_s3 + $0x458] sm:$0xff] }
 0x4e1   :  { %4548 = vmatmul.bf16.vlgmr.msrb.gmra.mxu0 %v4440_v55  ;;  %4561 = vmatmul.bf16.vlgmr.msrb.gmra.mxu1 %v4441_v16  ;;  %v3400_v29 = vmax.f32 %v3372_v60, 0.0  ;;  %v3250_v20 = vadd.f32 %v3197_v36, %v13373_v1  ;;  %v3251_v11 = vadd.f32 %v3067_v49, %v13374_v43  ;;  %v13380_v16 = vld [vmem:[#allocation117_spill] sm:$0xff]  ;;  %v13384_v36 = vld [vmem:[#allocation182_spill] sm:$0xff]  ;;  %v13385_v1 = vld [vmem:[#allocation183_spill] sm:$0xff] }
 0x4e2   :  { %4866 = vmatpush.bf16.msra.mxu0 %v8388_v17  ;;  %4879 = vmatpush.bf16.msra.mxu1 %v8396_v59  ;;  %v3111_v13 = vpop.f32.mrf.mxu1  ;;  %v3305_v40 = vmax.f32 %v11835_v63, %v3249_v61  ;;  %v8404_v63 = vld [vmem:[%s12633_s3 + $0x4b8] sm:$0xff]  ;;  %v13377_v59 = vld [vmem:[#allocation151_spill] sm:$0xff]  ;;  %v2952_v25 = vadd.f32 %v11870_v32, %v13380_v16 }
 0x4e3   :  { %4709 = vmatpush.bf16.msrb.mxu2 %v8366_v37  ;;  %4722 = vmatpush.bf16.msrb.mxu3 %v8374_v57  ;;  %v3252_v27 = vadd.f32 %v3111_v13, %v13375_v4  ;;  %v12296_v42 = vpack.c.bf16 %v3400_v29, %v3399_v47  ;;  %v3306_v7 = vmax.f32 %v13376_v51, %v3250_v20  ;;  %v13381_v57 = vld [vmem:[#allocation133_spill] sm:$0xff]  ;;  %v8383_v13 = vld [vmem:[%s12633_s3 + $0x410] sm:$0xff] }
 0x4e4   :  { %v3307_v34 = vmax.f32 %v12271_v38, %v3251_v11  ;;  %v3339_v39 = vmax.f32 %v3303_v15, %v3305_v40  ;;  %v2951_v35 = vadd.f32 %v13378_v56, %v13377_v59  ;;  %v8384_v47 = vld [vmem:[%s12633_s3 + $0x418] sm:$0xff] }
 0x4e5   :  { %v3308_v3 = vmax.f32 %v12276_v21, %v3252_v27  ;;  %v3340_v52 = vmax.f32 %v3304_v50, %v3306_v7  ;;  %v8410_v21 = vld [vmem:[%s12633_s3 + $0x4e8] sm:$0xff]  ;;  %v13386_v27 = vld [vmem:[#allocation169_spill] sm:$0xff]  ;;  %v13387_v7 = vld [vmem:[#allocation152_spill] sm:$0xff] }
 0x4e6   :  { %4867 = vmatpush.bf16.msra.mxu0 %v8387_v18  ;;  %4880 = vmatpush.bf16.msra.mxu1 %v8395_v28  ;;  %v3373_v26 = vadd.f32 %v11945_v48, %v3339_v39  ;;  %v13382_v18 = vld [vmem:[#allocation168_spill] sm:$0xff]  ;;  %v13394_v56 = vld [vmem:[#allocation185_spill] sm:$0xff] }
 0x4e7   :  { %4710 = vmatpush.bf16.msrb.mxu2 %v8365_v30  ;;  %4723 = vmatpush.bf16.msrb.mxu3 %v8373_v0  ;;  %v3374_v46 = vadd.f32 %v11949_v41, %v3340_v52  ;;  %v3155_v17 = vpop.f32.mrf.mxu2  ;;  %v8391_v30 = vld [vmem:[%s12633_s3 + $0x450] sm:$0xff] }
 0x4e8   :  { %v3401_v15 = vmax.f32 %v3373_v26, 0.0  ;;  %v3253_v33 = vadd.f32 %v3155_v17, %v13379_v14  ;;  %v3199_v50 = vpop.f32.mrf.mxu3  ;;  %v3070_v55 = vpop.f32.mrf.mxu0  ;;  %v13391_v26 = vld [vmem:[#allocation186_spill] sm:$0xff]  ;;  %v8382_v17 = vld [vmem:[%s12633_s3 + $0x408] sm:$0xff]  ;;  %v8400_v14 = vld [vmem:[%s12633_s3 + $0x498] sm:$0xff] }
 0x4e9   :  { %v3402_v37 = vmax.f32 %v3374_v46, 0.0  ;;  %v3254_v6 = vadd.f32 %v3199_v50, %v13381_v57  ;;  %v3255_v28 = vadd.f32 %v3070_v55, %v13382_v18  ;;  %v8381_v57 = vld [vmem:[%s12633_s3 + $0x400] sm:$0xff]  ;;  %v4765_v18 = vunpack.c.h.b16 %v12251_v10 }
 0x4ea   :  { %4868 = vmatpush.bf16.msra.mxu0 %v8386_v31  ;;  %4881 = vmatpush.bf16.msra.mxu1 %v8394_v2  ;;  %v3114_v60 = vpop.f32.mrf.mxu1  ;;  %v3309_v53 = vmax.f32 %v2951_v35, %v3253_v33  ;;  %v8408_v33 = vld [vmem:[%s12633_s3 + $0x4d8] sm:$0xff] }
 0x4eb   :  { %5029 = vmatpush.bf16.msra.mxu2 %v8404_v63  ;;  %5042 = vmatpush.bf16.msra.mxu3 %v8412_v8  ;;  %v3256_v38 = vadd.f32 %v3114_v60, %v13383_v12  ;;  %v12335_v32 = vpack.c.bf16 %v3402_v37, %v3401_v15  ;;  %v3310_v61 = vmax.f32 %v2952_v25, %v3254_v6  ;;  %v13388_v8 = vld [vmem:[#allocation135_spill] sm:$0xff]  ;;  %v4764_v25 = vunpack.c.l.b16 %v12251_v10  ;;  %v8389_v6 = vld [vmem:[%s12633_s3 + $0x440] sm:$0xff]  ;;  %v8399_v60 = vld [vmem:[%s12633_s3 + $0x490] sm:$0xff] }
 0x4ec   :  { %4711 = vmatmul.bf16.vlgmr.msrb.gmra.mxu2 %v4603_v22  ;;  %4724 = vmatmul.bf16.vlgmr.msrb.gmra.mxu3 %v4604_v5  ;;  %v3311_v49 = vmax.f32 %v13384_v36, %v3255_v28  ;;  %v3341_v29 = vmax.f32 %v3307_v34, %v3309_v53  ;;  %v2957_v34 = vadd.f32 %v11905_v45, %v13387_v7  ;;  %v13390_v5 = vld [vmem:[#allocation118_spill] sm:$0xff]  ;;  %v8390_v45 = vld [vmem:[%s12633_s3 + $0x448] sm:$0xff]  ;;  %v8407_v53 = vld [vmem:[%s12633_s3 + $0x4d0] sm:$0xff] }
 0x4ed   :  { %v3312_v20 = vmax.f32 %v13385_v1, %v3256_v38  ;;  %v3342_v43 = vmax.f32 %v3308_v3, %v3310_v61  ;;  %v13389_v3 = vld [vmem:[#allocation170_spill] sm:$0xff]  ;;  %v13395_v38 = vld [vmem:[#allocation153_spill] sm:$0xff]  ;;  %v13397_v36 = vld [vmem:[#allocation171_spill] sm:$0xff] }
 0x4ee   :  { %4869 = vmatpush.bf16.msra.mxu0 %v8385_v58  ;;  %4882 = vmatpush.bf16.msra.mxu1 %v8393_v19  ;;  %v3375_v11 = vadd.f32 %v11945_v48, %v3341_v29  ;;  %v2958_v58 = vadd.f32 %v13391_v26, %v13390_v5  ;;  %v13392_v19 = vld [vmem:[#allocation184_spill] sm:$0xff]  ;;  %v13398_v29 = vld [vmem:[#allocation119_spill] sm:$0xff]  ;;  %v8436_v26 = vld [vmem:[%s12633_s3 + $0x5b8] sm:$0xff] }
 0x4ef   :  { %5030 = vmatpush.bf16.msra.mxu2 %v8403_v9  ;;  %5043 = vmatpush.bf16.msra.mxu3 %v8411_v62  ;;  %v3376_v0 = vadd.f32 %v11949_v41, %v3342_v43  ;;  %v3158_v40 = vpop.f32.mrf.mxu2  ;;  %v13393_v9 = vld [vmem:[#allocation136_spill] sm:$0xff] }
 0x4f0   :  { %v3403_v4 = vmax.f32 %v3375_v11, 0.0  ;;  %v3257_v31 = vadd.f32 %v3158_v40, %v13386_v27  ;;  %v3202_v2 = vpop.f32.mrf.mxu3  ;;  %v3072_v51 = vpop.f32.mrf.mxu0  ;;  %v13399_v1 = vld [vmem:[#allocation188_spill] sm:$0xff]  ;;  %v13400_v11 = vld [vmem:[#allocation137_spill] sm:$0xff]  ;;  %v8406_v27 = vld [vmem:[%s12633_s3 + $0x4c8] sm:$0xff] }
 0x4f1   :  { %v3404_v63 = vmax.f32 %v3376_v0, 0.0  ;;  %v3258_v39 = vadd.f32 %v3202_v2, %v13388_v8  ;;  %v3259_v52 = vadd.f32 %v3072_v51, %v13389_v3  ;;  %v8419_v2 = vld [vmem:[%s12633_s3 + $0x530] sm:$0xff]  ;;  %v8397_v8 = vld [vmem:[%s12633_s3 + $0x480] sm:$0xff]  ;;  %v4927_v3 = vunpack.c.l.b16 %v12296_v42 }
 0x4f2   :  { %4870 = vmatpush.bf16.msra.mxu0 %v8384_v47  ;;  %4883 = vmatpush.bf16.msra.mxu1 %v8392_v24  ;;  %v3116_v22 = vpop.f32.mrf.mxu1  ;;  %v3313_v46 = vmax.f32 %v13392_v19, %v3257_v31  ;;  %v13396_v47 = vld [vmem:[#allocation187_spill] sm:$0xff]  ;;  %v8427_v51 = vld [vmem:[%s12633_s3 + $0x570] sm:$0xff] }
 0x4f3   :  { %5031 = vmatpush.bf16.msra.mxu2 %v8402_v44  ;;  %5044 = vmatpush.bf16.msra.mxu3 %v8410_v21  ;;  %v3260_v62 = vadd.f32 %v3116_v22, %v13393_v9  ;;  %v12374_v59 = vpack.c.bf16 %v3404_v63, %v3403_v4  ;;  %v3314_v35 = vmax.f32 %v13394_v56, %v3258_v39  ;;  %v8420_v44 = vld [vmem:[%s12633_s3 + $0x538] sm:$0xff]  ;;  %v8398_v4 = vld [vmem:[%s12633_s3 + $0x488] sm:$0xff]  ;;  %v8405_v39 = vld [vmem:[%s12633_s3 + $0x4c0] sm:$0xff] }
 0x4f4   :  { %v3315_v15 = vmax.f32 %v2957_v34, %v3259_v52  ;;  %v3343_v50 = vmax.f32 %v3311_v49, %v3313_v46  ;;  %v2959_v24 = vadd.f32 %v13396_v47, %v13395_v38  ;;  %v8428_v21 = vld [vmem:[%s12633_s3 + $0x578] sm:$0xff]  ;;  %v4928_v52 = vunpack.c.h.b16 %v12296_v42  ;;  %v8417_v9 = vld [vmem:[%s12633_s3 + $0x520] sm:$0xff]  ;;  %v8439_v38 = vld [vmem:[%s12633_s3 + $0x5d0] sm:$0xff] }
 0x4f5   :  { %v3316_v55 = vmax.f32 %v2958_v58, %v3260_v62  ;;  %v3344_v16 = vmax.f32 %v3312_v20, %v3314_v35  ;;  %v2960_v20 = vadd.f32 %v13399_v1, %v13398_v29  ;;  %v8444_v42 = vld [vmem:[%s12633_s3 + $0x5f8] sm:$0xff]  ;;  %v4929_v19 = vpack.c.b16 %v4927_v3, %v4927_v3  ;;  %v8425_v62 = vld [vmem:[%s12633_s3 + $0x560] sm:$0xff]  ;;  %v8474_v3 = vld [vmem:[%s12633_s3 + $0x6e8] sm:$0xff] }
 0x4f6   :  { %4871 = vmatpush.bf16.msra.mxu0 %v8383_v13  ;;  %4884 = vmatpush.bf16.msra.mxu1 %v8391_v30  ;;  %v3377_v37 = vadd.f32 %v11945_v48, %v3343_v50  ;;  %v4766_v30 = vpack.c.b16 %v4764_v25, %v4764_v25  ;;  %v4930_v46 = vpack.c.b16 %v4928_v52, %v4928_v52  ;;  %v8416_v56 = vld [vmem:[%s12633_s3 + $0x518] sm:$0xff]  ;;  %v8423_v50 = vld [vmem:[%s12633_s3 + $0x550] sm:$0xff]  ;;  %v8414_v25 = vld [vmem:[%s12633_s3 + $0x508] sm:$0xff]  ;;  %v5253_v1 = vunpack.c.l.b16 %v12374_v59 }
 0x4f7   :  { %5032 = vmatpush.bf16.msra.mxu2 %v8401_v23  ;;  %5045 = vmatpush.bf16.msra.mxu3 %v8409_v54  ;;  %v3378_v28 = vadd.f32 %v11949_v41, %v3344_v16  ;;  %v3160_v12 = vpop.f32.mrf.mxu2  ;;  %v4767_v23 = vpack.c.b16 %v4765_v18, %v4765_v18  ;;  %v8424_v35 = vld [vmem:[%s12633_s3 + $0x558] sm:$0xff]  ;;  %v8441_v16 = vld [vmem:[%s12633_s3 + $0x5e0] sm:$0xff] }
 0x4f8   :  { %v3405_v61 = vmax.f32 %v3377_v37, 0.0  ;;  %v3261_v49 = vadd.f32 %v3160_v12, %v13397_v36  ;;  %v3204_v10 = vpop.f32.mrf.mxu3  ;;  %v8422_v37 = vld [vmem:[%s12633_s3 + $0x548] sm:$0xff]  ;;  %v8413_v18 = vld [vmem:[%s12633_s3 + $0x500] sm:$0xff]  ;;  %v8431_v12 = vld [vmem:[%s12633_s3 + $0x590] sm:$0xff] }
 0x4f9   :  { %v3406_v43 = vmax.f32 %v3378_v28, 0.0  ;;  %v3262_v13 = vadd.f32 %v3204_v10, %v13400_v11  ;;  %v8421_v28 = vld [vmem:[%s12633_s3 + $0x540] sm:$0xff]  ;;  %v8452_v47 = vld [vmem:[%s12633_s3 + $0x638] sm:$0xff]  ;;  %v8430_v36 = vld [vmem:[%s12633_s3 + $0x588] sm:$0xff] }
 0x4fa   :  { %4872 = vmatpush.bf16.msra.mxu0 %v8382_v17  ;;  %4885 = vmatpush.bf16.msra.mxu1 %v8390_v45  ;;  %v3317_v0 = vmax.f32 %v2959_v24, %v3261_v49  ;;  %v8435_v17 = vld [vmem:[%s12633_s3 + $0x5b0] sm:$0xff]  ;;  %v8460_v24 = vld [vmem:[%s12633_s3 + $0x678] sm:$0xff]  ;;  %v8438_v49 = vld [vmem:[%s12633_s3 + $0x5c8] sm:$0xff] }
 0x4fb   :  { %5033 = vmatpush.bf16.msra.mxu2 %v8400_v14  ;;  %5046 = vmatpush.bf16.msra.mxu3 %v8408_v33  ;;  %v12411_v54 = vpack.c.bf16 %v3406_v43, %v3405_v61  ;;  %v3318_v40 = vmax.f32 %v2960_v20, %v3262_v13  ;;  %v8443_v45 = vld [vmem:[%s12633_s3 + $0x5f0] sm:$0xff]  ;;  %v8442_v14 = vld [vmem:[%s12633_s3 + $0x5e8] sm:$0xff]  ;;  %v8437_v29 = vld [vmem:[%s12633_s3 + $0x5c0] sm:$0xff]  ;;  %v5254_v20 = vunpack.c.h.b16 %v12374_v59 }
 0x4fc   :  { %v3345_v31 = vmax.f32 %v3315_v15, %v3317_v0  ;;  %v8434_v15 = vld [vmem:[%s12633_s3 + $0x5a8] sm:$0xff]  ;;  %v8415_v33 = vld [vmem:[%s12633_s3 + $0x510] sm:$0xff]  ;;  %v8468_v0 = vld [vmem:[%s12633_s3 + $0x6b8] sm:$0xff] }
 0x4fd   :  { %v3346_v7 = vmax.f32 %v3316_v55, %v3318_v40  ;;  %v8433_v55 = vld [vmem:[%s12633_s3 + $0x5a0] sm:$0xff]  ;;  %v8451_v10 = vld [vmem:[%s12633_s3 + $0x630] sm:$0xff]  ;;  %v8450_v43 = vld [vmem:[%s12633_s3 + $0x628] sm:$0xff]  ;;  %v5255_v40 = vpack.c.b16 %v5253_v1, %v5253_v1 }
 0x4fe   :  { %4873 = vmatpush.bf16.msra.mxu0 %v8381_v57  ;;  %4886 = vmatpush.bf16.msra.mxu1 %v8389_v6  ;;  %v3379_v34 = vadd.f32 %v11945_v48, %v3345_v31  ;;  %v8418_v48 = vld [vmem:[%s12633_s3 + $0x528] sm:$0xff]  ;;  %v8432_v57 = vld [vmem:[%s12633_s3 + $0x598] sm:$0xff]  ;;  %v8457_v31 = vld [vmem:[%s12633_s3 + $0x660] sm:$0xff] }
 0x4ff   :  { %5034 = vmatpush.bf16.msra.mxu2 %v8399_v60  ;;  %5047 = vmatpush.bf16.msra.mxu3 %v8407_v53  ;;  %v3380_v63 = vadd.f32 %v11949_v41, %v3346_v7  ;;  %v8426_v41 = vld [vmem:[%s12633_s3 + $0x568] sm:$0xff]  ;;  %v8440_v6 = vld [vmem:[%s12633_s3 + $0x5d8] sm:$0xff]  ;;  %v5090_v60 = vunpack.c.l.b16 %v12335_v32  ;;  %v5091_v53 = vunpack.c.h.b16 %v12335_v32  ;;  %v8477_v52 = vld [vmem:[%s12635_s4] ss:$0 sm:$0xff] }
 0x500   :  { %v3407_v22 = vmax.f32 %v3379_v34, 0.0  ;;  %v8458_v11 = vld [vmem:[%s12633_s3 + $0x668] sm:$0xff]  ;;  %v8476_v59 = vld [vmem:[%s12633_s3 + $0x6f8] sm:$0xff] }
 0x501   :  { %4874 = vmatmul.bf16.vlgmr.msra.gmra.mxu0 %v4766_v30  ;;  %4887 = vmatmul.bf16.vlgmr.msra.gmra.mxu1 %v4767_v23  ;;  %v3408_v5 = vmax.f32 %v3380_v63, 0.0  ;;  %v5092_v32 = vpack.c.b16 %v5090_v60, %v5090_v60  ;;  %v5093_v61 = vpack.c.b16 %v5091_v53, %v5091_v53  ;;  %v8448_v7 = vld [vmem:[%s12633_s3 + $0x618] sm:$0xff] }
 0x502   :  { %5192 = vmatpush.bf16.msrb.mxu0 %v8420_v44  ;;  %5205 = vmatpush.bf16.msrb.mxu1 %v8428_v21  ;;  %v8459_v44 = vld [vmem:[%s12633_s3 + $0x670] sm:$0xff]  ;;  %v8429_v21 = vld [vmem:[%s12633_s3 + $0x580] sm:$0xff]  ;;  %v8456_v34 = vld [vmem:[%s12633_s3 + $0x658] sm:$0xff] }
 0x503   :  { %5035 = vmatpush.bf16.msra.mxu2 %v8398_v4  ;;  %5048 = vmatpush.bf16.msra.mxu3 %v8406_v27  ;;  %v12447_v58 = vpack.c.bf16 %v3408_v5, %v3407_v22  ;;  %v5256_v4 = vpack.c.b16 %v5254_v20, %v5254_v20  ;;  %v8449_v27 = vld [vmem:[%s12633_s3 + $0x620] sm:$0xff]  ;;  %v8447_v22 = vld [vmem:[%s12633_s3 + $0x610] sm:$0xff] }
 0x504   :  { %v8473_v5 = vld [vmem:[%s12633_s3 + $0x6e0] sm:$0xff] }
 0x506   :  { %5193 = vmatpush.bf16.msrb.mxu0 %v8419_v2  ;;  %5206 = vmatpush.bf16.msrb.mxu1 %v8427_v51  ;;  %v8467_v2 = vld [vmem:[%s12633_s3 + $0x6b0] sm:$0xff] }
 0x507   :  { %5036 = vmatpush.bf16.msra.mxu2 %v8397_v8  ;;  %5049 = vmatpush.bf16.msra.mxu3 %v8405_v39  ;;  %v8475_v51 = vld [vmem:[%s12633_s3 + $0x6f0] sm:$0xff]  ;;  %v8466_v39 = vld [vmem:[%s12633_s3 + $0x6a8] sm:$0xff] }
 0x50a   :  { %5194 = vmatpush.bf16.msrb.mxu0 %v8418_v48  ;;  %5207 = vmatpush.bf16.msrb.mxu1 %v8426_v41  ;;  %v8455_v48 = vld [vmem:[%s12633_s3 + $0x650] sm:$0xff]  ;;  %v8465_v41 = vld [vmem:[%s12633_s3 + $0x6a0] sm:$0xff] }
 0x50b   :  { %5355 = vmatpush.bf16.msrb.mxu2 %v8436_v26  ;;  %5368 = vmatpush.bf16.msrb.mxu3 %v8444_v42 }
 0x50c   :  { %5037 = vmatmul.bf16.vlgmr.msra.gmra.mxu2 %v4929_v19  ;;  %5050 = vmatmul.bf16.vlgmr.msra.gmra.mxu3 %v4930_v46 }
 0x50e   :  { %5195 = vmatpush.bf16.msrb.mxu0 %v8417_v9  ;;  %5208 = vmatpush.bf16.msrb.mxu1 %v8425_v62  ;;  %v8446_v9 = vld [vmem:[%s12633_s3 + $0x608] sm:$0xff] }
 0x50f   :  { %5356 = vmatpush.bf16.msrb.mxu2 %v8435_v17  ;;  %5369 = vmatpush.bf16.msrb.mxu3 %v8443_v45  ;;  %v8454_v62 = vld [vmem:[%s12633_s3 + $0x648] sm:$0xff] }
 0x512   :  { %5196 = vmatpush.bf16.msrb.mxu0 %v8416_v56  ;;  %5209 = vmatpush.bf16.msrb.mxu1 %v8424_v35  ;;  %v8464_v35 = vld [vmem:[%s12633_s3 + $0x698] sm:$0xff] }
 0x513   :  { %5357 = vmatpush.bf16.msrb.mxu2 %v8434_v15  ;;  %5370 = vmatpush.bf16.msrb.mxu3 %v8442_v14  ;;  %v8472_v15 = vld [vmem:[%s12633_s3 + $0x6d8] sm:$0xff] }
 0x516   :  { %5197 = vmatpush.bf16.msrb.mxu0 %v8415_v33  ;;  %5210 = vmatpush.bf16.msrb.mxu1 %v8423_v50  ;;  %v8445_v50 = vld [vmem:[%s12633_s3 + $0x600] sm:$0xff] }
 0x517   :  { %5358 = vmatpush.bf16.msrb.mxu2 %v8433_v55  ;;  %5371 = vmatpush.bf16.msrb.mxu3 %v8441_v16  ;;  %v8453_v55 = vld [vmem:[%s12633_s3 + $0x640] sm:$0xff]  ;;  %v5416_v16 = vunpack.c.l.b16 %v12411_v54 }
 0x519   :  { %v5418_v53 = vpack.c.b16 %v5416_v16, %v5416_v16 }
 0x51a   :  { %5198 = vmatpush.bf16.msrb.mxu0 %v8414_v25  ;;  %5211 = vmatpush.bf16.msrb.mxu1 %v8422_v37  ;;  %v5417_v25 = vunpack.c.h.b16 %v12411_v54  ;;  %v8463_v37 = vld [vmem:[%s12633_s3 + $0x690] sm:$0xff]  ;;  %v8462_v54 = vld [vmem:[%s12633_s3 + $0x688] sm:$0xff] }
 0x51b   :  { %5359 = vmatpush.bf16.msrb.mxu2 %v8432_v57  ;;  %5372 = vmatpush.bf16.msrb.mxu3 %v8440_v6  ;;  %v8471_v57 = vld [vmem:[%s12633_s3 + $0x6d0] sm:$0xff] }
 0x51e   :  { %5199 = vmatpush.bf16.msrb.mxu0 %v8413_v18  ;;  %5212 = vmatpush.bf16.msrb.mxu1 %v8421_v28  ;;  %v3568_v13 = vpop.f32.mrf.mxu0  ;;  %v3581_v30 = vpop.f32.mrf.mxu1 }
 0x51f   :  { %5360 = vmatpush.bf16.msrb.mxu2 %v8431_v12  ;;  %5373 = vmatpush.bf16.msrb.mxu3 %v8439_v38  ;;  %v3582_v23 = vadd.f32 %v3581_v30, %v3568_v13  ;;  %v5419_v12 = vpack.c.b16 %v5417_v25, %v5417_v25  ;;  %v8470_v38 = vld [vmem:[%s12633_s3 + $0x6c8] sm:$0xff] }
 0x521   :  { %5200 = vmatmul.bf16.vlgmr.msrb.gmra.mxu0 %v5092_v32  ;;  %5213 = vmatmul.bf16.vlgmr.msrb.gmra.mxu1 %v5093_v61  ;;  %v3588_v19 = vadd.f32 %v8477_v52, %v3582_v23  ;;  %v5579_v32 = vunpack.c.l.b16 %v12447_v58  ;;  %v5580_v61 = vunpack.c.h.b16 %v12447_v58 }
 0x522   :  { %5518 = vmatpush.bf16.msra.mxu0 %v8452_v47  ;;  %5531 = vmatpush.bf16.msra.mxu1 %v8460_v24  ;;  %v8461_v47 = vld [vmem:[%s12633_s3 + $0x680] sm:$0xff] }
 0x523   :  { %5361 = vmatpush.bf16.msrb.mxu2 %v8430_v36  ;;  %5374 = vmatpush.bf16.msrb.mxu3 %v8438_v49  ;;  %v8469_v24 = vld [vmem:[%s12633_s3 + $0x6c0] sm:$0xff]  ;;  %v5581_v20 = vpack.c.b16 %v5579_v32, %v5579_v32 }
 0x526   :  { %5519 = vmatpush.bf16.msra.mxu0 %v8451_v10  ;;  %5532 = vmatpush.bf16.msra.mxu1 %v8459_v44  ;;  %v3570_v63 = vpop.f32.mrf.mxu0  ;;  %v3583_v8 = vpop.f32.mrf.mxu1 }
 0x527   :  { %5362 = vmatpush.bf16.msrb.mxu2 %v8429_v21  ;;  %5375 = vmatpush.bf16.msrb.mxu3 %v8437_v29 }
 0x52a   :  { %5520 = vmatpush.bf16.msra.mxu0 %v8450_v43  ;;  %5533 = vmatpush.bf16.msra.mxu1 %v8458_v11  ;;  %v5582_v43 = vpack.c.b16 %v5580_v61, %v5580_v61 }
 0x52b   :  { %5681 = vmatpush.bf16.msra.mxu2 %v8468_v0  ;;  %5694 = vmatpush.bf16.msra.mxu3 %v8476_v59 }
 0x52c   :  { %5363 = vmatmul.bf16.vlgmr.msrb.gmra.mxu2 %v5255_v40  ;;  %5376 = vmatmul.bf16.vlgmr.msrb.gmra.mxu3 %v5256_v4  ;;  %v3734_v26 = vpop.f32.mrf.mxu2  ;;  %v3747_v42 = vpop.f32.mrf.mxu3 }
 0x52d   :  { %v3748_v46 = vadd.f32 %v3747_v42, %v3734_v26 }
 0x52e   :  { %5521 = vmatpush.bf16.msra.mxu0 %v8449_v27  ;;  %5534 = vmatpush.bf16.msra.mxu1 %v8457_v31  ;;  %v3897_v17 = vpop.f32.mrf.mxu0  ;;  %v3910_v45 = vpop.f32.mrf.mxu1 }
 0x52f   :  { %5682 = vmatpush.bf16.msra.mxu2 %v8467_v2  ;;  %5695 = vmatpush.bf16.msra.mxu3 %v8475_v51  ;;  %v3751_v56 = vadd.f32 %v3748_v46, %v3588_v19  ;;  %v3911_v14 = vadd.f32 %v3910_v45, %v3897_v17 }
 0x531   :  { %v3914_v33 = vadd.f32 %v3911_v14, %v3751_v56 }
 0x532   :  { %5522 = vmatpush.bf16.msra.mxu0 %v8448_v7  ;;  %5535 = vmatpush.bf16.msra.mxu1 %v8456_v34 }
 0x533   :  { %5683 = vmatpush.bf16.msra.mxu2 %v8466_v39  ;;  %5696 = vmatpush.bf16.msra.mxu3 %v8474_v3 }
 0x534   :  { %v3736_v6 = vpop.f32.mrf.mxu2  ;;  %v3749_v18 = vpop.f32.mrf.mxu3 }
 0x536   :  { %5523 = vmatpush.bf16.msra.mxu0 %v8447_v22  ;;  %5536 = vmatpush.bf16.msra.mxu1 %v8455_v48  ;;  %v3899_v28 = vpop.f32.mrf.mxu0  ;;  %v3912_v60 = vpop.f32.mrf.mxu1 }
 0x537   :  { %5684 = vmatpush.bf16.msra.mxu2 %v8465_v41  ;;  %5697 = vmatpush.bf16.msra.mxu3 %v8473_v5 }
 0x53a   :  { %5524 = vmatpush.bf16.msra.mxu0 %v8446_v9  ;;  %5537 = vmatpush.bf16.msra.mxu1 %v8454_v62 }
 0x53b   :  { %5685 = vmatpush.bf16.msra.mxu2 %v8464_v35  ;;  %5698 = vmatpush.bf16.msra.mxu3 %v8472_v15 }
 0x53c   :  { %v4060_v36 = vpop.f32.mrf.mxu2  ;;  %v4073_v49 = vpop.f32.mrf.mxu3 }
 0x53d   :  { %v4074_v10 = vadd.f32 %v4073_v49, %v4060_v36 }
 0x53e   :  { %5525 = vmatpush.bf16.msra.mxu0 %v8445_v50  ;;  %5538 = vmatpush.bf16.msra.mxu1 %v8453_v55  ;;  %v4223_v44 = vpop.f32.mrf.mxu0  ;;  %v4236_v21 = vpop.f32.mrf.mxu1 }
 0x53f   :  { %5686 = vmatpush.bf16.msra.mxu2 %v8463_v37  ;;  %5699 = vmatpush.bf16.msra.mxu3 %v8471_v57  ;;  %v4077_v29 = vadd.f32 %v4074_v10, %v3914_v33  ;;  %v4237_v1 = vadd.f32 %v4236_v21, %v4223_v44 }
 0x541   :  { %5526 = vmatmul.bf16.vlgmr.msra.gmra.mxu0 %v5418_v53  ;;  %5539 = vmatmul.bf16.vlgmr.msra.gmra.mxu1 %v5419_v12  ;;  %v4240_v11 = vadd.f32 %v4237_v1, %v4077_v29 }
 0x543   :  { %5687 = vmatpush.bf16.msra.mxu2 %v8462_v54  ;;  %5700 = vmatpush.bf16.msra.mxu3 %v8470_v38 }
 0x544   :  { %v4062_v13 = vpop.f32.mrf.mxu2  ;;  %v4075_v30 = vpop.f32.mrf.mxu3 }
 0x546   :  { %v4225_v0 = vpop.f32.mrf.mxu0  ;;  %v4238_v59 = vpop.f32.mrf.mxu1 }
 0x547   :  { %5688 = vmatpush.bf16.msra.mxu2 %v8461_v47  ;;  %5701 = vmatpush.bf16.msra.mxu3 %v8469_v24 }
 0x54a   :  { %5689 = vmatmul.bf16.vlgmr.msra.gmra.mxu2 %v5581_v20  ;;  %5702 = vmatmul.bf16.vlgmr.msra.gmra.mxu3 %v5582_v43 }
 0x54f   :  { %v4386_v23 = vpop.f32.mrf.mxu2  ;;  %v4399_v58 = vpop.f32.mrf.mxu3 }
 0x550   :  { %v4400_v40 = vadd.f32 %v4399_v58, %v4386_v23 }
 0x552   :  { %v4403_v4 = vadd.f32 %v4400_v40, %v4240_v11 }
 0x557   :  { %v4388_v27 = vpop.f32.mrf.mxu2  ;;  %v4401_v31 = vpop.f32.mrf.mxu3 }
 0x55e   :  { %v4549_v2 = vpop.f32.mrf.mxu0  ;;  %v4562_v51 = vpop.f32.mrf.mxu1 }
 0x55f   :  { %v4563_v7 = vadd.f32 %v4562_v51, %v4549_v2 }
 0x561   :  { %v4566_v34 = vadd.f32 %v4563_v7, %v4403_v4 }
 0x566   :  { %v4551_v63 = vpop.f32.mrf.mxu0  ;;  %v4564_v8 = vpop.f32.mrf.mxu1 }
 0x56f   :  { %v4712_v39 = vpop.f32.mrf.mxu2  ;;  %v4725_v3 = vpop.f32.mrf.mxu3 }
 0x570   :  { %v4726_v52 = vadd.f32 %v4725_v3, %v4712_v39 }
 0x572   :  { %v4729_v22 = vadd.f32 %v4726_v52, %v4566_v34 }
 0x577   :  { %v4714_v48 = vpop.f32.mrf.mxu2  ;;  %v4727_v41 = vpop.f32.mrf.mxu3 }
 0x57e   :  { %v4875_v5 = vpop.f32.mrf.mxu0  ;;  %v4888_v26 = vpop.f32.mrf.mxu1 }
 0x57f   :  { %v4889_v42 = vadd.f32 %v4888_v26, %v4875_v5 }
 0x581   :  { %v4892_v19 = vadd.f32 %v4889_v42, %v4729_v22 }
 0x586   :  { %v4877_v46 = vpop.f32.mrf.mxu0  ;;  %v4890_v9 = vpop.f32.mrf.mxu1 }
 0x58f   :  { %v5038_v62 = vpop.f32.mrf.mxu2  ;;  %v5051_v17 = vpop.f32.mrf.mxu3 }
 0x590   :  { %v5052_v6 = vadd.f32 %v5051_v17, %v5038_v62 }
 0x592   :  { %v5055_v53 = vadd.f32 %v5052_v6, %v4892_v19 }
 0x597   :  { %v5040_v45 = vpop.f32.mrf.mxu2  ;;  %v5053_v56 = vpop.f32.mrf.mxu3 }
 0x59e   :  { %v5201_v35 = vpop.f32.mrf.mxu0  ;;  %v5214_v15 = vpop.f32.mrf.mxu1 }
 0x59f   :  { %v5215_v18 = vadd.f32 %v5214_v15, %v5201_v35 }
 0x5a1   :  { %v5218_v54 = vadd.f32 %v5215_v18, %v5055_v53 }
 0x5a6   :  { %v5203_v14 = vpop.f32.mrf.mxu0  ;;  %v5216_v33 = vpop.f32.mrf.mxu1 }
 0x5af   :  { %v5364_v50 = vpop.f32.mrf.mxu2  ;;  %v5377_v55 = vpop.f32.mrf.mxu3 }
 0x5b0   :  { %v5378_v12 = vadd.f32 %v5377_v55, %v5364_v50 }
 0x5b2   :  { %v5381_v47 = vadd.f32 %v5378_v12, %v5218_v54 }
 0x5b7   :  { %v5366_v16 = vpop.f32.mrf.mxu2  ;;  %v5379_v25 = vpop.f32.mrf.mxu3 }
 0x5be   :  { %v5527_v37 = vpop.f32.mrf.mxu0  ;;  %v5540_v57 = vpop.f32.mrf.mxu1 }
 0x5bf   :  { %v5541_v38 = vadd.f32 %v5540_v57, %v5527_v37 }
 0x5c1   :  { %v5544_v61 = vadd.f32 %v5541_v38, %v5381_v47 }
 0x5c6   :  { %v5529_v28 = vpop.f32.mrf.mxu0  ;;  %v5542_v60 = vpop.f32.mrf.mxu1 }
 0x5cd   :  { %v5690_v24 = vpop.f32.mrf.mxu2  ;;  %v5703_v32 = vpop.f32.mrf.mxu3 }
 0x5ce   :  { %v5704_v36 = vadd.f32 %v5703_v32, %v5690_v24 }
 0x5d0   :  { %v5707_v49 = vadd.f32 %v5704_v36, %v5544_v61 }
 0x5d2   :  { %5708 = vst [vmem:[%s12636_s5] sm:$0xff] %v5707_v49 }
 0x5d5   :  { %v5692_v10 = vpop.f32.mrf.mxu2  ;;  %v5705_v44 = vpop.f32.mrf.mxu3 }

</bundles_post_ra>
